<compile_context>
chip_gen: v5e
topology: v5e:2x2
jax: 0.10.0
libtpu: 0.0.40
codegen_flags: <defaults>
</compile_context>

<pallas_src>
import functools

import jax
import jax.numpy as jnp
from jax.experimental import pallas as pl
from jax.experimental.pallas import tpu as pltpu


# Raise the scoped-VMEM cap above the v5e (16 MiB) / v6e (32 MiB) defaults
# while staying safely under v7x's 64 MiB physical VMEM.
_VMEM_LIMIT_BYTES = 48 * 1024 * 1024
# Target working-set of one grid step's double-buffered blocks.
_VMEM_BLOCK_BUDGET = 24 * 1024 * 1024


def _cparams(grid_rank):
    return pltpu.CompilerParams(
        dimension_semantics=("parallel",) * grid_rank,
        vmem_limit_bytes=_VMEM_LIMIT_BYTES,
    )


def _pick_block(total, *, min_steps=1, max_block=None):
    """Largest divisor of `total` that is <= max_block and leaves >= min_steps
    grid steps (so the BlockSpec pipeline overlaps DMA with compute on each
    TensorCore).  Falls back to 1 (== `total` steps) if nothing satisfies."""
    cap = total if max_block is None else max(1, min(total, int(max_block)))
    best = 1
    for d in range(1, cap + 1):
        if total % d == 0 and total // d >= min_steps:
            best = d
    return best


# ----------------------------------------------------------------------------
# Kernel 1: fused Q/K/V complex spectral contraction as a mode-batched real
#           MXU matmul (real/imag packed via the [[Wr,Wi],[-Wi,Wr]] block form)
# ----------------------------------------------------------------------------
def _spectral_contract_kernel(x_ref, w_ref, o_ref):
    # x : (m_blk, BN, 2*Cin)   columns = [xr | xi]
    # w : (m_blk, 2*Cin, 2*CO) rows/cols = [[Wr, Wi], [-Wi, Wr]]
    # o : (m_blk, BN, 2*CO)    columns = [o_r | o_i]
    o_ref[...] = jax.lax.dot_general(
        x_ref[...], w_ref[...],
        dimension_numbers=(((2,), (1,)), ((0,), (0,))),
        preferred_element_type=jnp.float32,
    )


def _spectral_contract(x_pack, w_block):
    """x_pack: (M, BN, 2*Cin); w_block: (M, 2*Cin, 2*CO) -> (M, BN, 2*CO)."""
    M, BN, Cin2 = x_pack.shape
    CO2 = w_block.shape[-1]
    per_mode = 4 * (BN * Cin2 + Cin2 * CO2 + BN * CO2)
    max_m = max(1, _VMEM_BLOCK_BUDGET // (2 * per_mode))
    m_blk = _pick_block(M, min_steps=3, max_block=max_m)
    grid = (M // m_blk,)
    # TODO(synk): for very large BN / CO additionally tile those axes in the
    # grid; at these sizes the mode axis alone bounds the per-step residency.

    cost = pl.CostEstimate(
        flops=2 * M * BN * Cin2 * CO2,
        transcendentals=0,
        bytes_accessed=4 * (M * BN * Cin2 + M * Cin2 * CO2 + M * BN * CO2),
    )
    return pl.pallas_call(
        _spectral_contract_kernel,
        out_shape=jax.ShapeDtypeStruct((M, BN, CO2), jnp.float32),
        grid_spec=pltpu.PrefetchScalarGridSpec(
            num_scalar_prefetch=0,
            grid=grid,
            in_specs=[
                pl.BlockSpec((m_blk, BN, Cin2), lambda g: (g, 0, 0)),
                pl.BlockSpec((m_blk, Cin2, CO2), lambda g: (g, 0, 0)),
            ],
            out_specs=pl.BlockSpec((m_blk, BN, CO2), lambda g: (g, 0, 0)),
        ),
        compiler_params=_cparams(1),
        cost_estimate=cost,
    )(x_pack, w_block)


# ----------------------------------------------------------------------------
# Kernel 2: scaled dot-product attention over patches, per (batch, head) block
# ----------------------------------------------------------------------------
def _attention_kernel(q_ref, k_ref, v_ref, o_ref, *, inv_scale):
    # q/k/v : (blk, N, F) bf16, F = d_k*P*P (multiple of 128 -> lane-dense)
    # bf16 MXU matmuls with f32 accumulation; softmax stays in f32.
    s = jnp.einsum("bnf,bmf->bnm", q_ref[...], k_ref[...],
                   preferred_element_type=jnp.float32) * inv_scale
    s = s - jnp.max(s, axis=-1, keepdims=True)
    p = jnp.exp(s)
    inv_l = pl.reciprocal(jnp.sum(p, axis=-1, keepdims=True), approx=True)
    p = (p * inv_l).astype(jnp.bfloat16)
    # TODO(synk): dropout(p=0.1) on the attention weights is eval-mode identity.
    o_ref[...] = jnp.einsum("bnm,bmf->bnf", p, v_ref[...],
                            preferred_element_type=jnp.float32)


def _attention(q, k, v, scale):
    """q/k/v: (B*H, N, F) bf16 -> (B*H, N, F) f32."""
    BH, N, F = q.shape
    per_item = (3 * q.dtype.itemsize + 4) * N * F
    max_blk = max(1, _VMEM_BLOCK_BUDGET // (2 * per_item))
    blk = _pick_block(BH, min_steps=4, max_block=max_blk)
    grid = (BH // blk,)
    spec = pl.BlockSpec((blk, N, F), lambda g: (g, 0, 0))
    # TODO(synk): for large N, stream K/V in chunks with running max/sum
    # (flash-style) instead of holding the full (blk, N, N) score tile.
    cost = pl.CostEstimate(
        flops=4 * BH * N * N * F,
        transcendentals=BH * N * N,
        bytes_accessed=(3 * q.dtype.itemsize + 4) * BH * N * F,
    )
    return pl.pallas_call(
        functools.partial(_attention_kernel, inv_scale=float(1.0 / scale)),
        out_shape=jax.ShapeDtypeStruct((BH, N, F), jnp.float32),
        grid_spec=pltpu.PrefetchScalarGridSpec(
            num_scalar_prefetch=0,
            grid=grid,
            in_specs=[spec, spec, spec],
            out_specs=spec,
        ),
        compiler_params=_cparams(1),
        cost_estimate=cost,
    )(q, k, v)


# ----------------------------------------------------------------------------
# Kernel 3: output projection in transposed, lane-dense layout
#           y^T = W @ x^T + b      (token axis on the 128-wide lane dim)
# ----------------------------------------------------------------------------
def _linear_t_kernel(w_ref, x_ref, b_ref, o_ref):
    o_ref[...] = (
        jnp.dot(w_ref[...], x_ref[...], preferred_element_type=jnp.float32)
        + b_ref[...]
    )


def _linear_transposed(w, x_t, b):
    """w: (Dout, Din); x_t: (Din, T); b: (Dout,) -> (Dout, T)."""
    Dout, Din = w.shape
    T = x_t.shape[1]
    if T <= 4096 or T % 128 != 0:
        t_blk = T          # one block: per-step overhead dominates tiny matmuls
    else:
        t_blk = 128 * _pick_block(T // 128, min_steps=4, max_block=32)
    grid = (T // t_blk,)
    cost = pl.CostEstimate(
        flops=2 * T * Din * Dout,
        transcendentals=0,
        bytes_accessed=4 * (T * Din + Din * Dout + Dout + T * Dout),
    )
    return pl.pallas_call(
        _linear_t_kernel,
        out_shape=jax.ShapeDtypeStruct((Dout, T), jnp.float32),
        grid_spec=pltpu.PrefetchScalarGridSpec(
            num_scalar_prefetch=0,
            grid=grid,
            in_specs=[
                pl.BlockSpec((Dout, Din), lambda g: (0, 0)),
                pl.BlockSpec((Din, t_blk), lambda g: (0, g)),
                pl.BlockSpec((Dout, 1), lambda g: (0, 0)),
            ],
            out_specs=pl.BlockSpec((Dout, t_blk), lambda g: (0, g)),
        ),
        compiler_params=_cparams(1),
        cost_estimate=cost,
    )(w, x_t, b.reshape(Dout, 1))


# ----------------------------------------------------------------------------
# MultiheadAttention_Conv forward (eval mode, key_padding_mask=None)
# ----------------------------------------------------------------------------
def multihead_attention_conv(x, params, *, modes1, modes2, im_size):
    """x: (B, N, P, P, d_model) float32; params: Q/K/V complex spectral weights
    + real out-linear weight/bias.  Returns (B, N, P, P, d_model) float32."""
    B, N, P, _, d_model = x.shape
    m1, m2 = modes1, modes2
    Wf = P // 2 + 1
    Cin = d_model
    dk = params["wq1"].shape[1]
    H = params["wq1"].shape[-1]
    M = 2 * m1 * m2
    BN = B * N
    CO = 3 * H * dk

    # ---- forward rFFT over the patch axes (XLA glue) ----
    # TODO(synk): jnp.fft.rfft2 / irfft2 have no Pallas equivalent; kept in XLA.
    x_ft = jnp.fft.rfft2(x, axes=(2, 3))                  # (B,N,P,Wf,Cin) c64
    x_modes = jnp.concatenate(
        [x_ft[:, :, :m1, :m2, :], x_ft[:, :, P - m1:, :m2, :]], axis=2
    )                                                     # (B,N,2*m1,m2,Cin)

    def mode_major(a):                                    # -> (M, BN, Cin)
        return jnp.transpose(a, (2, 3, 0, 1, 4)).reshape(M, BN, Cin)

    x_pack = jnp.concatenate(
        [mode_major(jnp.real(x_modes).astype(jnp.float32)),
         mode_major(jnp.imag(x_modes).astype(jnp.float32))],
        axis=-1,
    )                                                     # (M, BN, 2*Cin)

    # Q/K/V spectral weights: concat the two mode-row blocks, stack Q/K/V along
    # the output-channel axis (the rFFT of x is shared), and lay out the
    # [[Wr,Wi],[-Wi,Wr]] real block matrix per mode for the MXU matmul.
    def prep_w(w1, w2):
        w = jnp.concatenate([w1, w2], axis=2)             # (Cin,dk,2*m1,m2,H)
        w = jnp.transpose(w, (2, 3, 0, 4, 1)).reshape(M, Cin, H * dk)
        return jnp.real(w).astype(jnp.float32), jnp.imag(w).astype(jnp.float32)

    wqr, wqi = prep_w(params["wq1"], params["wq2"])
    wkr, wki = prep_w(params["wk1"], params["wk2"])
    wvr, wvi = prep_w(params["wv1"], params["wv2"])
    wr = jnp.concatenate([wqr, wkr, wvr], axis=-1)        # (M, Cin, CO)
    wi = jnp.concatenate([wqi, wki, wvi], axis=-1)
    w_block = jnp.concatenate(
        [jnp.concatenate([wr, wi], axis=-1),
         jnp.concatenate([-wi, wr], axis=-1)],
        axis=1,
    )                                                     # (M, 2*Cin, 2*CO)

    # ---- Pallas: fused Q/K/V complex spectral contraction (MXU) ----
    o_pack = _spectral_contract(x_pack, w_block)          # (M, BN, 2*CO)

    # ---- scatter retained modes (attention-friendly order) + inverse FFT ----
    o_c = jax.lax.complex(o_pack[..., :CO], o_pack[..., CO:])  # (M, BN, CO)
    o_c = o_c.reshape(2 * m1, m2, B, N, 3, H, dk)
    o_c = jnp.transpose(o_c, (4, 2, 5, 3, 6, 0, 1))       # (3,B,H,N,dk,2m1,m2)
    out_ft = jnp.zeros((3, B, H, N, dk, P, Wf), dtype=jnp.complex64)
    out_ft = out_ft.at[..., :m1, :m2].set(o_c[..., :m1, :])
    out_ft = out_ft.at[..., P - m1:, :m2].set(o_c[..., m1:, :])
    spatial = jnp.fft.irfft2(out_ft, s=(P, P), axes=(-2, -1))  # (3,B,H,N,dk,P,P)
    # TODO(synk): the zero-padded scatter + full irfft2 could be replaced by two
    # truncated-DFT matmuls fused into the spectral kernel epilogue.

    # q/k/v are plain reshapes of the irfft output (no spatial-tensor permute);
    # the feature axis is (dk, x, y), which is consistent across q/k/v and the
    # downstream linear, so the attention math is unchanged.
    F = dk * P * P
    qkv = spatial.reshape(3, B * H, N, F).astype(jnp.bfloat16)

    # ---- Pallas: scaled dot-product attention over patches (bf16 MXU) ----
    attn_scale = float(im_size) ** 2                      # sqrt(im_size**4)
    attn = _attention(qkv[0], qkv[1], qkv[2], attn_scale)  # (B*H, N, F) f32

    # ---- Pallas: output projection (lane-dense transposed layout) ----
    a_t = jnp.transpose(attn.reshape(B, H, N, dk, P, P),
                        (3, 1, 0, 2, 4, 5)).reshape(dk * H, B * N * P * P)
    y_t = _linear_transposed(params["w_out"], a_t, params["b_out"])  # (d_model,T)
    # TODO(synk): final dropout(p=0.1) is eval-mode identity.
    y = jnp.transpose(y_t.reshape(d_model, B, N, P, P), (1, 2, 3, 4, 0))
    return y


# ----------------------------------------------------------------------------
# Pure-JAX reference mirroring the PyTorch forward exactly (for validation)
# ----------------------------------------------------------------------------
def _spectral_conv2d_attention_ref(x, w1, w2, m1, m2):
    xp = jnp.transpose(x, (0, 1, 4, 2, 3))                # (B,N,Cin,P,P)
    x_ft = jnp.fft.rfft2(xp)                              # (B,N,Cin,P,Wf)
    B, N, Cin, P, Wf = x_ft.shape
    Cout, H = w1.shape[1], w1.shape[-1]
    top = jnp.einsum("bnixy,ioxyh->bnohxy", x_ft[:, :, :, :m1, :m2], w1)
    bot = jnp.einsum("bnixy,ioxyh->bnohxy", x_ft[:, :, :, P - m1:, :m2], w2)
    out_ft = jnp.zeros((B, N, Cout, H, P, Wf), dtype=jnp.complex64)
    out_ft = out_ft.at[..., :m1, :m2].set(top)
    out_ft = out_ft.at[..., P - m1:, :m2].set(bot)
    y = jnp.fft.irfft2(out_ft, s=(P, P))                  # (B,N,Cout,H,P,P)
    return jnp.transpose(y, (0, 1, 4, 5, 2, 3))           # (B,N,P,P,Cout,H)


def multihead_attention_conv_ref(x, params, modes1, modes2, im_size):
    B, N, P, _, d_model = x.shape
    q = _spectral_conv2d_attention_ref(x, params["wq1"], params["wq2"], modes1, modes2)
    k = _spectral_conv2d_attention_ref(x, params["wk1"], params["wk2"], modes1, modes2)
    v = _spectral_conv2d_attention_ref(x, params["wv1"], params["wv2"], modes1, modes2)
    q = jnp.transpose(q, (0, 5, 1, 2, 3, 4))              # (B,H,N,P,P,dk)
    k = jnp.transpose(k, (0, 5, 1, 2, 3, 4))
    v = jnp.transpose(v, (0, 5, 1, 2, 3, 4))
    scale = float(im_size) ** 2
    scores = jnp.einsum("bnpxyd,bnqxyd->bnpq", q, k) / scale
    attn = jax.nn.softmax(scores, axis=-1)
    out = jnp.einsum("bnpq,bnqxyd->bnpxyd", attn, v)
    out = jnp.transpose(out, (0, 2, 3, 4, 5, 1))          # (B,N,P,P,dk,H)
    dk, H = out.shape[-2], out.shape[-1]
    out = out.reshape(B, N, P, P, dk * H)
    return out @ params["w_out"].T + params["b_out"]


if __name__ == "__main__":
    # Small deterministic setup consistent with the module.
    B, N, P, d_model, nhead = 2, 3, 8, 8, 2
    modes1, modes2 = 3, 3
    im_size = P
    d_k = d_model // nhead

    key = jax.random.PRNGKey(0)
    keys = jax.random.split(key, 15)

    x = jax.random.normal(keys[0], (B, N, P, P, d_model), dtype=jnp.float32)

    scale_w = 1.0 / (d_model * d_k)

    def make_cweights(kr, ki):
        # torch.rand(..., dtype=cfloat): real & imag independently Uniform[0,1)
        re = jax.random.uniform(kr, (d_model, d_k, modes1, modes2, nhead),
                                dtype=jnp.float32)
        im = jax.random.uniform(ki, (d_model, d_k, modes1, modes2, nhead),
                                dtype=jnp.float32)
        return (scale_w * (re + 1j * im)).astype(jnp.complex64)

    lin_bound = 1.0 / jnp.sqrt(jnp.float32(nhead * d_k))
    params = {
        "wq1": make_cweights(keys[1], keys[2]),
        "wq2": make_cweights(keys[3], keys[4]),
        "wk1": make_cweights(keys[5], keys[6]),
        "wk2": make_cweights(keys[7], keys[8]),
        "wv1": make_cweights(keys[9], keys[10]),
        "wv2": make_cweights(keys[11], keys[12]),
        "w_out": jax.random.uniform(keys[13], (d_model, nhead * d_k),
                                    minval=-1.0, maxval=1.0,
                                    dtype=jnp.float32) * lin_bound,
        "b_out": jax.random.uniform(keys[14], (d_model,),
                                    minval=-1.0, maxval=1.0,
                                    dtype=jnp.float32) * lin_bound,
    }

    fwd = jax.jit(functools.partial(multihead_attention_conv,
                                    modes1=modes1, modes2=modes2,
                                    im_size=im_size))
    y = fwd(x, params)
    y = jax.block_until_ready(y)

    y_ref = multihead_attention_conv_ref(x, params, modes1, modes2, im_size)
    assert y.shape == (B, N, P, P, d_model), y.shape
    err = float(jnp.max(jnp.abs(y - y_ref)))
    # bf16 attention matmuls + approx reciprocal loosen numerics slightly.
    assert jnp.allclose(y, y_ref, atol=1e-2, rtol=1e-2), f"mismatch: {err}"

    print("KERNEL_OK")
</pallas_src>

<mosaic_0001>
module attributes {stable_mosaic.version = 11 : i64} {
  func.func @_spectral_contract_kernel(%arg0: i32, %arg1: memref<6x6x16xf32, #tpu.memory_space<vmem>>, %arg2: memref<6x16x48xf32, #tpu.memory_space<vmem>>, %arg3: memref<6x6x48xf32, #tpu.memory_space<vmem>>) attributes {dimension_semantics = [#tpu.dimension_semantics<parallel>], iteration_bounds = array<i64: 3>, scalar_prefetch = 0 : i64, scratch_operands = 0 : i64, tpu.core_type = #tpu.core_type<tc>, window_params = [{transform_indices = @transform_0, window_bounds = array<i64: 6, 6, 16>}, {transform_indices = @transform_1, window_bounds = array<i64: 6, 16, 48>}, {transform_indices = @transform_2, window_bounds = array<i64: 6, 6, 48>}]} {
    %c0 = arith.constant 0 : index
    %c0_0 = arith.constant 0 : index
    %c0_1 = arith.constant 0 : index
    %0 = vector.load %arg1[%c0, %c0_0, %c0_1] : memref<6x6x16xf32, #tpu.memory_space<vmem>>, vector<6x6x16xf32>
    %c0_2 = arith.constant 0 : index
    %c0_3 = arith.constant 0 : index
    %c0_4 = arith.constant 0 : index
    %1 = vector.load %arg2[%c0_2, %c0_3, %c0_4] : memref<6x16x48xf32, #tpu.memory_space<vmem>>, vector<6x16x48xf32>
    %cst = arith.constant dense<0.000000e+00> : vector<6x6x48xf32>
    %2 = tpu.matmul %0, %1, %cst {dimension_numbers = #tpu.dot_dimension_numbers<[2], [1], [1], [2], [0, 0, 0, 1, 1, 2], [0], [0]>} : vector<6x6x16xf32>, vector<6x16x48xf32>, vector<6x6x48xf32> -> vector<6x6x48xf32>
    %c0_5 = arith.constant 0 : index
    %c0_6 = arith.constant 0 : index
    %c0_7 = arith.constant 0 : index
    %3 = vector.load %arg3[%c0_5, %c0_6, %c0_7] : memref<6x6x48xf32, #tpu.memory_space<vmem>>, vector<6x6x48xf32>
    tpu.vector_store %arg3[%c0_5, %c0_6, %c0_7], %2 {strides = array<i32>} : memref<6x6x48xf32, #tpu.memory_space<vmem>>, vector<6x6x48xf32>,
    return
  }
  func.func @transform_0(%arg0: i32) -> (i32, i32, i32) {
    %c0_i32 = arith.constant 0 : i32
    %c0_i32_0 = arith.constant 0 : i32
    %c0_i32_1 = arith.constant 0 : i32
    return %arg0, %c0_i32, %c0_i32_0 : i32, i32, i32
  }
  func.func @transform_1(%arg0: i32) -> (i32, i32, i32) {
    %c0_i32 = arith.constant 0 : i32
    %c0_i32_0 = arith.constant 0 : i32
    %c0_i32_1 = arith.constant 0 : i32
    return %arg0, %c0_i32, %c0_i32_0 : i32, i32, i32
  }
  func.func @transform_2(%arg0: i32) -> (i32, i32, i32) {
    %c0_i32 = arith.constant 0 : i32
    %c0_i32_0 = arith.constant 0 : i32
    %c0_i32_1 = arith.constant 0 : i32
    return %arg0, %c0_i32, %c0_i32_0 : i32, i32, i32
  }
}

module attributes {stable_mosaic.version = 11 : i64} {
  func.func @_attention_kernel(%arg0: i32, %arg1: memref<1x3x256xbf16, #tpu.memory_space<vmem>>, %arg2: memref<1x3x256xbf16, #tpu.memory_space<vmem>>, %arg3: memref<1x3x256xbf16, #tpu.memory_space<vmem>>, %arg4: memref<1x3x256xf32, #tpu.memory_space<vmem>>) attributes {dimension_semantics = [#tpu.dimension_semantics<parallel>], iteration_bounds = array<i64: 4>, scalar_prefetch = 0 : i64, scratch_operands = 0 : i64, tpu.core_type = #tpu.core_type<tc>, window_params = [{transform_indices = @transform_0, window_bounds = array<i64: 1, 3, 256>}, {transform_indices = @transform_1, window_bounds = array<i64: 1, 3, 256>}, {transform_indices = @transform_2, window_bounds = array<i64: 1, 3, 256>}, {transform_indices = @transform_3, window_bounds = array<i64: 1, 3, 256>}]} {
    %c0 = arith.constant 0 : index
    %c0_0 = arith.constant 0 : index
    %c0_1 = arith.constant 0 : index
    %0 = vector.load %arg1[%c0, %c0_0, %c0_1] : memref<1x3x256xbf16, #tpu.memory_space<vmem>>, vector<1x3x256xbf16>
    %c0_2 = arith.constant 0 : index
    %c0_3 = arith.constant 0 : index
    %c0_4 = arith.constant 0 : index
    %1 = vector.load %arg2[%c0_2, %c0_3, %c0_4] : memref<1x3x256xbf16, #tpu.memory_space<vmem>>, vector<1x3x256xbf16>
    "tpu.trace_start"() <{level = 10 : i32, message = "bnf,bmf->bnm"}> : () -> ()
    %cst = arith.constant dense<0.000000e+00> : vector<1x3x3xf32>
    %2 = tpu.matmul %0, %1, %cst {dimension_numbers = #tpu.dot_dimension_numbers<[2], [2], [1], [1], [0, 0, 0, 1, 1, 1], [0], [0]>} : vector<1x3x256xbf16>, vector<1x3x256xbf16>, vector<1x3x3xf32> -> vector<1x3x3xf32>
    "tpu.trace_stop"() : () -> ()
    %cst_5 = arith.constant 1.562500e-02 : f32
    %3 = vector.broadcast %cst_5 : f32 to vector<1x3x3xf32>
    %4 = arith.mulf %2, %3 : vector<1x3x3xf32>
    %cst_6 = arith.constant dense<0xFF800000> : vector<1x3xf32>
    %5 = vector.multi_reduction <maximumf>, %4, %cst_6 [2] : vector<1x3x3xf32> to vector<1x3xf32>
    %6 = vector.shape_cast %5 : vector<1x3xf32> to vector<1x3x1xf32>
    %7 = vector.broadcast %6 : vector<1x3x1xf32> to vector<1x3x3xf32>
    %8 = arith.subf %4, %7 : vector<1x3x3xf32>
    %9 = math.exp %8 : vector<1x3x3xf32>
    %cst_7 = arith.constant dense<0.000000e+00> : vector<1x3xf32>
    %10 = vector.multi_reduction <add>, %9, %cst_7 [2] : vector<1x3x3xf32> to vector<1x3xf32>
    %11 = vector.shape_cast %10 : vector<1x3xf32> to vector<1x3x1xf32>
    %12 = tpu.reciprocal %11 {approx = true} : vector<1x3x1xf32> -> vector<1x3x1xf32>
    %13 = vector.broadcast %12 : vector<1x3x1xf32> to vector<1x3x3xf32>
    %14 = arith.mulf %9, %13 : vector<1x3x3xf32>
    %15 = arith.truncf %14 : vector<1x3x3xf32> to vector<1x3x3xbf16>
    %c0_8 = arith.constant 0 : index
    %c0_9 = arith.constant 0 : index
    %c0_10 = arith.constant 0 : index
    %16 = vector.load %arg3[%c0_8, %c0_9, %c0_10] : memref<1x3x256xbf16, #tpu.memory_space<vmem>>, vector<1x3x256xbf16>
    "tpu.trace_start"() <{level = 10 : i32, message = "bnm,bmf->bnf"}> : () -> ()
    %cst_11 = arith.constant dense<0.000000e+00> : vector<1x3x256xf32>
    %17 = tpu.matmul %15, %16, %cst_11 {dimension_numbers = #tpu.dot_dimension_numbers<[2], [1], [1], [2], [0, 0, 0, 1, 1, 2], [0], [0]>} : vector<1x3x3xbf16>, vector<1x3x256xbf16>, vector<1x3x256xf32> -> vector<1x3x256xf32>
    "tpu.trace_stop"() : () -> ()
    %c0_12 = arith.constant 0 : index
    %c0_13 = arith.constant 0 : index
    %c0_14 = arith.constant 0 : index
    %18 = vector.load %arg4[%c0_12, %c0_13, %c0_14] : memref<1x3x256xf32, #tpu.memory_space<vmem>>, vector<1x3x256xf32>
    tpu.vector_store %arg4[%c0_12, %c0_13, %c0_14], %17 {strides = array<i32>} : memref<1x3x256xf32, #tpu.memory_space<vmem>>, vector<1x3x256xf32>,
    return
  }
  func.func @transform_0(%arg0: i32) -> (i32, i32, i32) {
    %c0_i32 = arith.constant 0 : i32
    %c0_i32_0 = arith.constant 0 : i32
    %c0_i32_1 = arith.constant 0 : i32
    return %arg0, %c0_i32, %c0_i32_0 : i32, i32, i32
  }
  func.func @transform_1(%arg0: i32) -> (i32, i32, i32) {
    %c0_i32 = arith.constant 0 : i32
    %c0_i32_0 = arith.constant 0 : i32
    %c0_i32_1 = arith.constant 0 : i32
    return %arg0, %c0_i32, %c0_i32_0 : i32, i32, i32
  }
  func.func @transform_2(%arg0: i32) -> (i32, i32, i32) {
    %c0_i32 = arith.constant 0 : i32
    %c0_i32_0 = arith.constant 0 : i32
    %c0_i32_1 = arith.constant 0 : i32
    return %arg0, %c0_i32, %c0_i32_0 : i32, i32, i32
  }
  func.func @transform_3(%arg0: i32) -> (i32, i32, i32) {
    %c0_i32 = arith.constant 0 : i32
    %c0_i32_0 = arith.constant 0 : i32
    %c0_i32_1 = arith.constant 0 : i32
    return %arg0, %c0_i32, %c0_i32_0 : i32, i32, i32
  }
}

module attributes {stable_mosaic.version = 11 : i64} {
  func.func @_linear_t_kernel(%arg0: i32, %arg1: memref<8x8xf32, #tpu.memory_space<vmem>>, %arg2: memref<8x384xf32, #tpu.memory_space<vmem>>, %arg3: memref<8x1xf32, #tpu.memory_space<vmem>>, %arg4: memref<8x384xf32, #tpu.memory_space<vmem>>) attributes {dimension_semantics = [#tpu.dimension_semantics<parallel>], iteration_bounds = array<i64: 1>, scalar_prefetch = 0 : i64, scratch_operands = 0 : i64, tpu.core_type = #tpu.core_type<tc>, window_params = [{pipeline_mode = #tpu.pipeline_mode<synchronous>, transform_indices = @transform_0, window_bounds = array<i64: 8, 8>}, {transform_indices = @transform_1, window_bounds = array<i64: 8, 384>}, {pipeline_mode = #tpu.pipeline_mode<synchronous>, transform_indices = @transform_2, window_bounds = array<i64: 8, 1>}, {transform_indices = @transform_3, window_bounds = array<i64: 8, 384>}]} {
    %c0 = arith.constant 0 : index
    %c0_0 = arith.constant 0 : index
    %0 = vector.load %arg1[%c0, %c0_0] : memref<8x8xf32, #tpu.memory_space<vmem>>, vector<8x8xf32>
    %c0_1 = arith.constant 0 : index
    %c0_2 = arith.constant 0 : index
    %1 = vector.load %arg2[%c0_1, %c0_2] : memref<8x384xf32, #tpu.memory_space<vmem>>, vector<8x384xf32>
    %cst = arith.constant dense<0.000000e+00> : vector<8x384xf32>
    %2 = tpu.matmul %0, %1, %cst {dimension_numbers = #tpu.dot_dimension_numbers<[1], [0], [0], [1], [0, 0, 1, 1], [], []>} : vector<8x8xf32>, vector<8x384xf32>, vector<8x384xf32> -> vector<8x384xf32>
    %c0_3 = arith.constant 0 : index
    %c0_4 = arith.constant 0 : index
    %3 = vector.load %arg3[%c0_3, %c0_4] : memref<8x1xf32, #tpu.memory_space<vmem>>, vector<8x1xf32>
    %4 = vector.broadcast %3 : vector<8x1xf32> to vector<8x384xf32>
    %5 = arith.addf %2, %4 : vector<8x384xf32>
    %c0_5 = arith.constant 0 : index
    %c0_6 = arith.constant 0 : index
    %6 = vector.load %arg4[%c0_5, %c0_6] : memref<8x384xf32, #tpu.memory_space<vmem>>, vector<8x384xf32>
    tpu.vector_store %arg4[%c0_5, %c0_6], %5 {strides = array<i32>} : memref<8x384xf32, #tpu.memory_space<vmem>>, vector<8x384xf32>,
    return
  }
  func.func @transform_0(%arg0: i32) -> (i32, i32) {
    %c0_i32 = arith.constant 0 : i32
    %c0_i32_0 = arith.constant 0 : i32
    %c0_i32_1 = arith.constant 0 : i32
    return %c0_i32, %c0_i32_0 : i32, i32
  }
  func.func @transform_1(%arg0: i32) -> (i32, i32) {
    %c0_i32 = arith.constant 0 : i32
    %c0_i32_0 = arith.constant 0 : i32
    return %c0_i32, %arg0 : i32, i32
  }
  func.func @transform_2(%arg0: i32) -> (i32, i32) {
    %c0_i32 = arith.constant 0 : i32
    %c0_i32_0 = arith.constant 0 : i32
    %c0_i32_1 = arith.constant 0 : i32
    return %c0_i32, %c0_i32_0 : i32, i32
  }
  func.func @transform_3(%arg0: i32) -> (i32, i32) {
    %c0_i32 = arith.constant 0 : i32
    %c0_i32_0 = arith.constant 0 : i32
    return %c0_i32, %arg0 : i32, i32
  }
}

</mosaic_0001>

<bundles_post_ra>
// kernel: custom-call
= control target key start
LH: loop header
LB: loop body
LE: loop exit
PB: predicated region body
PF: predicated region fallthrough
CT: control target
= control target key end

     0   :  { %2 = vsyncpa [#allocation0], 0  ;;  %s55_s0 = inlined_call_operand.hbm [shape: c64[8,4,3,3,2], index: 0, kind: input, shape index: {}]   ;;  %s56_s1 = inlined_call_operand.vmem [shape: f32[8,4,3,3,2], index: 1, kind: output, shape index: {}]  }
   0x1   :  { %s4_s8 = sshll.u32 %s55_s0, 4  ;;  %s6_s11 = sshll.u32 %s56_s1, 4  ;;  %s5_s8 = int_to_ptr.hbm [resolvable:$true] %s4_s8  ;;  %s7_s11 = int_to_ptr.vmem [resolvable:$true] %s6_s11 }
   0x2   :  { %9 = dma.hbm_to_vmem [thread:$0]  %s5_s8, 1152, %s7_s11, [#allocation0] }
   0x3   :  { %37 = dma.done.wait [#allocation0], 1152  }
   0x4   :  { %38 = vsyncadd [#allocation0], 4294966144 }
   0x5   :  { %12 = vsyncpa [#allocation0], 1 }

// kernel: custom-call.1
= control target key start
LH: loop header
LB: loop body
LE: loop exit
PB: predicated region body
PF: predicated region fallthrough
CT: control target
= control target key end

     0   :  { %s56_s0 = inlined_call_operand.hbm [shape: c64[8,4,3,3,2], index: 0, kind: input, shape index: {}]   ;;  %s57_s1 = inlined_call_operand.vmem [shape: f32[8,4,3,3,2], index: 1, kind: output, shape index: {}]  }
   0x1   :  { %s2_s8 = scalar_lea.hbm %s56_s0, 72 }
   0x2   :  { %3 = vsyncpa [#allocation0], 0  ;;  %s5_s9 = sshll.u32 %s2_s8, 4  ;;  %s7_s12 = sshll.u32 %s57_s1, 4  ;;  %s6_s9 = int_to_ptr.hbm [resolvable:$true] %s5_s9  ;;  %s8_s12 = int_to_ptr.vmem [resolvable:$true] %s7_s12 }
   0x3   :  { %10 = dma.hbm_to_vmem [thread:$0]  %s6_s9, 1152, %s8_s12, [#allocation0] }
   0x4   :  { %38 = dma.done.wait [#allocation0], 1152  }
   0x5   :  { %39 = vsyncadd [#allocation0], 4294966144 }
   0x6   :  { %13 = vsyncpa [#allocation0], 1 }

// kernel: multihead_attention_conv.3
= control target key start
LH: loop header
LB: loop body
LE: loop exit
PB: predicated region body
PF: predicated region fallthrough
CT: control target
= control target key end

     0   :  { %s453_s9 = smov 0   ;;  %s495_s0 = inlined_call_operand.vmem [shape: f32[18,6,16], index: 0, kind: input, shape index: {}]   ;;  %s496_s1 = inlined_call_operand.vmem [shape: f32[18,16,48], index: 1, kind: input, shape index: {}]   ;;  %s497_s2 = inlined_call_operand.vmem [shape: f32[18,6,48], index: 2, kind: output, shape index: {}]  }
   0x1 LB: > { %s404_s10 = sadd.s32 4294967295, %s436_s9   ;;  %p408_p0 = scmp.ge.s32.totalorder %s436_s9, 1  ;;  %s436_s9 = sphi %s453_s9, %s12_s9  }
   0x2   : > { %p125_p1 = scmp.lt.s32.totalorder %s436_s9, 4 }
   0x4   : > { %p126_p2 = pnand %p408_p0, %p125_p1 }
   0x5   : > { %s153_s11 = smul.u32 (!%p126_p2), 6, %s404_s10 }
   0x6   : > { %129 = sbr.rel (%p126_p2) target bundleno = 156 (0x9c), region = 28 }
   0x7   : > { %p154_p3 = scmp.lt.s32.totalorder (!%p126_p2), %s153_s11, 17 }
   0xb   : > { %s499_s11 = smov (!%p154_p3, %s153_s11), 17  ;;  %vm190_vm0 = vcmask 130048   ;;  %vm329_vm1 = vcmask 390144  }
   0xc   : > { %s421_s12 = sshll.u32 %s499_s11, 4  ;;  %s409_s13 = sshll.u32 %s499_s11, 3 }
   0xd   : > { %s164_s16 = scalar_lea.vmem %s496_s1, %s421_s12  ;;  %s473_s19 = scalar_lea.vmem %s495_s0, %s409_s13 }
   0xe   : > { %v179_v0 = vld [vmem:[%s164_s16 + $0x8] sm:$0xff]  ;;  %v181_v1 = vld [vmem:[%s164_s16 + $0x18] sm:$0xff]  ;;  %v178_v2 = vld [vmem:[%s164_s16] sm:$0xff]  ;;  %s170_s22 = scalar_lea.vmem %s497_s2, %s409_s13 }
   0xf   : > { %208 = vmatpush.msra.mxu0 %v179_v0  ;;  %231 = vmatpush.msra.mxu1 %v181_v1  ;;  %v180_v3 = vld [vmem:[%s164_s16 + $0x10] sm:$0xff]  ;;  %v183_v4 = vld [vmem:[%s164_s16 + $0x28] sm:$0xff]  ;;  %v185_v5 = vld [vmem:[%s164_s16 + $0x38] sm:$0xff] }
  0x10   : > { %254 = vmatpush.msra.mxu2 %v183_v4  ;;  %277 = vmatpush.msra.mxu3 %v185_v5  ;;  %v172_v6 = vld [vmem:[%s473_s19] sm:$0x3f]  ;;  %v173_v7 = vld [vmem:[%s473_s19 + $0x8] sm:$0x3f]  ;;  %v189_v9 = vld [vmem:[%s164_s16 + $0x58] sm:$0xff] }
  0x11   : > { %v187_v8 = vld [vmem:[%s164_s16 + $0x48] sm:$0xff]  ;;  %209 = vmatpush.msra.mxu0 %v178_v2  ;;  %232 = vmatpush.msra.mxu1 %v180_v3  ;;  %v182_v10 = vld [vmem:[%s164_s16 + $0x20] sm:$0xff]  ;;  %v184_v11 = vld [vmem:[%s164_s16 + $0x30] sm:$0xff] }
  0x12   : > { %413 = vmatmul.msk.f32.vlgmr.msra.gmra.mxu0 %vm190_vm0, %v172_v6  ;;  %414 = vmatmul.msk.f32.vlgmr.msra.gmra.mxu1 %vm190_vm0, %v173_v7  ;;  %v174_v12 = vld [vmem:[%s473_s19 + $0x10] sm:$0x3f]  ;;  %v175_v13 = vld [vmem:[%s473_s19 + $0x18] sm:$0x3f]  ;;  %v186_v14 = vld [vmem:[%s164_s16 + $0x40] sm:$0xff] }
  0x13   : > { %300 = vmatpush.msrb.mxu0 %v187_v8  ;;  %323 = vmatpush.msrb.mxu1 %v189_v9  ;;  %v188_v15 = vld [vmem:[%s164_s16 + $0x50] sm:$0xff]  ;;  %v176_v16 = vld [vmem:[%s473_s19 + $0x20] sm:$0x3f]  ;;  %v177_v17 = vld [vmem:[%s473_s19 + $0x28] sm:$0x3f] }
  0x14   : > { %255 = vmatpush.msra.mxu2 %v182_v10  ;;  %278 = vmatpush.msra.mxu3 %v184_v11 }
  0x15   : > { %415 = vmatmul.msk.f32.vlgmr.msra.gmra.mxu2 %vm190_vm0, %v174_v12  ;;  %416 = vmatmul.msk.f32.vlgmr.msra.gmra.mxu3 %vm190_vm0, %v175_v13 }
  0x16   : > { %301 = vmatpush.msrb.mxu0 %v186_v14  ;;  %324 = vmatpush.msrb.mxu1 %v188_v15 }
  0x1a   : > { %417 = vmatmul.msk.f32.vlgmr.msrb.gmra.mxu0 %vm190_vm0, %v176_v16  ;;  %418 = vmatmul.msk.f32.vlgmr.msrb.gmra.mxu1 %vm190_vm0, %v177_v17 }
  0x8f   : > { %v211_v18 = vpop.f32.mrf.mxu0  ;;  %v234_v19 = vpop.f32.mrf.mxu1 }
  0x90   : > { %330 = vst.msk [vmem:[%s170_s22] sm:$0x3f] %vm329_vm1, %v211_v18 }
  0x91   : > { %331 = vst.msk [vmem:[%s170_s22 + $0x8] sm:$0x3f] %vm329_vm1, %v234_v19 }
  0x97   : > { %v303_v20 = vpop.f32.mrf.mxu0  ;;  %v326_v21 = vpop.f32.mrf.mxu1 }
  0x98   : > { %v257_v22 = vpop.f32.mrf.mxu2  ;;  %v280_v23 = vpop.f32.mrf.mxu3  ;;  %334 = vst.msk [vmem:[%s170_s22 + $0x20] sm:$0x3f] %vm329_vm1, %v303_v20 }
  0x99   : > { %332 = vst.msk [vmem:[%s170_s22 + $0x10] sm:$0x3f] %vm329_vm1, %v257_v22 }
  0x9a   : > { %333 = vst.msk [vmem:[%s170_s22 + $0x18] sm:$0x3f] %vm329_vm1, %v280_v23 }
  0x9b   : > { %335 = vst.msk [vmem:[%s170_s22 + $0x28] sm:$0x3f] %vm329_vm1, %v326_v21 }
  0x9c PF: > { %s12_s9 = sadd.s32 1, %s436_s9  }
  0x9d   : > { %p9_p4 = scmp.ge.s32.totalorder %s12_s9, 5  }
  0x9f   :  { %11 = sbr.rel (!%p9_p4) target bundleno = 1 (0x1), region = 61 }

// kernel: reverse.0
= control target key start
LH: loop header
LB: loop body
LE: loop exit
PB: predicated region body
PF: predicated region fallthrough
CT: control target
= control target key end

     0   :  { %s4734_s6 = smov 0   ;;  %s4736_s7 = smov 0   ;;  %s5582_s0 = inlined_call_operand.vmem [shape: f32[3,2,2,3,4,8,3], index: 0, kind: input, shape index: {}]   ;;  %s5583_s1 = inlined_call_operand.vmem [shape: f32[3,2,2,3,4,8,3], index: 1, kind: output, shape index: {}]  }
   0x1   :  { %s4738_s8 = smov 0  }
   0x2 LB: > { %s4180_s9 = sadd.s32 4294967295, %s4690_s8   ;;  %s38_s10 = sadd.s32 1, %s4686_s7  ;;  %s4690_s8 = sphi %s4738_s8, %s7_s8   ;;  %s4686_s7 = sphi %s4736_s7, %s5594_s7   ;;  %s4682_s6 = sphi %s4734_s6, %s5593_s6  }
   0x3   : > { %p40_p0 = scmp.ge.s32.totalorder %s38_s10, 2  ;;  %p4182_p1 = scmp.ge.s32.totalorder %s4690_s8, 2 }
   0x4   : > { %s70_s11 = sand.u32 (!%p4182_p1), 1, %s4690_s8   ;;  %s78_s12 = smul.u32 (!%p4182_p1), 3, %s4686_s7 }
   0x5   : > { %s5596_s10 = smov (%p40_p0, %s38_s10), 0  ;;  %68 = sbr.rel (%p4182_p1) target bundleno = 57 (0x39), region = 16 }
   0x6   : > { %s4756_s13 = smul.u32 (!%p4182_p1), 864, %s70_s11  ;;  %s79_s14 = ssub.s32 (!%p4182_p1), 4, %s78_s12 }
   0x7   : > { %s4524_s15 = smul.u32 (!%p4182_p1), 12, %s4686_s7  ;;  %p80_p2 = scmp.lt.s32.totalorder (!%p4182_p1), %s79_s14, 3 }
   0x8   : > { %s72_s19 = scalar_lea.vmem (!%p4182_p1), [#allocation1], %s4756_s13 }
   0x9   : > { %s4762_s18 = scalar_lea.vmem (!%p4182_p1), %s5582_s0, %s4524_s15   ;;  %s102_s20 = scalar_lea.vmem (!%p4182_p1), %s72_s19, 4 [#allocation1]  }
   0xa   : > { %s5598_s14 = smov (!%p80_p2, %s79_s14), 3 }
   0xb   : > { %s82_s21 = smul.u32 144, %s5598_s14 }
   0xd   : > { %p4185_p3 = scmp.eq.s32.totalorder %s82_s21, 0 }
   0xe   : > { %s5584_s22 = smov (!%p4185_p3), %s4762_s18  ;;  %s4775_s23 = smov (!%p4185_p3), 0  }
   0xf   : > { %106 = sbr.rel (%p4185_p3) target bundleno = 57 (0x39), region = 20  ;;  %s4777_s24 = smov (!%p4185_p3), 0  }
  0x14 LB: >> { %v124_v0 = vld [vmem:[%s4698_s22] sm:$0xf]  ;;  %v126_v1 = vld [vmem:[%s4698_s22 + $0x10] sm:$0xf]  ;;  %s199_s25 = sadd.s32 1, %s4702_s23  ;;  %s117_s24 = sadd.s32 1, %s4706_s24   ;;  %s4706_s24 = sphi %s4777_s24, %s117_s24   ;;  %s4702_s23 = sphi %s4775_s23, %s5587_s23   ;;  %s4698_s22 = sphi %s5584_s22, %s5586_s22   ;;  %s4694_s20 = sphi %s102_s20, %s5585_s20  }
  0x15   : >> { %v128_v2 = vld [vmem:[%s4698_s22 + $0x20] sm:$0xf]  ;;  %125 = vst [vmem:[%s4694_s20] sm:$0xf] %v124_v0  ;;  %v130_v3 = vld [vmem:[%s4698_s22 + $0x30] sm:$0xf]  ;;  %p201_p4 = scmp.ge.s32.totalorder %s199_s25, %s5598_s14  ;;  %p116_p5 = scmp.ge.s32.totalorder %s117_s24, %s5598_s14 }
  0x16   : >> { %127 = vst [vmem:[%s4694_s20 + $0x18] sm:$0xf] %v126_v1  ;;  %v132_v4 = vld [vmem:[%s4698_s22 + $0x40] sm:$0xf]  ;;  %v134_v5 = vld [vmem:[%s4698_s22 + $0x50] sm:$0xf] }
  0x17   : >> { %129 = vst [vmem:[%s4694_s20 + $0x30] sm:$0xf] %v128_v2  ;;  %v136_v6 = vld [vmem:[%s4698_s22 + $0x60] sm:$0xf]  ;;  %v138_v7 = vld [vmem:[%s4698_s22 + $0x70] sm:$0xf] }
  0x18   : >> { %131 = vst [vmem:[%s4694_s20 + $0x48] sm:$0xf] %v130_v3  ;;  %v140_v8 = vld [vmem:[%s4698_s22 + $0x80] sm:$0xf]  ;;  %v142_v9 = vld [vmem:[%s4698_s22 + $0x90] sm:$0xf] }
  0x19   : >> { %133 = vst [vmem:[%s4694_s20 + $0x60] sm:$0xf] %v132_v4  ;;  %v144_v10 = vld [vmem:[%s4698_s22 + $0xa0] sm:$0xf]  ;;  %v146_v11 = vld [vmem:[%s4698_s22 + $0xb0] sm:$0xf] }
  0x1a   : >> { %135 = vst [vmem:[%s4694_s20 + $0x78] sm:$0xf] %v134_v5  ;;  %v148_v12 = vld [vmem:[%s4698_s22 + $0xc0] sm:$0xf]  ;;  %v150_v13 = vld [vmem:[%s4698_s22 + $0xd0] sm:$0xf] }
  0x1b   : >> { %137 = vst [vmem:[%s4694_s20 + $0x90] sm:$0xf] %v136_v6  ;;  %v152_v14 = vld [vmem:[%s4698_s22 + $0xe0] sm:$0xf]  ;;  %v154_v15 = vld [vmem:[%s4698_s22 + $0xf0] sm:$0xf] }
  0x1c   : >> { %139 = vst [vmem:[%s4694_s20 + $0xa8] sm:$0xf] %v138_v7  ;;  %v156_v16 = vld [vmem:[%s4698_s22 + $0x100] sm:$0xf]  ;;  %v158_v17 = vld [vmem:[%s4698_s22 + $0x110] sm:$0xf] }
  0x1d   : >> { %141 = vst [vmem:[%s4694_s20 + $0xc0] sm:$0xf] %v140_v8  ;;  %v160_v18 = vld [vmem:[%s4698_s22 + $0x120] sm:$0xf]  ;;  %v162_v19 = vld [vmem:[%s4698_s22 + $0x130] sm:$0xf] }
  0x1e   : >> { %143 = vst [vmem:[%s4694_s20 + $0xd8] sm:$0xf] %v142_v9  ;;  %v164_v20 = vld [vmem:[%s4698_s22 + $0x140] sm:$0xf]  ;;  %v166_v21 = vld [vmem:[%s4698_s22 + $0x150] sm:$0xf] }
  0x1f   : >> { %145 = vst [vmem:[%s4694_s20 + $0xf0] sm:$0xf] %v144_v10  ;;  %v168_v22 = vld [vmem:[%s4698_s22 + $0x160] sm:$0xf]  ;;  %v170_v23 = vld [vmem:[%s4698_s22 + $0x170] sm:$0xf] }
  0x20   : >> { %147 = vst [vmem:[%s4694_s20 + $0x108] sm:$0xf] %v146_v11  ;;  %v172_v24 = vld [vmem:[%s4698_s22 + $0x180] sm:$0xf]  ;;  %v174_v25 = vld [vmem:[%s4698_s22 + $0x190] sm:$0xf] }
  0x21   : >> { %149 = vst [vmem:[%s4694_s20 + $0x120] sm:$0xf] %v148_v12  ;;  %v176_v26 = vld [vmem:[%s4698_s22 + $0x1a0] sm:$0xf]  ;;  %s5600_s25 = smov (%p201_p4, %s199_s25), 0 }
  0x22   : >> { %151 = vst [vmem:[%s4694_s20 + $0x138] sm:$0xf] %v150_v13  ;;  %v178_v27 = vld [vmem:[%s4698_s22 + $0x1b0] sm:$0xf]  ;;  %v180_v28 = vld [vmem:[%s4698_s22 + $0x1c0] sm:$0xf]  ;;  %s5587_s23 = smov %s5600_s25 }
  0x23   : >> { %153 = vst [vmem:[%s4694_s20 + $0x150] sm:$0xf] %v152_v14  ;;  %s4187_s26 = sshll.u32 %s5600_s25, 2  ;;  %s4189_s27 = sshll.u32 %s5600_s25, 3  ;;  %v182_v29 = vld [vmem:[%s4698_s22 + $0x1d0] sm:$0xf] }
  0x24   : >> { %155 = vst [vmem:[%s4694_s20 + $0x168] sm:$0xf] %v154_v15  ;;  %v184_v30 = vld [vmem:[%s4698_s22 + $0x1e0] sm:$0xf]  ;;  %s209_s28 = scalar_lea.vmem %s4762_s18, %s4187_s26   ;;  %s4191_s29 = scalar_lea.vmem %s72_s19, %s4189_s27 [#allocation1]  ;;  %v186_v31 = vld [vmem:[%s4698_s22 + $0x1f0] sm:$0xf] }
  0x25   : >> { %157 = vst [vmem:[%s4694_s20 + $0x180] sm:$0xf] %v156_v16  ;;  %s4192_s30 = scalar_lea.vmem %s4191_s29, 4 [#allocation1]   ;;  %v188_v32 = vld [vmem:[%s4698_s22 + $0x200] sm:$0xf] }
  0x26   : >> { %159 = vst [vmem:[%s4694_s20 + $0x198] sm:$0xf] %v158_v17  ;;  %v190_v33 = vld [vmem:[%s4698_s22 + $0x210] sm:$0xf]  ;;  %v192_v34 = vld [vmem:[%s4698_s22 + $0x220] sm:$0xf] }
  0x27   : >> { %161 = vst [vmem:[%s4694_s20 + $0x1b0] sm:$0xf] %v160_v18  ;;  %v194_v35 = vld [vmem:[%s4698_s22 + $0x230] sm:$0xf]  ;;  %s5586_s22 = smov %s209_s28 }
  0x28   : >> { %163 = vst [vmem:[%s4694_s20 + $0x1c8] sm:$0xf] %v162_v19 }
  0x29   : >> { %165 = vst [vmem:[%s4694_s20 + $0x1e0] sm:$0xf] %v164_v20 }
  0x2a   : >> { %167 = vst [vmem:[%s4694_s20 + $0x1f8] sm:$0xf] %v166_v21 }
  0x2b   : >> { %169 = vst [vmem:[%s4694_s20 + $0x210] sm:$0xf] %v168_v22 }
  0x2c   : >> { %171 = vst [vmem:[%s4694_s20 + $0x228] sm:$0xf] %v170_v23 }
  0x2d   : >> { %173 = vst [vmem:[%s4694_s20 + $0x240] sm:$0xf] %v172_v24 }
  0x2e   : >> { %175 = vst [vmem:[%s4694_s20 + $0x258] sm:$0xf] %v174_v25 }
  0x2f   : >> { %177 = vst [vmem:[%s4694_s20 + $0x270] sm:$0xf] %v176_v26 }
  0x30   : >> { %179 = vst [vmem:[%s4694_s20 + $0x288] sm:$0xf] %v178_v27 }
  0x31   : >> { %181 = vst [vmem:[%s4694_s20 + $0x2a0] sm:$0xf] %v180_v28 }
  0x32   : >> { %183 = vst [vmem:[%s4694_s20 + $0x2b8] sm:$0xf] %v182_v29 }
  0x33   : >> { %185 = vst [vmem:[%s4694_s20 + $0x2d0] sm:$0xf] %v184_v30 }
  0x34   : >> { %187 = vst [vmem:[%s4694_s20 + $0x2e8] sm:$0xf] %v186_v31  ;;  %119 = sbr.rel (!%p116_p5) target bundleno = 20 (0x14), region = 1333 }
  0x35   : >> { %189 = vst [vmem:[%s4694_s20 + $0x300] sm:$0xf] %v188_v32 }
  0x36   : >> { %191 = vst [vmem:[%s4694_s20 + $0x318] sm:$0xf] %v190_v33 }
  0x37   : >> { %193 = vst [vmem:[%s4694_s20 + $0x330] sm:$0xf] %v192_v34 }
  0x38   : >> { %195 = vst [vmem:[%s4694_s20 + $0x348] sm:$0xf] %v194_v35  ;;  %s5585_s20 = smov %s4192_s30 }
  0x39 PF: > { %p4193_p6 = scmp.ge.s32.totalorder %s4690_s8, 1  ;;  %p375_p7 = scmp.lt.s32.totalorder %s4690_s8, 3 }
  0x3b   : > { %p376_p8 = pnand %p4193_p6, %p375_p7 }
  0x3c   : > { %s4887_s2 = sand.u32 (!%p376_p8), 1, %s4180_s9   ;;  %s3445_s5 = smul.u32 (!%p376_p8), 3, %s4682_s6 }
  0x3d   : > { %379 = sbr.rel (%p376_p8) target bundleno = 650 (0x28a), region = 64 }
  0x3e   : > { %s4533_s3 = smul.u32 (!%p376_p8), 864, %s4887_s2  ;;  %s5302_s9 = ssub.s32 (!%p376_p8), 4, %s3445_s5 }
  0x3f   : > { %p3447_p9 = scmp.lt.s32.totalorder (!%p376_p8), %s5302_s9, 3  ;;  %s4528_s6 = smul.u32 (!%p376_p8), 12, %s4682_s6 }
  0x40   : > { %s4890_s4 = scalar_lea.vmem (!%p376_p8), [#allocation1], %s4533_s3  ;;  %s4534_s16 = smul.u32 (!%p376_p8), 432, %s4887_s2 }
  0x41   : > { %s5319_s15 = scalar_lea.vmem (!%p376_p8), %s5583_s1, %s4528_s6  }
  0x42   : > { %v4194_v36 = vld [vmem:[%s4890_s4 + $0x35c] sm:$0xf]  ;;  %v4195_v37 = vld [vmem:[%s4890_s4 + $0x358] sm:$0xf]  ;;  %v4196_v38 = vld [vmem:[%s4890_s4 + $0x354] sm:$0xf] }
  0x43   : > { %398 = vst [vmem:[#allocation0 + $0x6b8] sm:$0xf] %v4194_v36  ;;  %v4197_v39 = vld [vmem:[%s4890_s4 + $0x350] sm:$0xf]  ;;  %v4198_v40 = vld [vmem:[%s4890_s4 + $0x34c] sm:$0xf] }
  0x44   : > { %402 = vst [vmem:[#allocation0 + $0x6b0] sm:$0xf] %v4195_v37  ;;  %v4199_v41 = vld [vmem:[%s4890_s4 + $0x348] sm:$0xf]  ;;  %v4200_v42 = vld [vmem:[%s4890_s4 + $0x344] sm:$0xf] }
  0x45   : > { %406 = vst [vmem:[#allocation0 + $0x6a8] sm:$0xf] %v4196_v38  ;;  %v4201_v43 = vld [vmem:[%s4890_s4 + $0x340] sm:$0xf]  ;;  %v4202_v44 = vld [vmem:[%s4890_s4 + $0x33c] sm:$0xf] }
  0x46   : > { %410 = vst [vmem:[#allocation0 + $0x6a0] sm:$0xf] %v4197_v39  ;;  %v4203_v45 = vld [vmem:[%s4890_s4 + $0x338] sm:$0xf]  ;;  %v4204_v46 = vld [vmem:[%s4890_s4 + $0x334] sm:$0xf] }
  0x47   : > { %414 = vst [vmem:[#allocation0 + $0x698] sm:$0xf] %v4198_v40  ;;  %v4205_v47 = vld [vmem:[%s4890_s4 + $0x330] sm:$0xf]  ;;  %v4206_v48 = vld [vmem:[%s4890_s4 + $0x32c] sm:$0xf] }
  0x48   : > { %418 = vst [vmem:[#allocation0 + $0x690] sm:$0xf] %v4199_v41  ;;  %v4207_v49 = vld [vmem:[%s4890_s4 + $0x328] sm:$0xf]  ;;  %v4208_v50 = vld [vmem:[%s4890_s4 + $0x324] sm:$0xf] }
  0x49   : > { %422 = vst [vmem:[#allocation0 + $0x688] sm:$0xf] %v4200_v42  ;;  %v4209_v51 = vld [vmem:[%s4890_s4 + $0x320] sm:$0xf]  ;;  %v4210_v52 = vld [vmem:[%s4890_s4 + $0x31c] sm:$0xf] }
  0x4a   : > { %426 = vst [vmem:[#allocation0 + $0x680] sm:$0xf] %v4201_v43  ;;  %v4211_v53 = vld [vmem:[%s4890_s4 + $0x318] sm:$0xf]  ;;  %v4212_v54 = vld [vmem:[%s4890_s4 + $0x314] sm:$0xf] }
  0x4b   : > { %430 = vst [vmem:[#allocation0 + $0x678] sm:$0xf] %v4202_v44  ;;  %v4213_v55 = vld [vmem:[%s4890_s4 + $0x310] sm:$0xf]  ;;  %v4214_v56 = vld [vmem:[%s4890_s4 + $0x30c] sm:$0xf] }
  0x4c   : > { %434 = vst [vmem:[#allocation0 + $0x670] sm:$0xf] %v4203_v45  ;;  %v4215_v57 = vld [vmem:[%s4890_s4 + $0x308] sm:$0xf]  ;;  %v4216_v58 = vld [vmem:[%s4890_s4 + $0x304] sm:$0xf] }
  0x4d   : > { %438 = vst [vmem:[#allocation0 + $0x668] sm:$0xf] %v4204_v46  ;;  %v4217_v59 = vld [vmem:[%s4890_s4 + $0x300] sm:$0xf]  ;;  %v4218_v60 = vld [vmem:[%s4890_s4 + $0x2fc] sm:$0xf] }
  0x4e   : > { %442 = vst [vmem:[#allocation0 + $0x660] sm:$0xf] %v4205_v47  ;;  %v4219_v61 = vld [vmem:[%s4890_s4 + $0x2f8] sm:$0xf]  ;;  %v4220_v62 = vld [vmem:[%s4890_s4 + $0x2f4] sm:$0xf] }
  0x4f   : > { %446 = vst [vmem:[#allocation0 + $0x658] sm:$0xf] %v4206_v48  ;;  %v4221_v63 = vld [vmem:[%s4890_s4 + $0x2f0] sm:$0xf]  ;;  %v4222_v0 = vld [vmem:[%s4890_s4 + $0x2ec] sm:$0xf] }
  0x50   : > { %450 = vst [vmem:[#allocation0 + $0x650] sm:$0xf] %v4207_v49  ;;  %v4223_v1 = vld [vmem:[%s4890_s4 + $0x2e8] sm:$0xf]  ;;  %v4224_v2 = vld [vmem:[%s4890_s4 + $0x2e4] sm:$0xf] }
  0x51   : > { %454 = vst [vmem:[#allocation0 + $0x648] sm:$0xf] %v4208_v50  ;;  %v4225_v3 = vld [vmem:[%s4890_s4 + $0x2e0] sm:$0xf]  ;;  %v4226_v4 = vld [vmem:[%s4890_s4 + $0x2dc] sm:$0xf] }
  0x52   : > { %458 = vst [vmem:[#allocation0 + $0x640] sm:$0xf] %v4209_v51  ;;  %v4227_v5 = vld [vmem:[%s4890_s4 + $0x2d8] sm:$0xf]  ;;  %v4228_v6 = vld [vmem:[%s4890_s4 + $0x2d4] sm:$0xf] }
  0x53   : > { %462 = vst [vmem:[#allocation0 + $0x638] sm:$0xf] %v4210_v52  ;;  %v4229_v7 = vld [vmem:[%s4890_s4 + $0x2d0] sm:$0xf]  ;;  %v4230_v8 = vld [vmem:[%s4890_s4 + $0x2cc] sm:$0xf] }
  0x54   : > { %466 = vst [vmem:[#allocation0 + $0x630] sm:$0xf] %v4211_v53  ;;  %v4231_v9 = vld [vmem:[%s4890_s4 + $0x2c8] sm:$0xf]  ;;  %v4232_v10 = vld [vmem:[%s4890_s4 + $0x2c4] sm:$0xf] }
  0x55   : > { %470 = vst [vmem:[#allocation0 + $0x628] sm:$0xf] %v4212_v54  ;;  %v4233_v11 = vld [vmem:[%s4890_s4 + $0x2c0] sm:$0xf]  ;;  %v4234_v12 = vld [vmem:[%s4890_s4 + $0x2bc] sm:$0xf] }
  0x56   : > { %474 = vst [vmem:[#allocation0 + $0x620] sm:$0xf] %v4213_v55  ;;  %v4235_v13 = vld [vmem:[%s4890_s4 + $0x2b8] sm:$0xf]  ;;  %v4236_v14 = vld [vmem:[%s4890_s4 + $0x2b4] sm:$0xf] }
  0x57   : > { %478 = vst [vmem:[#allocation0 + $0x618] sm:$0xf] %v4214_v56  ;;  %v4237_v15 = vld [vmem:[%s4890_s4 + $0x2b0] sm:$0xf]  ;;  %v4238_v16 = vld [vmem:[%s4890_s4 + $0x2ac] sm:$0xf] }
  0x58   : > { %482 = vst [vmem:[#allocation0 + $0x610] sm:$0xf] %v4215_v57  ;;  %v4239_v17 = vld [vmem:[%s4890_s4 + $0x2a8] sm:$0xf]  ;;  %v4240_v18 = vld [vmem:[%s4890_s4 + $0x2a4] sm:$0xf] }
  0x59   : > { %486 = vst [vmem:[#allocation0 + $0x608] sm:$0xf] %v4216_v58  ;;  %v4241_v19 = vld [vmem:[%s4890_s4 + $0x2a0] sm:$0xf]  ;;  %v4242_v20 = vld [vmem:[%s4890_s4 + $0x29c] sm:$0xf] }
  0x5a   : > { %490 = vst [vmem:[#allocation0 + $0x600] sm:$0xf] %v4217_v59  ;;  %v4243_v21 = vld [vmem:[%s4890_s4 + $0x298] sm:$0xf]  ;;  %v4244_v22 = vld [vmem:[%s4890_s4 + $0x294] sm:$0xf] }
  0x5b   : > { %494 = vst [vmem:[#allocation0 + $0x5f8] sm:$0xf] %v4218_v60  ;;  %v4245_v23 = vld [vmem:[%s4890_s4 + $0x290] sm:$0xf]  ;;  %v4246_v24 = vld [vmem:[%s4890_s4 + $0x28c] sm:$0xf] }
  0x5c   : > { %498 = vst [vmem:[#allocation0 + $0x5f0] sm:$0xf] %v4219_v61  ;;  %v4247_v25 = vld [vmem:[%s4890_s4 + $0x288] sm:$0xf]  ;;  %v4248_v26 = vld [vmem:[%s4890_s4 + $0x284] sm:$0xf] }
  0x5d   : > { %502 = vst [vmem:[#allocation0 + $0x5e8] sm:$0xf] %v4220_v62  ;;  %v4249_v27 = vld [vmem:[%s4890_s4 + $0x280] sm:$0xf]  ;;  %v4250_v28 = vld [vmem:[%s4890_s4 + $0x27c] sm:$0xf] }
  0x5e   : > { %506 = vst [vmem:[#allocation0 + $0x5e0] sm:$0xf] %v4221_v63  ;;  %v4251_v29 = vld [vmem:[%s4890_s4 + $0x278] sm:$0xf]  ;;  %v4252_v30 = vld [vmem:[%s4890_s4 + $0x274] sm:$0xf] }
  0x5f   : > { %510 = vst [vmem:[#allocation0 + $0x5d8] sm:$0xf] %v4222_v0  ;;  %v4253_v31 = vld [vmem:[%s4890_s4 + $0x270] sm:$0xf]  ;;  %v4254_v32 = vld [vmem:[%s4890_s4 + $0x26c] sm:$0xf] }
  0x60   : > { %514 = vst [vmem:[#allocation0 + $0x5d0] sm:$0xf] %v4223_v1  ;;  %v4255_v33 = vld [vmem:[%s4890_s4 + $0x268] sm:$0xf]  ;;  %v4256_v34 = vld [vmem:[%s4890_s4 + $0x264] sm:$0xf] }
  0x61   : > { %518 = vst [vmem:[#allocation0 + $0x5c8] sm:$0xf] %v4224_v2  ;;  %v4257_v35 = vld [vmem:[%s4890_s4 + $0x260] sm:$0xf]  ;;  %v4258_v36 = vld [vmem:[%s4890_s4 + $0x25c] sm:$0xf] }
  0x62   : > { %522 = vst [vmem:[#allocation0 + $0x5c0] sm:$0xf] %v4225_v3  ;;  %v4259_v37 = vld [vmem:[%s4890_s4 + $0x258] sm:$0xf]  ;;  %v4260_v38 = vld [vmem:[%s4890_s4 + $0x254] sm:$0xf] }
  0x63   : > { %526 = vst [vmem:[#allocation0 + $0x5b8] sm:$0xf] %v4226_v4  ;;  %v4261_v39 = vld [vmem:[%s4890_s4 + $0x250] sm:$0xf]  ;;  %v4262_v40 = vld [vmem:[%s4890_s4 + $0x24c] sm:$0xf] }
  0x64   : > { %530 = vst [vmem:[#allocation0 + $0x5b0] sm:$0xf] %v4227_v5  ;;  %v4263_v41 = vld [vmem:[%s4890_s4 + $0x248] sm:$0xf]  ;;  %v4264_v42 = vld [vmem:[%s4890_s4 + $0x244] sm:$0xf] }
  0x65   : > { %534 = vst [vmem:[#allocation0 + $0x5a8] sm:$0xf] %v4228_v6  ;;  %v4265_v43 = vld [vmem:[%s4890_s4 + $0x240] sm:$0xf]  ;;  %v4266_v44 = vld [vmem:[%s4890_s4 + $0x23c] sm:$0xf] }
  0x66   : > { %538 = vst [vmem:[#allocation0 + $0x5a0] sm:$0xf] %v4229_v7  ;;  %v4267_v45 = vld [vmem:[%s4890_s4 + $0x238] sm:$0xf]  ;;  %v4268_v46 = vld [vmem:[%s4890_s4 + $0x234] sm:$0xf] }
  0x67   : > { %542 = vst [vmem:[#allocation0 + $0x598] sm:$0xf] %v4230_v8  ;;  %v4269_v47 = vld [vmem:[%s4890_s4 + $0x230] sm:$0xf]  ;;  %v4270_v48 = vld [vmem:[%s4890_s4 + $0x22c] sm:$0xf] }
  0x68   : > { %546 = vst [vmem:[#allocation0 + $0x590] sm:$0xf] %v4231_v9  ;;  %v4271_v49 = vld [vmem:[%s4890_s4 + $0x228] sm:$0xf]  ;;  %v4272_v50 = vld [vmem:[%s4890_s4 + $0x224] sm:$0xf] }
  0x69   : > { %550 = vst [vmem:[#allocation0 + $0x588] sm:$0xf] %v4232_v10  ;;  %v4273_v51 = vld [vmem:[%s4890_s4 + $0x220] sm:$0xf]  ;;  %v4274_v52 = vld [vmem:[%s4890_s4 + $0x21c] sm:$0xf] }
  0x6a   : > { %554 = vst [vmem:[#allocation0 + $0x580] sm:$0xf] %v4233_v11  ;;  %v4275_v53 = vld [vmem:[%s4890_s4 + $0x218] sm:$0xf]  ;;  %v4276_v54 = vld [vmem:[%s4890_s4 + $0x214] sm:$0xf] }
  0x6b   : > { %558 = vst [vmem:[#allocation0 + $0x578] sm:$0xf] %v4234_v12  ;;  %v4277_v55 = vld [vmem:[%s4890_s4 + $0x210] sm:$0xf]  ;;  %v4278_v56 = vld [vmem:[%s4890_s4 + $0x20c] sm:$0xf] }
  0x6c   : > { %562 = vst [vmem:[#allocation0 + $0x570] sm:$0xf] %v4235_v13  ;;  %v4279_v57 = vld [vmem:[%s4890_s4 + $0x208] sm:$0xf]  ;;  %v4280_v58 = vld [vmem:[%s4890_s4 + $0x204] sm:$0xf] }
  0x6d   : > { %566 = vst [vmem:[#allocation0 + $0x568] sm:$0xf] %v4236_v14  ;;  %v4281_v59 = vld [vmem:[%s4890_s4 + $0x200] sm:$0xf]  ;;  %v4282_v60 = vld [vmem:[%s4890_s4 + $0x1fc] sm:$0xf] }
  0x6e   : > { %570 = vst [vmem:[#allocation0 + $0x560] sm:$0xf] %v4237_v15  ;;  %v4283_v61 = vld [vmem:[%s4890_s4 + $0x1f8] sm:$0xf]  ;;  %v4284_v62 = vld [vmem:[%s4890_s4 + $0x1f4] sm:$0xf] }
  0x6f   : > { %574 = vst [vmem:[#allocation0 + $0x558] sm:$0xf] %v4238_v16  ;;  %v4285_v63 = vld [vmem:[%s4890_s4 + $0x1f0] sm:$0xf]  ;;  %v4286_v0 = vld [vmem:[%s4890_s4 + $0x1ec] sm:$0xf] }
  0x70   : > { %578 = vst [vmem:[#allocation0 + $0x550] sm:$0xf] %v4239_v17  ;;  %v4287_v1 = vld [vmem:[%s4890_s4 + $0x1e8] sm:$0xf]  ;;  %v4288_v2 = vld [vmem:[%s4890_s4 + $0x1e4] sm:$0xf] }
  0x71   : > { %582 = vst [vmem:[#allocation0 + $0x548] sm:$0xf] %v4240_v18  ;;  %v4289_v3 = vld [vmem:[%s4890_s4 + $0x1e0] sm:$0xf]  ;;  %v4290_v4 = vld [vmem:[%s4890_s4 + $0x1dc] sm:$0xf] }
  0x72   : > { %586 = vst [vmem:[#allocation0 + $0x540] sm:$0xf] %v4241_v19  ;;  %v4291_v5 = vld [vmem:[%s4890_s4 + $0x1d8] sm:$0xf]  ;;  %v4292_v6 = vld [vmem:[%s4890_s4 + $0x1d4] sm:$0xf] }
  0x73   : > { %590 = vst [vmem:[#allocation0 + $0x538] sm:$0xf] %v4242_v20  ;;  %v4293_v7 = vld [vmem:[%s4890_s4 + $0x1d0] sm:$0xf]  ;;  %v4294_v8 = vld [vmem:[%s4890_s4 + $0x1cc] sm:$0xf] }
  0x74   : > { %594 = vst [vmem:[#allocation0 + $0x530] sm:$0xf] %v4243_v21  ;;  %v4295_v9 = vld [vmem:[%s4890_s4 + $0x1c8] sm:$0xf]  ;;  %v4296_v10 = vld [vmem:[%s4890_s4 + $0x1c4] sm:$0xf] }
  0x75   : > { %598 = vst [vmem:[#allocation0 + $0x528] sm:$0xf] %v4244_v22  ;;  %v4297_v11 = vld [vmem:[%s4890_s4 + $0x1c0] sm:$0xf]  ;;  %v4298_v12 = vld [vmem:[%s4890_s4 + $0x1bc] sm:$0xf] }
  0x76   : > { %602 = vst [vmem:[#allocation0 + $0x520] sm:$0xf] %v4245_v23  ;;  %v4299_v13 = vld [vmem:[%s4890_s4 + $0x1b8] sm:$0xf]  ;;  %v4300_v14 = vld [vmem:[%s4890_s4 + $0x1b4] sm:$0xf] }
  0x77   : > { %606 = vst [vmem:[#allocation0 + $0x518] sm:$0xf] %v4246_v24  ;;  %v4301_v15 = vld [vmem:[%s4890_s4 + $0x1b0] sm:$0xf]  ;;  %v4302_v16 = vld [vmem:[%s4890_s4 + $0x1ac] sm:$0xf] }
  0x78   : > { %610 = vst [vmem:[#allocation0 + $0x510] sm:$0xf] %v4247_v25  ;;  %v4303_v17 = vld [vmem:[%s4890_s4 + $0x1a8] sm:$0xf]  ;;  %v4304_v18 = vld [vmem:[%s4890_s4 + $0x1a4] sm:$0xf] }
  0x79   : > { %614 = vst [vmem:[#allocation0 + $0x508] sm:$0xf] %v4248_v26  ;;  %v4305_v19 = vld [vmem:[%s4890_s4 + $0x1a0] sm:$0xf]  ;;  %v4306_v20 = vld [vmem:[%s4890_s4 + $0x19c] sm:$0xf] }
  0x7a   : > { %618 = vst [vmem:[#allocation0 + $0x500] sm:$0xf] %v4249_v27  ;;  %v4307_v21 = vld [vmem:[%s4890_s4 + $0x198] sm:$0xf]  ;;  %v4308_v22 = vld [vmem:[%s4890_s4 + $0x194] sm:$0xf] }
  0x7b   : > { %622 = vst [vmem:[#allocation0 + $0x4f8] sm:$0xf] %v4250_v28  ;;  %v4309_v23 = vld [vmem:[%s4890_s4 + $0x190] sm:$0xf]  ;;  %v4310_v24 = vld [vmem:[%s4890_s4 + $0x18c] sm:$0xf] }
  0x7c   : > { %626 = vst [vmem:[#allocation0 + $0x4f0] sm:$0xf] %v4251_v29  ;;  %v4311_v25 = vld [vmem:[%s4890_s4 + $0x188] sm:$0xf]  ;;  %v4312_v26 = vld [vmem:[%s4890_s4 + $0x184] sm:$0xf] }
  0x7d   : > { %630 = vst [vmem:[#allocation0 + $0x4e8] sm:$0xf] %v4252_v30  ;;  %v4313_v27 = vld [vmem:[%s4890_s4 + $0x180] sm:$0xf]  ;;  %v4314_v28 = vld [vmem:[%s4890_s4 + $0x17c] sm:$0xf] }
  0x7e   : > { %634 = vst [vmem:[#allocation0 + $0x4e0] sm:$0xf] %v4253_v31  ;;  %v4315_v29 = vld [vmem:[%s4890_s4 + $0x178] sm:$0xf]  ;;  %v4316_v30 = vld [vmem:[%s4890_s4 + $0x174] sm:$0xf] }
  0x7f   : > { %638 = vst [vmem:[#allocation0 + $0x4d8] sm:$0xf] %v4254_v32  ;;  %v4317_v31 = vld [vmem:[%s4890_s4 + $0x170] sm:$0xf]  ;;  %v4318_v32 = vld [vmem:[%s4890_s4 + $0x16c] sm:$0xf] }
  0x80   : > { %642 = vst [vmem:[#allocation0 + $0x4d0] sm:$0xf] %v4255_v33  ;;  %v4319_v33 = vld [vmem:[%s4890_s4 + $0x168] sm:$0xf]  ;;  %s5310_s11 = scalar_select %p3447_p9, %s5302_s9, 3 }
  0x81   : > { %646 = vst [vmem:[#allocation0 + $0x4c8] sm:$0xf] %v4256_v34  ;;  %v4320_v34 = vld [vmem:[%s4890_s4 + $0x164] sm:$0xf]  ;;  %s5342_s17 = scalar_lea.vmem [#allocation3], %s4534_s16  }
  0x82   : > { %650 = vst [vmem:[#allocation0 + $0x4c0] sm:$0xf] %v4257_v35  ;;  %v4321_v35 = vld [vmem:[%s4890_s4 + $0x160] sm:$0xf]  ;;  %s3449_s12 = smul.u32 144, %s5310_s11 }
  0x83   : > { %654 = vst [vmem:[#allocation0 + $0x4b8] sm:$0xf] %v4258_v36  ;;  %v4322_v36 = vld [vmem:[%s4890_s4 + $0x15c] sm:$0xf] }
  0x84   : > { %658 = vst [vmem:[#allocation0 + $0x4b0] sm:$0xf] %v4259_v37  ;;  %v4323_v37 = vld [vmem:[%s4890_s4 + $0x158] sm:$0xf]  ;;  %p4518_p10 = scmp.eq.s32.totalorder %s3449_s12, 0 }
  0x85   : > { %662 = vst [vmem:[#allocation0 + $0x4a8] sm:$0xf] %v4260_v38  ;;  %v4324_v38 = vld [vmem:[%s4890_s4 + $0x154] sm:$0xf]  ;;  %p4529_p11 = scmp.le.s32.totalorder (!%p4518_p10), %s5302_s9, 0 }
  0x86   : > { %666 = vst [vmem:[#allocation0 + $0x4a0] sm:$0xf] %v4261_v39  ;;  %v4325_v39 = vld [vmem:[%s4890_s4 + $0x150] sm:$0xf] }
  0x87   : > { %670 = vst [vmem:[#allocation0 + $0x498] sm:$0xf] %v4262_v40  ;;  %v4326_v40 = vld [vmem:[%s4890_s4 + $0x14c] sm:$0xf] }
  0x88   : > { %674 = vst [vmem:[#allocation0 + $0x490] sm:$0xf] %v4263_v41  ;;  %v4327_v41 = vld [vmem:[%s4890_s4 + $0x148] sm:$0xf] }
  0x89   : > { %678 = vst [vmem:[#allocation0 + $0x488] sm:$0xf] %v4264_v42  ;;  %v4328_v42 = vld [vmem:[%s4890_s4 + $0x144] sm:$0xf] }
  0x8a   : > { %682 = vst [vmem:[#allocation0 + $0x480] sm:$0xf] %v4265_v43  ;;  %v4329_v43 = vld [vmem:[%s4890_s4 + $0x140] sm:$0xf] }
  0x8b   : > { %686 = vst [vmem:[#allocation0 + $0x478] sm:$0xf] %v4266_v44  ;;  %v4330_v44 = vld [vmem:[%s4890_s4 + $0x13c] sm:$0xf] }
  0x8c   : > { %690 = vst [vmem:[#allocation0 + $0x470] sm:$0xf] %v4267_v45  ;;  %v4331_v45 = vld [vmem:[%s4890_s4 + $0x138] sm:$0xf] }
  0x8d   : > { %694 = vst [vmem:[#allocation0 + $0x468] sm:$0xf] %v4268_v46  ;;  %v4332_v46 = vld [vmem:[%s4890_s4 + $0x134] sm:$0xf] }
  0x8e   : > { %698 = vst [vmem:[#allocation0 + $0x460] sm:$0xf] %v4269_v47  ;;  %v4333_v47 = vld [vmem:[%s4890_s4 + $0x130] sm:$0xf] }
  0x8f   : > { %702 = vst [vmem:[#allocation0 + $0x458] sm:$0xf] %v4270_v48  ;;  %v4334_v48 = vld [vmem:[%s4890_s4 + $0x12c] sm:$0xf] }
  0x90   : > { %706 = vst [vmem:[#allocation0 + $0x450] sm:$0xf] %v4271_v49  ;;  %v4335_v49 = vld [vmem:[%s4890_s4 + $0x128] sm:$0xf] }
  0x91   : > { %710 = vst [vmem:[#allocation0 + $0x448] sm:$0xf] %v4272_v50  ;;  %v4336_v50 = vld [vmem:[%s4890_s4 + $0x124] sm:$0xf] }
  0x92   : > { %714 = vst [vmem:[#allocation0 + $0x440] sm:$0xf] %v4273_v51  ;;  %v4337_v51 = vld [vmem:[%s4890_s4 + $0x120] sm:$0xf] }
  0x93   : > { %718 = vst [vmem:[#allocation0 + $0x438] sm:$0xf] %v4274_v52  ;;  %v4338_v52 = vld [vmem:[%s4890_s4 + $0x11c] sm:$0xf] }
  0x94   : > { %722 = vst [vmem:[#allocation0 + $0x430] sm:$0xf] %v4275_v53  ;;  %v4339_v53 = vld [vmem:[%s4890_s4 + $0x118] sm:$0xf] }
  0x95   : > { %726 = vst [vmem:[#allocation0 + $0x428] sm:$0xf] %v4276_v54  ;;  %v4340_v54 = vld [vmem:[%s4890_s4 + $0x114] sm:$0xf] }
  0x96   : > { %730 = vst [vmem:[#allocation0 + $0x420] sm:$0xf] %v4277_v55  ;;  %v4341_v55 = vld [vmem:[%s4890_s4 + $0x110] sm:$0xf] }
  0x97   : > { %734 = vst [vmem:[#allocation0 + $0x418] sm:$0xf] %v4278_v56  ;;  %v4342_v56 = vld [vmem:[%s4890_s4 + $0x10c] sm:$0xf] }
  0x98   : > { %738 = vst [vmem:[#allocation0 + $0x410] sm:$0xf] %v4279_v57  ;;  %v4343_v57 = vld [vmem:[%s4890_s4 + $0x108] sm:$0xf] }
  0x99   : > { %742 = vst [vmem:[#allocation0 + $0x408] sm:$0xf] %v4280_v58  ;;  %v4344_v58 = vld [vmem:[%s4890_s4 + $0x104] sm:$0xf] }
  0x9a   : > { %746 = vst [vmem:[#allocation0 + $0x400] sm:$0xf] %v4281_v59  ;;  %v4345_v59 = vld [vmem:[%s4890_s4 + $0x100] sm:$0xf] }
  0x9b   : > { %750 = vst [vmem:[#allocation0 + $0x3f8] sm:$0xf] %v4282_v60  ;;  %v4346_v60 = vld [vmem:[%s4890_s4 + $0xfc] sm:$0xf] }
  0x9c   : > { %754 = vst [vmem:[#allocation0 + $0x3f0] sm:$0xf] %v4283_v61  ;;  %v4347_v61 = vld [vmem:[%s4890_s4 + $0xf8] sm:$0xf] }
  0x9d   : > { %758 = vst [vmem:[#allocation0 + $0x3e8] sm:$0xf] %v4284_v62  ;;  %v4348_v62 = vld [vmem:[%s4890_s4 + $0xf4] sm:$0xf] }
  0x9e   : > { %762 = vst [vmem:[#allocation0 + $0x3e0] sm:$0xf] %v4285_v63  ;;  %v4349_v63 = vld [vmem:[%s4890_s4 + $0xf0] sm:$0xf] }
  0x9f   : > { %766 = vst [vmem:[#allocation0 + $0x3d8] sm:$0xf] %v4286_v0  ;;  %v4350_v0 = vld [vmem:[%s4890_s4 + $0xec] sm:$0xf] }
  0xa0   : > { %770 = vst [vmem:[#allocation0 + $0x3d0] sm:$0xf] %v4287_v1  ;;  %v4351_v1 = vld [vmem:[%s4890_s4 + $0xe8] sm:$0xf] }
  0xa1   : > { %774 = vst [vmem:[#allocation0 + $0x3c8] sm:$0xf] %v4288_v2  ;;  %v4352_v2 = vld [vmem:[%s4890_s4 + $0xe4] sm:$0xf] }
  0xa2   : > { %778 = vst [vmem:[#allocation0 + $0x3c0] sm:$0xf] %v4289_v3  ;;  %v4353_v3 = vld [vmem:[%s4890_s4 + $0xe0] sm:$0xf] }
  0xa3   : > { %782 = vst [vmem:[#allocation0 + $0x3b8] sm:$0xf] %v4290_v4  ;;  %v4354_v4 = vld [vmem:[%s4890_s4 + $0xdc] sm:$0xf] }
  0xa4   : > { %786 = vst [vmem:[#allocation0 + $0x3b0] sm:$0xf] %v4291_v5  ;;  %v4355_v5 = vld [vmem:[%s4890_s4 + $0xd8] sm:$0xf] }
  0xa5   : > { %790 = vst [vmem:[#allocation0 + $0x3a8] sm:$0xf] %v4292_v6  ;;  %v4356_v6 = vld [vmem:[%s4890_s4 + $0xd4] sm:$0xf] }
  0xa6   : > { %794 = vst [vmem:[#allocation0 + $0x3a0] sm:$0xf] %v4293_v7  ;;  %v4357_v7 = vld [vmem:[%s4890_s4 + $0xd0] sm:$0xf] }
  0xa7   : > { %798 = vst [vmem:[#allocation0 + $0x398] sm:$0xf] %v4294_v8  ;;  %v4358_v8 = vld [vmem:[%s4890_s4 + $0xcc] sm:$0xf] }
  0xa8   : > { %802 = vst [vmem:[#allocation0 + $0x390] sm:$0xf] %v4295_v9  ;;  %v4359_v9 = vld [vmem:[%s4890_s4 + $0xc8] sm:$0xf] }
  0xa9   : > { %806 = vst [vmem:[#allocation0 + $0x388] sm:$0xf] %v4296_v10  ;;  %v4360_v10 = vld [vmem:[%s4890_s4 + $0xc4] sm:$0xf] }
  0xaa   : > { %810 = vst [vmem:[#allocation0 + $0x380] sm:$0xf] %v4297_v11  ;;  %v4361_v11 = vld [vmem:[%s4890_s4 + $0xc0] sm:$0xf] }
  0xab   : > { %814 = vst [vmem:[#allocation0 + $0x378] sm:$0xf] %v4298_v12  ;;  %v4362_v12 = vld [vmem:[%s4890_s4 + $0xbc] sm:$0xf] }
  0xac   : > { %818 = vst [vmem:[#allocation0 + $0x370] sm:$0xf] %v4299_v13  ;;  %v4363_v13 = vld [vmem:[%s4890_s4 + $0xb8] sm:$0xf] }
  0xad   : > { %822 = vst [vmem:[#allocation0 + $0x368] sm:$0xf] %v4300_v14  ;;  %v4364_v14 = vld [vmem:[%s4890_s4 + $0xb4] sm:$0xf] }
  0xae   : > { %826 = vst [vmem:[#allocation0 + $0x360] sm:$0xf] %v4301_v15  ;;  %v4365_v15 = vld [vmem:[%s4890_s4 + $0xb0] sm:$0xf] }
  0xaf   : > { %830 = vst [vmem:[#allocation0 + $0x358] sm:$0xf] %v4302_v16  ;;  %v4366_v16 = vld [vmem:[%s4890_s4 + $0xac] sm:$0xf] }
  0xb0   : > { %834 = vst [vmem:[#allocation0 + $0x350] sm:$0xf] %v4303_v17  ;;  %v4367_v17 = vld [vmem:[%s4890_s4 + $0xa8] sm:$0xf] }
  0xb1   : > { %838 = vst [vmem:[#allocation0 + $0x348] sm:$0xf] %v4304_v18  ;;  %v4368_v18 = vld [vmem:[%s4890_s4 + $0xa4] sm:$0xf] }
  0xb2   : > { %842 = vst [vmem:[#allocation0 + $0x340] sm:$0xf] %v4305_v19  ;;  %v4369_v19 = vld [vmem:[%s4890_s4 + $0xa0] sm:$0xf] }
  0xb3   : > { %846 = vst [vmem:[#allocation0 + $0x338] sm:$0xf] %v4306_v20  ;;  %v4370_v20 = vld [vmem:[%s4890_s4 + $0x9c] sm:$0xf] }
  0xb4   : > { %850 = vst [vmem:[#allocation0 + $0x330] sm:$0xf] %v4307_v21  ;;  %v4371_v21 = vld [vmem:[%s4890_s4 + $0x98] sm:$0xf] }
  0xb5   : > { %854 = vst [vmem:[#allocation0 + $0x328] sm:$0xf] %v4308_v22  ;;  %v4372_v22 = vld [vmem:[%s4890_s4 + $0x94] sm:$0xf] }
  0xb6   : > { %858 = vst [vmem:[#allocation0 + $0x320] sm:$0xf] %v4309_v23  ;;  %v4373_v23 = vld [vmem:[%s4890_s4 + $0x90] sm:$0xf] }
  0xb7   : > { %862 = vst [vmem:[#allocation0 + $0x318] sm:$0xf] %v4310_v24  ;;  %v4374_v24 = vld [vmem:[%s4890_s4 + $0x8c] sm:$0xf] }
  0xb8   : > { %866 = vst [vmem:[#allocation0 + $0x310] sm:$0xf] %v4311_v25  ;;  %v4375_v25 = vld [vmem:[%s4890_s4 + $0x88] sm:$0xf] }
  0xb9   : > { %870 = vst [vmem:[#allocation0 + $0x308] sm:$0xf] %v4312_v26  ;;  %v4376_v26 = vld [vmem:[%s4890_s4 + $0x84] sm:$0xf] }
  0xba   : > { %874 = vst [vmem:[#allocation0 + $0x300] sm:$0xf] %v4313_v27  ;;  %v4377_v27 = vld [vmem:[%s4890_s4 + $0x80] sm:$0xf] }
  0xbb   : > { %878 = vst [vmem:[#allocation0 + $0x2f8] sm:$0xf] %v4314_v28  ;;  %v4378_v28 = vld [vmem:[%s4890_s4 + $0x7c] sm:$0xf] }
  0xbc   : > { %882 = vst [vmem:[#allocation0 + $0x2f0] sm:$0xf] %v4315_v29  ;;  %v4379_v29 = vld [vmem:[%s4890_s4 + $0x78] sm:$0xf] }
  0xbd   : > { %886 = vst [vmem:[#allocation0 + $0x2e8] sm:$0xf] %v4316_v30  ;;  %v4380_v30 = vld [vmem:[%s4890_s4 + $0x74] sm:$0xf] }
  0xbe   : > { %890 = vst [vmem:[#allocation0 + $0x2e0] sm:$0xf] %v4317_v31  ;;  %v4381_v31 = vld [vmem:[%s4890_s4 + $0x70] sm:$0xf] }
  0xbf   : > { %894 = vst [vmem:[#allocation0 + $0x2d8] sm:$0xf] %v4318_v32  ;;  %v4382_v32 = vld [vmem:[%s4890_s4 + $0x6c] sm:$0xf] }
  0xc0   : > { %898 = vst [vmem:[#allocation0 + $0x2d0] sm:$0xf] %v4319_v33  ;;  %v4383_v33 = vld [vmem:[%s4890_s4 + $0x68] sm:$0xf] }
  0xc1   : > { %902 = vst [vmem:[#allocation0 + $0x2c8] sm:$0xf] %v4320_v34  ;;  %v4384_v34 = vld [vmem:[%s4890_s4 + $0x64] sm:$0xf] }
  0xc2   : > { %906 = vst [vmem:[#allocation0 + $0x2c0] sm:$0xf] %v4321_v35  ;;  %v4385_v35 = vld [vmem:[%s4890_s4 + $0x60] sm:$0xf] }
  0xc3   : > { %910 = vst [vmem:[#allocation0 + $0x2b8] sm:$0xf] %v4322_v36  ;;  %v4386_v36 = vld [vmem:[%s4890_s4 + $0x5c] sm:$0xf] }
  0xc4   : > { %914 = vst [vmem:[#allocation0 + $0x2b0] sm:$0xf] %v4323_v37  ;;  %v4387_v37 = vld [vmem:[%s4890_s4 + $0x58] sm:$0xf] }
  0xc5   : > { %918 = vst [vmem:[#allocation0 + $0x2a8] sm:$0xf] %v4324_v38  ;;  %v4388_v38 = vld [vmem:[%s4890_s4 + $0x54] sm:$0xf] }
  0xc6   : > { %922 = vst [vmem:[#allocation0 + $0x2a0] sm:$0xf] %v4325_v39  ;;  %v4389_v39 = vld [vmem:[%s4890_s4 + $0x50] sm:$0xf] }
  0xc7   : > { %926 = vst [vmem:[#allocation0 + $0x298] sm:$0xf] %v4326_v40  ;;  %v4390_v40 = vld [vmem:[%s4890_s4 + $0x4c] sm:$0xf] }
  0xc8   : > { %930 = vst [vmem:[#allocation0 + $0x290] sm:$0xf] %v4327_v41  ;;  %v4391_v41 = vld [vmem:[%s4890_s4 + $0x48] sm:$0xf] }
  0xc9   : > { %934 = vst [vmem:[#allocation0 + $0x288] sm:$0xf] %v4328_v42  ;;  %v4392_v42 = vld [vmem:[%s4890_s4 + $0x44] sm:$0xf] }
  0xca   : > { %938 = vst [vmem:[#allocation0 + $0x280] sm:$0xf] %v4329_v43  ;;  %v4393_v43 = vld [vmem:[%s4890_s4 + $0x40] sm:$0xf] }
  0xcb   : > { %942 = vst [vmem:[#allocation0 + $0x278] sm:$0xf] %v4330_v44  ;;  %v4394_v44 = vld [vmem:[%s4890_s4 + $0x3c] sm:$0xf] }
  0xcc   : > { %946 = vst [vmem:[#allocation0 + $0x270] sm:$0xf] %v4331_v45  ;;  %v4395_v45 = vld [vmem:[%s4890_s4 + $0x38] sm:$0xf] }
  0xcd   : > { %950 = vst [vmem:[#allocation0 + $0x268] sm:$0xf] %v4332_v46  ;;  %v4396_v46 = vld [vmem:[%s4890_s4 + $0x34] sm:$0xf] }
  0xce   : > { %954 = vst [vmem:[#allocation0 + $0x260] sm:$0xf] %v4333_v47  ;;  %v4397_v47 = vld [vmem:[%s4890_s4 + $0x30] sm:$0xf] }
  0xcf   : > { %958 = vst [vmem:[#allocation0 + $0x258] sm:$0xf] %v4334_v48  ;;  %v4398_v48 = vld [vmem:[%s4890_s4 + $0x2c] sm:$0xf] }
  0xd0   : > { %962 = vst [vmem:[#allocation0 + $0x250] sm:$0xf] %v4335_v49  ;;  %v4399_v49 = vld [vmem:[%s4890_s4 + $0x28] sm:$0xf] }
  0xd1   : > { %966 = vst [vmem:[#allocation0 + $0x248] sm:$0xf] %v4336_v50  ;;  %v4400_v50 = vld [vmem:[%s4890_s4 + $0x24] sm:$0xf] }
  0xd2   : > { %970 = vst [vmem:[#allocation0 + $0x240] sm:$0xf] %v4337_v51  ;;  %v4401_v51 = vld [vmem:[%s4890_s4 + $0x20] sm:$0xf] }
  0xd3   : > { %974 = vst [vmem:[#allocation0 + $0x238] sm:$0xf] %v4338_v52  ;;  %v4402_v52 = vld [vmem:[%s4890_s4 + $0x1c] sm:$0xf] }
  0xd4   : > { %978 = vst [vmem:[#allocation0 + $0x230] sm:$0xf] %v4339_v53  ;;  %v4403_v53 = vld [vmem:[%s4890_s4 + $0x18] sm:$0xf] }
  0xd5   : > { %982 = vst [vmem:[#allocation0 + $0x228] sm:$0xf] %v4340_v54  ;;  %v4404_v54 = vld [vmem:[%s4890_s4 + $0x14] sm:$0xf] }
  0xd6   : > { %986 = vst [vmem:[#allocation0 + $0x220] sm:$0xf] %v4341_v55  ;;  %v1287_v55 = vlaneseq }
  0xd7   : > { %990 = vst [vmem:[#allocation0 + $0x218] sm:$0xf] %v4342_v56  ;;  %v4405_v56 = vld [vmem:[%s4890_s4 + $0x10] sm:$0xf] }
  0xd8   : > { %994 = vst [vmem:[#allocation0 + $0x210] sm:$0xf] %v4343_v57  ;;  %v4406_v57 = vld [vmem:[%s4890_s4 + $0xc] sm:$0xf] }
  0xd9   : > { %998 = vst [vmem:[#allocation0 + $0x208] sm:$0xf] %v4344_v58  ;;  %v4407_v58 = vld [vmem:[%s4890_s4 + $0x8] sm:$0xf] }
  0xda   : > { %1002 = vst [vmem:[#allocation0 + $0x200] sm:$0xf] %v4345_v59  ;;  %v4408_v59 = vld [vmem:[%s4890_s4 + $0x4] sm:$0xf] }
  0xdb   : > { %1006 = vst [vmem:[#allocation0 + $0x1f8] sm:$0xf] %v4346_v60  ;;  %v5107_v60 = vshrl.u32 %v1287_v55, 7 }
  0xdc   : > { %1010 = vst [vmem:[#allocation0 + $0x1f0] sm:$0xf] %v4347_v61  ;;  %v1255_v61 = vld [vmem:[%s4890_s4] sm:$0xf] }
  0xdd   : > { %1014 = vst [vmem:[#allocation0 + $0x1e8] sm:$0xf] %v4348_v62  ;;  %vm1289_vm0 = vcmp.lt.s32.totalorder %v5107_v60, 3 }
  0xde   : > { %1018 = vst [vmem:[#allocation0 + $0x1e0] sm:$0xf] %v4349_v63 }
  0xdf   : > { %1022 = vst [vmem:[#allocation0 + $0x1d8] sm:$0xf] %v4350_v0 }
  0xe0   : > { %1026 = vst [vmem:[#allocation0 + $0x1d0] sm:$0xf] %v4351_v1 }
  0xe1   : > { %1030 = vst [vmem:[#allocation0 + $0x1c8] sm:$0xf] %v4352_v2 }
  0xe2   : > { %1034 = vst [vmem:[#allocation0 + $0x1c0] sm:$0xf] %v4353_v3 }
  0xe3   : > { %1038 = vst [vmem:[#allocation0 + $0x1b8] sm:$0xf] %v4354_v4 }
  0xe4   : > { %1042 = vst [vmem:[#allocation0 + $0x1b0] sm:$0xf] %v4355_v5 }
  0xe5   : > { %1046 = vst [vmem:[#allocation0 + $0x1a8] sm:$0xf] %v4356_v6 }
  0xe6   : > { %1050 = vst [vmem:[#allocation0 + $0x1a0] sm:$0xf] %v4357_v7 }
  0xe7   : > { %1054 = vst [vmem:[#allocation0 + $0x198] sm:$0xf] %v4358_v8 }
  0xe8   : > { %1058 = vst [vmem:[#allocation0 + $0x190] sm:$0xf] %v4359_v9 }
  0xe9   : > { %1062 = vst [vmem:[#allocation0 + $0x188] sm:$0xf] %v4360_v10 }
  0xea   : > { %1066 = vst [vmem:[#allocation0 + $0x180] sm:$0xf] %v4361_v11 }
  0xeb   : > { %1070 = vst [vmem:[#allocation0 + $0x178] sm:$0xf] %v4362_v12 }
  0xec   : > { %1074 = vst [vmem:[#allocation0 + $0x170] sm:$0xf] %v4363_v13 }
  0xed   : > { %1078 = vst [vmem:[#allocation0 + $0x168] sm:$0xf] %v4364_v14 }
  0xee   : > { %1082 = vst [vmem:[#allocation0 + $0x160] sm:$0xf] %v4365_v15 }
  0xef   : > { %1086 = vst [vmem:[#allocation0 + $0x158] sm:$0xf] %v4366_v16 }
  0xf0   : > { %1090 = vst [vmem:[#allocation0 + $0x150] sm:$0xf] %v4367_v17 }
  0xf1   : > { %1094 = vst [vmem:[#allocation0 + $0x148] sm:$0xf] %v4368_v18 }
  0xf2   : > { %1098 = vst [vmem:[#allocation0 + $0x140] sm:$0xf] %v4369_v19 }
  0xf3   : > { %1102 = vst [vmem:[#allocation0 + $0x138] sm:$0xf] %v4370_v20 }
  0xf4   : > { %1106 = vst [vmem:[#allocation0 + $0x130] sm:$0xf] %v4371_v21 }
  0xf5   : > { %1110 = vst [vmem:[#allocation0 + $0x128] sm:$0xf] %v4372_v22 }
  0xf6   : > { %1114 = vst [vmem:[#allocation0 + $0x120] sm:$0xf] %v4373_v23 }
  0xf7   : > { %1118 = vst [vmem:[#allocation0 + $0x118] sm:$0xf] %v4374_v24 }
  0xf8   : > { %1122 = vst [vmem:[#allocation0 + $0x110] sm:$0xf] %v4375_v25 }
  0xf9   : > { %1126 = vst [vmem:[#allocation0 + $0x108] sm:$0xf] %v4376_v26 }
  0xfa   : > { %1130 = vst [vmem:[#allocation0 + $0x100] sm:$0xf] %v4377_v27 }
  0xfb   : > { %1134 = vst [vmem:[#allocation0 + $0xf8] sm:$0xf] %v4378_v28 }
  0xfc   : > { %1138 = vst [vmem:[#allocation0 + $0xf0] sm:$0xf] %v4379_v29 }
  0xfd   : > { %1142 = vst [vmem:[#allocation0 + $0xe8] sm:$0xf] %v4380_v30 }
  0xfe   : > { %1146 = vst [vmem:[#allocation0 + $0xe0] sm:$0xf] %v4381_v31 }
  0xff   : > { %1150 = vst [vmem:[#allocation0 + $0xd8] sm:$0xf] %v4382_v32 }
 0x100   : > { %1154 = vst [vmem:[#allocation0 + $0xd0] sm:$0xf] %v4383_v33 }
 0x101   : > { %1158 = vst [vmem:[#allocation0 + $0xc8] sm:$0xf] %v4384_v34 }
 0x102   : > { %1162 = vst [vmem:[#allocation0 + $0xc0] sm:$0xf] %v4385_v35 }
 0x103   : > { %1166 = vst [vmem:[#allocation0 + $0xb8] sm:$0xf] %v4386_v36 }
 0x104   : > { %1170 = vst [vmem:[#allocation0 + $0xb0] sm:$0xf] %v4387_v37 }
 0x105   : > { %1174 = vst [vmem:[#allocation0 + $0xa8] sm:$0xf] %v4388_v38 }
 0x106   : > { %1178 = vst [vmem:[#allocation0 + $0xa0] sm:$0xf] %v4389_v39 }
 0x107   : > { %1182 = vst [vmem:[#allocation0 + $0x98] sm:$0xf] %v4390_v40 }
 0x108   : > { %1186 = vst [vmem:[#allocation0 + $0x90] sm:$0xf] %v4391_v41 }
 0x109   : > { %1190 = vst [vmem:[#allocation0 + $0x88] sm:$0xf] %v4392_v42 }
 0x10a   : > { %1194 = vst [vmem:[#allocation0 + $0x80] sm:$0xf] %v4393_v43  ;;  %v1439_v42 = vld [vmem:[#allocation0 + $0xbf] ss:$-1 sm:$0xff] }
 0x10b   : > { %1198 = vst [vmem:[#allocation0 + $0x78] sm:$0xf] %v4394_v44  ;;  %v1434_v40 = vld [vmem:[#allocation0 + $0xb7] ss:$-1 sm:$0xff]  ;;  %v1448_v44 = vld [vmem:[#allocation0 + $0xc7] ss:$-1 sm:$0xff] }
 0x10c   : > { %1202 = vst [vmem:[#allocation0 + $0x70] sm:$0xf] %v4395_v45  ;;  %v1425_v38 = vld [vmem:[#allocation0 + $0xaf] ss:$-1 sm:$0xff]  ;;  %v1435_v45 = vrot.slane %v1434_v40, 5 }
 0x10d   : > { %1206 = vst [vmem:[#allocation0 + $0x68] sm:$0xf] %v4396_v46  ;;  %v1420_v36 = vld [vmem:[#allocation0 + $0xa7] ss:$-1 sm:$0xff]  ;;  %v1426_v43 = vrot.slane %v1425_v38, 5 }
 0x10e   : > { %1210 = vst [vmem:[#allocation0 + $0x60] sm:$0xf] %v4397_v47  ;;  %v1411_v34 = vld [vmem:[#allocation0 + $0x9f] ss:$-1 sm:$0xff]  ;;  %v1421_v41 = vrot.slane %v1420_v36, 5  ;;  %v1440_v47 = vrot.slane %v1439_v42, 5 }
 0x10f   : > { %1214 = vst [vmem:[#allocation0 + $0x58] sm:$0xf] %v4398_v48  ;;  %v1406_v32 = vld [vmem:[#allocation0 + $0x97] ss:$-1 sm:$0xff]  ;;  %v1412_v39 = vrot.slane %v1411_v34, 5 }
 0x110   : > { %1218 = vst [vmem:[#allocation0 + $0x50] sm:$0xf] %v4399_v49  ;;  %v1397_v30 = vld [vmem:[#allocation0 + $0x8f] ss:$-1 sm:$0xff]  ;;  %v1407_v37 = vrot.slane %v1406_v32, 5  ;;  %v1449_v49 = vrot.slane %v1448_v44, 5 }
 0x111   : > { %1222 = vst [vmem:[#allocation0 + $0x48] sm:$0xf] %v4400_v50  ;;  %v1392_v28 = vld [vmem:[#allocation0 + $0x87] ss:$-1 sm:$0xff]  ;;  %v1398_v35 = vrot.slane %v1397_v30, 5 }
 0x112   : > { %1226 = vst [vmem:[#allocation0 + $0x40] sm:$0xf] %v4401_v51  ;;  %v1383_v26 = vld [vmem:[#allocation0 + $0x7f] ss:$-1 sm:$0xff]  ;;  %v1393_v33 = vrot.slane %v1392_v28, 5 }
 0x113   : > { %1230 = vst [vmem:[#allocation0 + $0x38] sm:$0xf] %v4402_v52  ;;  %v1378_v24 = vld [vmem:[#allocation0 + $0x77] ss:$-1 sm:$0xff]  ;;  %v1384_v31 = vrot.slane %v1383_v26, 5 }
 0x114   : > { %1234 = vst [vmem:[#allocation0 + $0x30] sm:$0xf] %v4403_v53  ;;  %v1369_v21 = vld [vmem:[#allocation0 + $0x6f] ss:$-1 sm:$0xff]  ;;  %v1379_v29 = vrot.slane %v1378_v24, 5 }
 0x115   : > { %1238 = vst [vmem:[#allocation0 + $0x28] sm:$0xf] %v4404_v54  ;;  %v1364_v18 = vld [vmem:[#allocation0 + $0x67] ss:$-1 sm:$0xff]  ;;  %v1370_v27 = vrot.slane %v1369_v21, 5 }
 0x116   : > { %1242 = vst [vmem:[#allocation0 + $0x20] sm:$0xf] %v4405_v56  ;;  %v1355_v15 = vld [vmem:[#allocation0 + $0x5f] ss:$-1 sm:$0xff]  ;;  %v1365_v25 = vrot.slane %v1364_v18, 5 }
 0x117   : > { %1246 = vst [vmem:[#allocation0 + $0x18] sm:$0xf] %v4406_v57  ;;  %v1350_v62 = vld [vmem:[#allocation0 + $0x57] ss:$-1 sm:$0xff]  ;;  %v1356_v23 = vrot.slane %v1355_v15, 5 }
 0x118   : > { %1250 = vst [vmem:[#allocation0 + $0x10] sm:$0xf] %v4407_v58  ;;  %v1341_v63 = vld [vmem:[#allocation0 + $0x4f] ss:$-1 sm:$0xff]  ;;  %v1351_v0 = vrot.slane %v1350_v62, 5 }
 0x119   : > { %1254 = vst [vmem:[#allocation0 + $0x8] sm:$0xf] %v4408_v59  ;;  %v1336_v1 = vld [vmem:[#allocation0 + $0x47] ss:$-1 sm:$0xff]  ;;  %v1342_v2 = vrot.slane %v1341_v63, 5 }
 0x11a   : > { %1256 = vst [vmem:[#allocation0] sm:$0xf] %v1255_v61  ;;  %v1327_v3 = vld [vmem:[#allocation0 + $0x3f] ss:$-1 sm:$0xff]  ;;  %v1337_v4 = vrot.slane %v1336_v1, 5 }
 0x11b   : > { %v1322_v5 = vld [vmem:[#allocation0 + $0x37] ss:$-1 sm:$0xff]  ;;  %v1328_v6 = vrot.slane %v1327_v3, 5  ;;  %1352 = vst [vmem:[#allocation2 + $0x28] sm:$0xff] %v1351_v0  ;;  %v1453_v46 = vld [vmem:[#allocation0 + $0xcf] ss:$-1 sm:$0xff] }
 0x11c   : > { %v1313_v7 = vld [vmem:[#allocation0 + $0x2f] ss:$-1 sm:$0xff]  ;;  %v1323_v8 = vrot.slane %v1322_v5, 5  ;;  %1338 = vst [vmem:[#allocation2 + $0x20] sm:$0xff] %v1337_v4  ;;  %v1462_v48 = vld [vmem:[#allocation0 + $0xd7] ss:$-1 sm:$0xff] }
 0x11d   : > { %v1308_v9 = vld [vmem:[#allocation0 + $0x27] ss:$-1 sm:$0xff]  ;;  %v1314_v10 = vrot.slane %v1313_v7, 5  ;;  %1346 = vst.msk [vmem:[#allocation2 + $0x20] sm:$0xff] %vm1289_vm0, %v1342_v2  ;;  %v1467_v50 = vld [vmem:[#allocation0 + $0xdf] ss:$-1 sm:$0xff] }
 0x11e   : > { %v1299_v11 = vld [vmem:[#allocation0 + $0x1f] ss:$-1 sm:$0xff]  ;;  %v1309_v12 = vrot.slane %v1308_v9, 5  ;;  %1324 = vst [vmem:[#allocation2 + $0x18] sm:$0xff] %v1323_v8  ;;  %v1454_v51 = vrot.slane %v1453_v46, 5  ;;  %v1463_v53 = vrot.slane %v1462_v48, 5 }
 0x11f   : > { %v1294_v13 = vld [vmem:[#allocation0 + $0x17] ss:$-1 sm:$0xff]  ;;  %v1300_v14 = vrot.slane %v1299_v11, 5  ;;  %1332 = vst.msk [vmem:[#allocation2 + $0x18] sm:$0xff] %vm1289_vm0, %v1328_v6  ;;  %v1476_v52 = vld [vmem:[#allocation0 + $0xe7] ss:$-1 sm:$0xff] }
 0x120   : > { %v1285_v16 = vld [vmem:[#allocation0 + $0xf] ss:$-1 sm:$0xff]  ;;  %v1295_v17 = vrot.slane %v1294_v13, 5  ;;  %1310 = vst [vmem:[#allocation2 + $0x10] sm:$0xff] %v1309_v12  ;;  %v1468_v55 = vrot.slane %v1467_v50, 5  ;;  %v1477_v57 = vrot.slane %v1476_v52, 5 }
 0x121   : > { %v1280_v19 = vld [vmem:[#allocation0 + $0x7] ss:$-1 sm:$0xff]  ;;  %v1286_v20 = vrot.slane %v1285_v16, 5  ;;  %1318 = vst.msk [vmem:[#allocation2 + $0x10] sm:$0xff] %vm1289_vm0, %v1314_v10  ;;  %v1481_v54 = vld [vmem:[#allocation0 + $0xef] ss:$-1 sm:$0xff] }
 0x122   : > { %v1281_v22 = vrot.slane %v1280_v19, 5  ;;  %1296 = vst [vmem:[#allocation2 + $0x8] sm:$0xff] %v1295_v17  ;;  %v1490_v56 = vld [vmem:[#allocation0 + $0xf7] ss:$-1 sm:$0xff]  ;;  %v1495_v58 = vld [vmem:[#allocation0 + $0xff] ss:$-1 sm:$0xff] }
 0x123   : > { %1304 = vst.msk [vmem:[#allocation2 + $0x8] sm:$0xff] %vm1289_vm0, %v1300_v14  ;;  %v1482_v59 = vrot.slane %v1481_v54, 5  ;;  %v1504_v61 = vld [vmem:[#allocation0 + $0x107] ss:$-1 sm:$0xff]  ;;  %v1491_v62 = vrot.slane %v1490_v56, 5  ;;  %v1496_v0 = vrot.slane %v1495_v58, 5 }
 0x124   : > { %1282 = vst [vmem:[#allocation2] sm:$0xff] %v1281_v22  ;;  %v1509_v63 = vld [vmem:[#allocation0 + $0x10f] ss:$-1 sm:$0xff]  ;;  %v1518_v1 = vld [vmem:[#allocation0 + $0x117] ss:$-1 sm:$0xff]  ;;  %v1505_v2 = vrot.slane %v1504_v61, 5 }
 0x125   : > { %1290 = vst.msk [vmem:[#allocation2] sm:$0xff] %vm1289_vm0, %v1286_v20  ;;  %v1523_v3 = vld [vmem:[#allocation0 + $0x11f] ss:$-1 sm:$0xff]  ;;  %v1510_v4 = vrot.slane %v1509_v63, 5  ;;  %v1532_v5 = vld [vmem:[#allocation0 + $0x127] ss:$-1 sm:$0xff] }
 0x126   : > { %1360 = vst.msk [vmem:[#allocation2 + $0x28] sm:$0xff] %vm1289_vm0, %v1356_v23  ;;  %v1519_v6 = vrot.slane %v1518_v1, 5  ;;  %v1537_v7 = vld [vmem:[#allocation0 + $0x12f] ss:$-1 sm:$0xff]  ;;  %v1524_v8 = vrot.slane %v1523_v3, 5  ;;  %v1533_v10 = vrot.slane %v1532_v5, 5 }
 0x127   : > { %1366 = vst [vmem:[#allocation2 + $0x30] sm:$0xff] %v1365_v25  ;;  %v1546_v9 = vld [vmem:[#allocation0 + $0x137] ss:$-1 sm:$0xff]  ;;  %v1551_v11 = vld [vmem:[#allocation0 + $0x13f] ss:$-1 sm:$0xff]  ;;  %v1538_v12 = vrot.slane %v1537_v7, 5 }
 0x128   : > { %1374 = vst.msk [vmem:[#allocation2 + $0x30] sm:$0xff] %vm1289_vm0, %v1370_v27  ;;  %v1560_v13 = vld [vmem:[#allocation0 + $0x147] ss:$-1 sm:$0xff]  ;;  %v1547_v14 = vrot.slane %v1546_v9, 5  ;;  %v1565_v15 = vld [vmem:[#allocation0 + $0x14f] ss:$-1 sm:$0xff] }
 0x129   : > { %1380 = vst [vmem:[#allocation2 + $0x38] sm:$0xff] %v1379_v29  ;;  %v1552_v16 = vrot.slane %v1551_v11, 5  ;;  %v1574_v17 = vld [vmem:[#allocation0 + $0x157] ss:$-1 sm:$0xff]  ;;  %v1561_v18 = vrot.slane %v1560_v13, 5  ;;  %v1566_v20 = vrot.slane %v1565_v15, 5 }
 0x12a   : > { %1388 = vst.msk [vmem:[#allocation2 + $0x38] sm:$0xff] %vm1289_vm0, %v1384_v31  ;;  %v1579_v19 = vld [vmem:[#allocation0 + $0x15f] ss:$-1 sm:$0xff]  ;;  %v1588_v21 = vld [vmem:[#allocation0 + $0x167] ss:$-1 sm:$0xff]  ;;  %v1575_v22 = vrot.slane %v1574_v17, 5 }
 0x12b   : > { %1394 = vst [vmem:[#allocation2 + $0x40] sm:$0xff] %v1393_v33  ;;  %v1593_v23 = vld [vmem:[#allocation0 + $0x16f] ss:$-1 sm:$0xff]  ;;  %v1580_v24 = vrot.slane %v1579_v19, 5  ;;  %v1602_v25 = vld [vmem:[#allocation0 + $0x177] ss:$-1 sm:$0xff] }
 0x12c   : > { %1402 = vst.msk [vmem:[#allocation2 + $0x40] sm:$0xff] %vm1289_vm0, %v1398_v35  ;;  %v1589_v26 = vrot.slane %v1588_v21, 5  ;;  %v1607_v27 = vld [vmem:[#allocation0 + $0x17f] ss:$-1 sm:$0xff]  ;;  %v1594_v28 = vrot.slane %v1593_v23, 5  ;;  %v1603_v30 = vrot.slane %v1602_v25, 5 }
 0x12d   : > { %1408 = vst [vmem:[#allocation2 + $0x48] sm:$0xff] %v1407_v37  ;;  %v1616_v29 = vld [vmem:[#allocation0 + $0x187] ss:$-1 sm:$0xff]  ;;  %v1621_v31 = vld [vmem:[#allocation0 + $0x18f] ss:$-1 sm:$0xff]  ;;  %v1608_v32 = vrot.slane %v1607_v27, 5 }
 0x12e   : > { %1416 = vst.msk [vmem:[#allocation2 + $0x48] sm:$0xff] %vm1289_vm0, %v1412_v39  ;;  %v1630_v33 = vld [vmem:[#allocation0 + $0x197] ss:$-1 sm:$0xff]  ;;  %v1617_v34 = vrot.slane %v1616_v29, 5  ;;  %v1635_v35 = vld [vmem:[#allocation0 + $0x19f] ss:$-1 sm:$0xff] }
 0x12f   : > { %1422 = vst [vmem:[#allocation2 + $0x50] sm:$0xff] %v1421_v41  ;;  %v1622_v36 = vrot.slane %v1621_v31, 5  ;;  %v1644_v37 = vld [vmem:[#allocation0 + $0x1a7] ss:$-1 sm:$0xff]  ;;  %v1631_v38 = vrot.slane %v1630_v33, 5  ;;  %v1636_v40 = vrot.slane %v1635_v35, 5 }
 0x130   : > { %1430 = vst.msk [vmem:[#allocation2 + $0x50] sm:$0xff] %vm1289_vm0, %v1426_v43  ;;  %v1649_v39 = vld [vmem:[#allocation0 + $0x1af] ss:$-1 sm:$0xff]  ;;  %v1658_v41 = vld [vmem:[#allocation0 + $0x1b7] ss:$-1 sm:$0xff]  ;;  %v1645_v42 = vrot.slane %v1644_v37, 5 }
 0x131   : > { %1436 = vst [vmem:[#allocation2 + $0x58] sm:$0xff] %v1435_v45  ;;  %v1663_v43 = vld [vmem:[#allocation0 + $0x1bf] ss:$-1 sm:$0xff]  ;;  %v1650_v44 = vrot.slane %v1649_v39, 5  ;;  %v1672_v45 = vld [vmem:[#allocation0 + $0x1c7] ss:$-1 sm:$0xff] }
 0x132   : > { %1444 = vst.msk [vmem:[#allocation2 + $0x58] sm:$0xff] %vm1289_vm0, %v1440_v47  ;;  %v1659_v46 = vrot.slane %v1658_v41, 5  ;;  %v1677_v47 = vld [vmem:[#allocation0 + $0x1cf] ss:$-1 sm:$0xff]  ;;  %v1664_v48 = vrot.slane %v1663_v43, 5  ;;  %v1673_v50 = vrot.slane %v1672_v45, 5 }
 0x133   : > { %1450 = vst [vmem:[#allocation2 + $0x60] sm:$0xff] %v1449_v49  ;;  %v1686_v49 = vld [vmem:[#allocation0 + $0x1d7] ss:$-1 sm:$0xff]  ;;  %v1678_v52 = vrot.slane %v1677_v47, 5 }
 0x134   : > { %1458 = vst.msk [vmem:[#allocation2 + $0x60] sm:$0xff] %vm1289_vm0, %v1454_v51  ;;  %v1691_v51 = vld [vmem:[#allocation0 + $0x1df] ss:$-1 sm:$0xff]  ;;  %v1687_v54 = vrot.slane %v1686_v49, 5  ;;  %v2802_v60 = vld [vmem:[#allocation2 + $0x10] sm:$0xf] }
 0x135   : > { %1464 = vst [vmem:[#allocation2 + $0x68] sm:$0xff] %v1463_v53  ;;  %v1700_v53 = vld [vmem:[#allocation0 + $0x1e7] ss:$-1 sm:$0xff]  ;;  %v1692_v56 = vrot.slane %v1691_v51, 5 }
 0x136   : > { %1472 = vst.msk [vmem:[#allocation2 + $0x68] sm:$0xff] %vm1289_vm0, %v1468_v55  ;;  %v1705_v55 = vld [vmem:[#allocation0 + $0x1ef] ss:$-1 sm:$0xff]  ;;  %v1701_v58 = vrot.slane %v1700_v53, 5 }
 0x137   : > { %1478 = vst [vmem:[#allocation2 + $0x70] sm:$0xff] %v1477_v57  ;;  %v1714_v57 = vld [vmem:[#allocation0 + $0x1f7] ss:$-1 sm:$0xff]  ;;  %v1706_v61 = vrot.slane %v1705_v55, 5 }
 0x138   : > { %1486 = vst.msk [vmem:[#allocation2 + $0x70] sm:$0xff] %vm1289_vm0, %v1482_v59  ;;  %v1719_v59 = vld [vmem:[#allocation0 + $0x1ff] ss:$-1 sm:$0xff]  ;;  %v1715_v63 = vrot.slane %v1714_v57, 5 }
 0x139   : > { %1492 = vst [vmem:[#allocation2 + $0x78] sm:$0xff] %v1491_v62  ;;  %v1728_v62 = vld [vmem:[#allocation0 + $0x207] ss:$-1 sm:$0xff]  ;;  %v1720_v1 = vrot.slane %v1719_v59, 5 }
 0x13a   : > { %1500 = vst.msk [vmem:[#allocation2 + $0x78] sm:$0xff] %vm1289_vm0, %v1496_v0  ;;  %v1733_v0 = vld [vmem:[#allocation0 + $0x20f] ss:$-1 sm:$0xff]  ;;  %v1729_v3 = vrot.slane %v1728_v62, 5 }
 0x13b   : > { %1506 = vst [vmem:[#allocation2 + $0x80] sm:$0xff] %v1505_v2  ;;  %v1742_v2 = vld [vmem:[#allocation0 + $0x217] ss:$-1 sm:$0xff]  ;;  %v1734_v5 = vrot.slane %v1733_v0, 5 }
 0x13c   : > { %1514 = vst.msk [vmem:[#allocation2 + $0x80] sm:$0xff] %vm1289_vm0, %v1510_v4  ;;  %v1747_v4 = vld [vmem:[#allocation0 + $0x21f] ss:$-1 sm:$0xff]  ;;  %v1743_v7 = vrot.slane %v1742_v2, 5 }
 0x13d   : > { %1520 = vst [vmem:[#allocation2 + $0x88] sm:$0xff] %v1519_v6  ;;  %v1756_v6 = vld [vmem:[#allocation0 + $0x227] ss:$-1 sm:$0xff]  ;;  %v1748_v9 = vrot.slane %v1747_v4, 5 }
 0x13e   : > { %1528 = vst.msk [vmem:[#allocation2 + $0x88] sm:$0xff] %vm1289_vm0, %v1524_v8  ;;  %v1761_v8 = vld [vmem:[#allocation0 + $0x22f] ss:$-1 sm:$0xff]  ;;  %v1757_v11 = vrot.slane %v1756_v6, 5 }
 0x13f   : > { %1534 = vst [vmem:[#allocation2 + $0x90] sm:$0xff] %v1533_v10  ;;  %v1770_v10 = vld [vmem:[#allocation0 + $0x237] ss:$-1 sm:$0xff]  ;;  %v1762_v13 = vrot.slane %v1761_v8, 5 }
 0x140   : > { %1542 = vst.msk [vmem:[#allocation2 + $0x90] sm:$0xff] %vm1289_vm0, %v1538_v12  ;;  %v1775_v12 = vld [vmem:[#allocation0 + $0x23f] ss:$-1 sm:$0xff]  ;;  %v1771_v15 = vrot.slane %v1770_v10, 5 }
 0x141   : > { %1548 = vst [vmem:[#allocation2 + $0x98] sm:$0xff] %v1547_v14  ;;  %v1784_v14 = vld [vmem:[#allocation0 + $0x247] ss:$-1 sm:$0xff]  ;;  %v1776_v17 = vrot.slane %v1775_v12, 5 }
 0x142   : > { %1556 = vst.msk [vmem:[#allocation2 + $0x98] sm:$0xff] %vm1289_vm0, %v1552_v16  ;;  %v1789_v16 = vld [vmem:[#allocation0 + $0x24f] ss:$-1 sm:$0xff]  ;;  %v1785_v19 = vrot.slane %v1784_v14, 5 }
 0x143   : > { %1562 = vst [vmem:[#allocation2 + $0xa0] sm:$0xff] %v1561_v18  ;;  %v1798_v18 = vld [vmem:[#allocation0 + $0x257] ss:$-1 sm:$0xff]  ;;  %v1790_v21 = vrot.slane %v1789_v16, 5 }
 0x144   : > { %1570 = vst.msk [vmem:[#allocation2 + $0xa0] sm:$0xff] %vm1289_vm0, %v1566_v20  ;;  %v1803_v20 = vld [vmem:[#allocation0 + $0x25f] ss:$-1 sm:$0xff]  ;;  %v1799_v23 = vrot.slane %v1798_v18, 5 }
 0x145   : > { %1576 = vst [vmem:[#allocation2 + $0xa8] sm:$0xff] %v1575_v22  ;;  %v1812_v22 = vld [vmem:[#allocation0 + $0x267] ss:$-1 sm:$0xff]  ;;  %v1804_v25 = vrot.slane %v1803_v20, 5 }
 0x146   : > { %1584 = vst.msk [vmem:[#allocation2 + $0xa8] sm:$0xff] %vm1289_vm0, %v1580_v24  ;;  %v1817_v24 = vld [vmem:[#allocation0 + $0x26f] ss:$-1 sm:$0xff]  ;;  %v1813_v27 = vrot.slane %v1812_v22, 5 }
 0x147   : > { %1590 = vst [vmem:[#allocation2 + $0xb0] sm:$0xff] %v1589_v26  ;;  %v1826_v26 = vld [vmem:[#allocation0 + $0x277] ss:$-1 sm:$0xff]  ;;  %v1818_v29 = vrot.slane %v1817_v24, 5 }
 0x148   : > { %1598 = vst.msk [vmem:[#allocation2 + $0xb0] sm:$0xff] %vm1289_vm0, %v1594_v28  ;;  %v1831_v28 = vld [vmem:[#allocation0 + $0x27f] ss:$-1 sm:$0xff]  ;;  %v1827_v31 = vrot.slane %v1826_v26, 5 }
 0x149   : > { %1604 = vst [vmem:[#allocation2 + $0xb8] sm:$0xff] %v1603_v30  ;;  %v1840_v30 = vld [vmem:[#allocation0 + $0x287] ss:$-1 sm:$0xff]  ;;  %v1832_v33 = vrot.slane %v1831_v28, 5 }
 0x14a   : > { %1612 = vst.msk [vmem:[#allocation2 + $0xb8] sm:$0xff] %vm1289_vm0, %v1608_v32  ;;  %v1845_v32 = vld [vmem:[#allocation0 + $0x28f] ss:$-1 sm:$0xff]  ;;  %v1841_v35 = vrot.slane %v1840_v30, 5 }
 0x14b   : > { %1618 = vst [vmem:[#allocation2 + $0xc0] sm:$0xff] %v1617_v34  ;;  %v1854_v34 = vld [vmem:[#allocation0 + $0x297] ss:$-1 sm:$0xff]  ;;  %v1846_v37 = vrot.slane %v1845_v32, 5 }
 0x14c   : > { %1626 = vst.msk [vmem:[#allocation2 + $0xc0] sm:$0xff] %vm1289_vm0, %v1622_v36  ;;  %v1859_v36 = vld [vmem:[#allocation0 + $0x29f] ss:$-1 sm:$0xff]  ;;  %v1855_v39 = vrot.slane %v1854_v34, 5 }
 0x14d   : > { %1632 = vst [vmem:[#allocation2 + $0xc8] sm:$0xff] %v1631_v38  ;;  %v1868_v38 = vld [vmem:[#allocation0 + $0x2a7] ss:$-1 sm:$0xff]  ;;  %v1860_v41 = vrot.slane %v1859_v36, 5 }
 0x14e   : > { %1640 = vst.msk [vmem:[#allocation2 + $0xc8] sm:$0xff] %vm1289_vm0, %v1636_v40  ;;  %v1873_v40 = vld [vmem:[#allocation0 + $0x2af] ss:$-1 sm:$0xff]  ;;  %v1869_v43 = vrot.slane %v1868_v38, 5 }
 0x14f   : > { %1646 = vst [vmem:[#allocation2 + $0xd0] sm:$0xff] %v1645_v42  ;;  %v1882_v42 = vld [vmem:[#allocation0 + $0x2b7] ss:$-1 sm:$0xff]  ;;  %v1874_v45 = vrot.slane %v1873_v40, 5 }
 0x150   : > { %1654 = vst.msk [vmem:[#allocation2 + $0xd0] sm:$0xff] %vm1289_vm0, %v1650_v44  ;;  %v1887_v44 = vld [vmem:[#allocation0 + $0x2bf] ss:$-1 sm:$0xff]  ;;  %v1883_v47 = vrot.slane %v1882_v42, 5 }
 0x151   : > { %1660 = vst [vmem:[#allocation2 + $0xd8] sm:$0xff] %v1659_v46  ;;  %v1896_v46 = vld [vmem:[#allocation0 + $0x2c7] ss:$-1 sm:$0xff]  ;;  %v1888_v49 = vrot.slane %v1887_v44, 5 }
 0x152   : > { %1668 = vst.msk [vmem:[#allocation2 + $0xd8] sm:$0xff] %vm1289_vm0, %v1664_v48  ;;  %v1901_v48 = vld [vmem:[#allocation0 + $0x2cf] ss:$-1 sm:$0xff]  ;;  %v1897_v51 = vrot.slane %v1896_v46, 5 }
 0x153   : > { %1674 = vst [vmem:[#allocation2 + $0xe0] sm:$0xff] %v1673_v50  ;;  %v1910_v50 = vld [vmem:[#allocation0 + $0x2d7] ss:$-1 sm:$0xff]  ;;  %v1902_v53 = vrot.slane %v1901_v48, 5 }
 0x154   : > { %1682 = vst.msk [vmem:[#allocation2 + $0xe0] sm:$0xff] %vm1289_vm0, %v1678_v52  ;;  %v1915_v52 = vld [vmem:[#allocation0 + $0x2df] ss:$-1 sm:$0xff]  ;;  %v1911_v55 = vrot.slane %v1910_v50, 5 }
 0x155   : > { %1688 = vst [vmem:[#allocation2 + $0xe8] sm:$0xff] %v1687_v54  ;;  %v1924_v54 = vld [vmem:[#allocation0 + $0x2e7] ss:$-1 sm:$0xff]  ;;  %v1916_v57 = vrot.slane %v1915_v52, 5 }
 0x156   : > { %1696 = vst.msk [vmem:[#allocation2 + $0xe8] sm:$0xff] %vm1289_vm0, %v1692_v56  ;;  %v1929_v56 = vld [vmem:[#allocation0 + $0x2ef] ss:$-1 sm:$0xff]  ;;  %v1925_v59 = vrot.slane %v1924_v54, 5 }
 0x157   : > { %1702 = vst [vmem:[#allocation2 + $0xf0] sm:$0xff] %v1701_v58  ;;  %v1938_v58 = vld [vmem:[#allocation0 + $0x2f7] ss:$-1 sm:$0xff]  ;;  %v1930_v62 = vrot.slane %v1929_v56, 5 }
 0x158   : > { %1710 = vst.msk [vmem:[#allocation2 + $0xf0] sm:$0xff] %vm1289_vm0, %v1706_v61  ;;  %v1943_v61 = vld [vmem:[#allocation0 + $0x2ff] ss:$-1 sm:$0xff]  ;;  %v1939_v0 = vrot.slane %v1938_v58, 5 }
 0x159   : > { %1716 = vst [vmem:[#allocation2 + $0xf8] sm:$0xff] %v1715_v63  ;;  %v1952_v63 = vld [vmem:[#allocation0 + $0x307] ss:$-1 sm:$0xff]  ;;  %v1944_v2 = vrot.slane %v1943_v61, 5 }
 0x15a   : > { %1724 = vst.msk [vmem:[#allocation2 + $0xf8] sm:$0xff] %vm1289_vm0, %v1720_v1  ;;  %v1957_v1 = vld [vmem:[#allocation0 + $0x30f] ss:$-1 sm:$0xff]  ;;  %v1953_v4 = vrot.slane %v1952_v63, 5 }
 0x15b   : > { %1730 = vst [vmem:[#allocation2 + $0x100] sm:$0xff] %v1729_v3  ;;  %v1966_v3 = vld [vmem:[#allocation0 + $0x317] ss:$-1 sm:$0xff]  ;;  %v1958_v6 = vrot.slane %v1957_v1, 5 }
 0x15c   : > { %1738 = vst.msk [vmem:[#allocation2 + $0x100] sm:$0xff] %vm1289_vm0, %v1734_v5  ;;  %v1971_v5 = vld [vmem:[#allocation0 + $0x31f] ss:$-1 sm:$0xff]  ;;  %v1967_v8 = vrot.slane %v1966_v3, 5 }
 0x15d   : > { %1744 = vst [vmem:[#allocation2 + $0x108] sm:$0xff] %v1743_v7  ;;  %v1980_v7 = vld [vmem:[#allocation0 + $0x327] ss:$-1 sm:$0xff]  ;;  %v1972_v10 = vrot.slane %v1971_v5, 5 }
 0x15e   : > { %1752 = vst.msk [vmem:[#allocation2 + $0x108] sm:$0xff] %vm1289_vm0, %v1748_v9  ;;  %v1985_v9 = vld [vmem:[#allocation0 + $0x32f] ss:$-1 sm:$0xff]  ;;  %v1981_v12 = vrot.slane %v1980_v7, 5 }
 0x15f   : > { %1758 = vst [vmem:[#allocation2 + $0x110] sm:$0xff] %v1757_v11  ;;  %v1994_v11 = vld [vmem:[#allocation0 + $0x337] ss:$-1 sm:$0xff]  ;;  %v1986_v14 = vrot.slane %v1985_v9, 5 }
 0x160   : > { %1766 = vst.msk [vmem:[#allocation2 + $0x110] sm:$0xff] %vm1289_vm0, %v1762_v13  ;;  %v1999_v13 = vld [vmem:[#allocation0 + $0x33f] ss:$-1 sm:$0xff]  ;;  %v1995_v16 = vrot.slane %v1994_v11, 5 }
 0x161   : > { %1772 = vst [vmem:[#allocation2 + $0x118] sm:$0xff] %v1771_v15  ;;  %v2008_v15 = vld [vmem:[#allocation0 + $0x347] ss:$-1 sm:$0xff]  ;;  %v2000_v18 = vrot.slane %v1999_v13, 5 }
 0x162   : > { %1780 = vst.msk [vmem:[#allocation2 + $0x118] sm:$0xff] %vm1289_vm0, %v1776_v17  ;;  %v2013_v17 = vld [vmem:[#allocation0 + $0x34f] ss:$-1 sm:$0xff]  ;;  %v2009_v20 = vrot.slane %v2008_v15, 5 }
 0x163   : > { %1786 = vst [vmem:[#allocation2 + $0x120] sm:$0xff] %v1785_v19  ;;  %v2022_v19 = vld [vmem:[#allocation0 + $0x357] ss:$-1 sm:$0xff]  ;;  %v2014_v22 = vrot.slane %v2013_v17, 5 }
 0x164   : > { %1794 = vst.msk [vmem:[#allocation2 + $0x120] sm:$0xff] %vm1289_vm0, %v1790_v21  ;;  %v2027_v21 = vld [vmem:[#allocation0 + $0x35f] ss:$-1 sm:$0xff]  ;;  %v2023_v24 = vrot.slane %v2022_v19, 5 }
 0x165   : > { %1800 = vst [vmem:[#allocation2 + $0x128] sm:$0xff] %v1799_v23  ;;  %v2036_v23 = vld [vmem:[#allocation0 + $0x367] ss:$-1 sm:$0xff]  ;;  %v2028_v26 = vrot.slane %v2027_v21, 5 }
 0x166   : > { %1808 = vst.msk [vmem:[#allocation2 + $0x128] sm:$0xff] %vm1289_vm0, %v1804_v25  ;;  %v2041_v25 = vld [vmem:[#allocation0 + $0x36f] ss:$-1 sm:$0xff]  ;;  %v2037_v28 = vrot.slane %v2036_v23, 5 }
 0x167   : > { %1814 = vst [vmem:[#allocation2 + $0x130] sm:$0xff] %v1813_v27  ;;  %v2050_v27 = vld [vmem:[#allocation0 + $0x377] ss:$-1 sm:$0xff]  ;;  %v2042_v30 = vrot.slane %v2041_v25, 5 }
 0x168   : > { %1822 = vst.msk [vmem:[#allocation2 + $0x130] sm:$0xff] %vm1289_vm0, %v1818_v29  ;;  %v2055_v29 = vld [vmem:[#allocation0 + $0x37f] ss:$-1 sm:$0xff]  ;;  %v2051_v32 = vrot.slane %v2050_v27, 5 }
 0x169   : > { %1828 = vst [vmem:[#allocation2 + $0x138] sm:$0xff] %v1827_v31  ;;  %v2064_v31 = vld [vmem:[#allocation0 + $0x387] ss:$-1 sm:$0xff]  ;;  %v2056_v34 = vrot.slane %v2055_v29, 5 }
 0x16a   : > { %1836 = vst.msk [vmem:[#allocation2 + $0x138] sm:$0xff] %vm1289_vm0, %v1832_v33  ;;  %v2069_v33 = vld [vmem:[#allocation0 + $0x38f] ss:$-1 sm:$0xff]  ;;  %v2065_v36 = vrot.slane %v2064_v31, 5 }
 0x16b   : > { %1842 = vst [vmem:[#allocation2 + $0x140] sm:$0xff] %v1841_v35  ;;  %v2078_v35 = vld [vmem:[#allocation0 + $0x397] ss:$-1 sm:$0xff]  ;;  %v2070_v38 = vrot.slane %v2069_v33, 5 }
 0x16c   : > { %1850 = vst.msk [vmem:[#allocation2 + $0x140] sm:$0xff] %vm1289_vm0, %v1846_v37  ;;  %v2083_v37 = vld [vmem:[#allocation0 + $0x39f] ss:$-1 sm:$0xff]  ;;  %v2079_v40 = vrot.slane %v2078_v35, 5 }
 0x16d   : > { %1856 = vst [vmem:[#allocation2 + $0x148] sm:$0xff] %v1855_v39  ;;  %v2092_v39 = vld [vmem:[#allocation0 + $0x3a7] ss:$-1 sm:$0xff]  ;;  %v2084_v42 = vrot.slane %v2083_v37, 5 }
 0x16e   : > { %1864 = vst.msk [vmem:[#allocation2 + $0x148] sm:$0xff] %vm1289_vm0, %v1860_v41  ;;  %v2097_v41 = vld [vmem:[#allocation0 + $0x3af] ss:$-1 sm:$0xff]  ;;  %v2093_v44 = vrot.slane %v2092_v39, 5 }
 0x16f   : > { %1870 = vst [vmem:[#allocation2 + $0x150] sm:$0xff] %v1869_v43  ;;  %v2106_v43 = vld [vmem:[#allocation0 + $0x3b7] ss:$-1 sm:$0xff]  ;;  %v2098_v46 = vrot.slane %v2097_v41, 5 }
 0x170   : > { %1878 = vst.msk [vmem:[#allocation2 + $0x150] sm:$0xff] %vm1289_vm0, %v1874_v45  ;;  %v2111_v45 = vld [vmem:[#allocation0 + $0x3bf] ss:$-1 sm:$0xff]  ;;  %v2107_v48 = vrot.slane %v2106_v43, 5 }
 0x171   : > { %1884 = vst [vmem:[#allocation2 + $0x158] sm:$0xff] %v1883_v47  ;;  %v2120_v47 = vld [vmem:[#allocation0 + $0x3c7] ss:$-1 sm:$0xff]  ;;  %v2112_v50 = vrot.slane %v2111_v45, 5 }
 0x172   : > { %1892 = vst.msk [vmem:[#allocation2 + $0x158] sm:$0xff] %vm1289_vm0, %v1888_v49  ;;  %v2125_v49 = vld [vmem:[#allocation0 + $0x3cf] ss:$-1 sm:$0xff]  ;;  %v2121_v52 = vrot.slane %v2120_v47, 5 }
 0x173   : > { %1898 = vst [vmem:[#allocation2 + $0x160] sm:$0xff] %v1897_v51  ;;  %v2134_v51 = vld [vmem:[#allocation0 + $0x3d7] ss:$-1 sm:$0xff]  ;;  %v2126_v54 = vrot.slane %v2125_v49, 5 }
 0x174   : > { %1906 = vst.msk [vmem:[#allocation2 + $0x160] sm:$0xff] %vm1289_vm0, %v1902_v53  ;;  %v2139_v53 = vld [vmem:[#allocation0 + $0x3df] ss:$-1 sm:$0xff]  ;;  %v2135_v56 = vrot.slane %v2134_v51, 5 }
 0x175   : > { %1912 = vst [vmem:[#allocation2 + $0x168] sm:$0xff] %v1911_v55  ;;  %v2148_v55 = vld [vmem:[#allocation0 + $0x3e7] ss:$-1 sm:$0xff]  ;;  %v2140_v58 = vrot.slane %v2139_v53, 5 }
 0x176   : > { %1920 = vst.msk [vmem:[#allocation2 + $0x168] sm:$0xff] %vm1289_vm0, %v1916_v57  ;;  %v2153_v57 = vld [vmem:[#allocation0 + $0x3ef] ss:$-1 sm:$0xff]  ;;  %v2149_v61 = vrot.slane %v2148_v55, 5 }
 0x177   : > { %1926 = vst [vmem:[#allocation2 + $0x170] sm:$0xff] %v1925_v59  ;;  %v2162_v59 = vld [vmem:[#allocation0 + $0x3f7] ss:$-1 sm:$0xff]  ;;  %v2154_v63 = vrot.slane %v2153_v57, 5 }
 0x178   : > { %1934 = vst.msk [vmem:[#allocation2 + $0x170] sm:$0xff] %vm1289_vm0, %v1930_v62  ;;  %v2167_v62 = vld [vmem:[#allocation0 + $0x3ff] ss:$-1 sm:$0xff]  ;;  %v2163_v1 = vrot.slane %v2162_v59, 5 }
 0x179   : > { %1940 = vst [vmem:[#allocation2 + $0x178] sm:$0xff] %v1939_v0  ;;  %v2176_v0 = vld [vmem:[#allocation0 + $0x407] ss:$-1 sm:$0xff]  ;;  %v2168_v3 = vrot.slane %v2167_v62, 5 }
 0x17a   : > { %1948 = vst.msk [vmem:[#allocation2 + $0x178] sm:$0xff] %vm1289_vm0, %v1944_v2  ;;  %v2181_v2 = vld [vmem:[#allocation0 + $0x40f] ss:$-1 sm:$0xff]  ;;  %v2177_v5 = vrot.slane %v2176_v0, 5 }
 0x17b   : > { %1954 = vst [vmem:[#allocation2 + $0x180] sm:$0xff] %v1953_v4  ;;  %v2190_v4 = vld [vmem:[#allocation0 + $0x417] ss:$-1 sm:$0xff]  ;;  %v2182_v7 = vrot.slane %v2181_v2, 5 }
 0x17c   : > { %1962 = vst.msk [vmem:[#allocation2 + $0x180] sm:$0xff] %vm1289_vm0, %v1958_v6  ;;  %v2195_v6 = vld [vmem:[#allocation0 + $0x41f] ss:$-1 sm:$0xff]  ;;  %v2191_v9 = vrot.slane %v2190_v4, 5 }
 0x17d   : > { %1968 = vst [vmem:[#allocation2 + $0x188] sm:$0xff] %v1967_v8  ;;  %v2204_v8 = vld [vmem:[#allocation0 + $0x427] ss:$-1 sm:$0xff]  ;;  %v2196_v11 = vrot.slane %v2195_v6, 5 }
 0x17e   : > { %1976 = vst.msk [vmem:[#allocation2 + $0x188] sm:$0xff] %vm1289_vm0, %v1972_v10  ;;  %v2209_v10 = vld [vmem:[#allocation0 + $0x42f] ss:$-1 sm:$0xff]  ;;  %v2205_v13 = vrot.slane %v2204_v8, 5 }
 0x17f   : > { %1982 = vst [vmem:[#allocation2 + $0x190] sm:$0xff] %v1981_v12  ;;  %v2218_v12 = vld [vmem:[#allocation0 + $0x437] ss:$-1 sm:$0xff]  ;;  %v2210_v15 = vrot.slane %v2209_v10, 5 }
 0x180   : > { %1990 = vst.msk [vmem:[#allocation2 + $0x190] sm:$0xff] %vm1289_vm0, %v1986_v14  ;;  %v2223_v14 = vld [vmem:[#allocation0 + $0x43f] ss:$-1 sm:$0xff]  ;;  %v2219_v17 = vrot.slane %v2218_v12, 5 }
 0x181   : > { %1996 = vst [vmem:[#allocation2 + $0x198] sm:$0xff] %v1995_v16  ;;  %v2232_v16 = vld [vmem:[#allocation0 + $0x447] ss:$-1 sm:$0xff]  ;;  %v2224_v19 = vrot.slane %v2223_v14, 5 }
 0x182   : > { %2004 = vst.msk [vmem:[#allocation2 + $0x198] sm:$0xff] %vm1289_vm0, %v2000_v18  ;;  %v2237_v18 = vld [vmem:[#allocation0 + $0x44f] ss:$-1 sm:$0xff]  ;;  %v2233_v21 = vrot.slane %v2232_v16, 5 }
 0x183   : > { %2010 = vst [vmem:[#allocation2 + $0x1a0] sm:$0xff] %v2009_v20  ;;  %v2246_v20 = vld [vmem:[#allocation0 + $0x457] ss:$-1 sm:$0xff]  ;;  %v2238_v23 = vrot.slane %v2237_v18, 5 }
 0x184   : > { %2018 = vst.msk [vmem:[#allocation2 + $0x1a0] sm:$0xff] %vm1289_vm0, %v2014_v22  ;;  %v2251_v22 = vld [vmem:[#allocation0 + $0x45f] ss:$-1 sm:$0xff]  ;;  %v2247_v25 = vrot.slane %v2246_v20, 5 }
 0x185   : > { %2024 = vst [vmem:[#allocation2 + $0x1a8] sm:$0xff] %v2023_v24  ;;  %v2260_v24 = vld [vmem:[#allocation0 + $0x467] ss:$-1 sm:$0xff]  ;;  %v2252_v27 = vrot.slane %v2251_v22, 5 }
 0x186   : > { %2032 = vst.msk [vmem:[#allocation2 + $0x1a8] sm:$0xff] %vm1289_vm0, %v2028_v26  ;;  %v2265_v26 = vld [vmem:[#allocation0 + $0x46f] ss:$-1 sm:$0xff]  ;;  %v2261_v29 = vrot.slane %v2260_v24, 5 }
 0x187   : > { %2038 = vst [vmem:[#allocation2 + $0x1b0] sm:$0xff] %v2037_v28  ;;  %v2274_v28 = vld [vmem:[#allocation0 + $0x477] ss:$-1 sm:$0xff]  ;;  %v2266_v31 = vrot.slane %v2265_v26, 5 }
 0x188   : > { %2046 = vst.msk [vmem:[#allocation2 + $0x1b0] sm:$0xff] %vm1289_vm0, %v2042_v30  ;;  %v2279_v30 = vld [vmem:[#allocation0 + $0x47f] ss:$-1 sm:$0xff]  ;;  %v2275_v33 = vrot.slane %v2274_v28, 5 }
 0x189   : > { %2052 = vst [vmem:[#allocation2 + $0x1b8] sm:$0xff] %v2051_v32  ;;  %v2288_v32 = vld [vmem:[#allocation0 + $0x487] ss:$-1 sm:$0xff]  ;;  %v2280_v35 = vrot.slane %v2279_v30, 5 }
 0x18a   : > { %2060 = vst.msk [vmem:[#allocation2 + $0x1b8] sm:$0xff] %vm1289_vm0, %v2056_v34  ;;  %v2293_v34 = vld [vmem:[#allocation0 + $0x48f] ss:$-1 sm:$0xff]  ;;  %v2289_v37 = vrot.slane %v2288_v32, 5 }
 0x18b   : > { %2066 = vst [vmem:[#allocation2 + $0x1c0] sm:$0xff] %v2065_v36  ;;  %v2302_v36 = vld [vmem:[#allocation0 + $0x497] ss:$-1 sm:$0xff]  ;;  %v2294_v39 = vrot.slane %v2293_v34, 5 }
 0x18c   : > { %2074 = vst.msk [vmem:[#allocation2 + $0x1c0] sm:$0xff] %vm1289_vm0, %v2070_v38  ;;  %v2307_v38 = vld [vmem:[#allocation0 + $0x49f] ss:$-1 sm:$0xff]  ;;  %v2303_v41 = vrot.slane %v2302_v36, 5 }
 0x18d   : > { %2080 = vst [vmem:[#allocation2 + $0x1c8] sm:$0xff] %v2079_v40  ;;  %v2316_v40 = vld [vmem:[#allocation0 + $0x4a7] ss:$-1 sm:$0xff]  ;;  %v2308_v43 = vrot.slane %v2307_v38, 5 }
 0x18e   : > { %2088 = vst.msk [vmem:[#allocation2 + $0x1c8] sm:$0xff] %vm1289_vm0, %v2084_v42  ;;  %v2321_v42 = vld [vmem:[#allocation0 + $0x4af] ss:$-1 sm:$0xff]  ;;  %v2317_v45 = vrot.slane %v2316_v40, 5 }
 0x18f   : > { %2094 = vst [vmem:[#allocation2 + $0x1d0] sm:$0xff] %v2093_v44  ;;  %v2330_v44 = vld [vmem:[#allocation0 + $0x4b7] ss:$-1 sm:$0xff]  ;;  %v2322_v47 = vrot.slane %v2321_v42, 5 }
 0x190   : > { %2102 = vst.msk [vmem:[#allocation2 + $0x1d0] sm:$0xff] %vm1289_vm0, %v2098_v46  ;;  %v2335_v46 = vld [vmem:[#allocation0 + $0x4bf] ss:$-1 sm:$0xff]  ;;  %v2331_v49 = vrot.slane %v2330_v44, 5 }
 0x191   : > { %2108 = vst [vmem:[#allocation2 + $0x1d8] sm:$0xff] %v2107_v48  ;;  %v2344_v48 = vld [vmem:[#allocation0 + $0x4c7] ss:$-1 sm:$0xff]  ;;  %v2336_v51 = vrot.slane %v2335_v46, 5 }
 0x192   : > { %2116 = vst.msk [vmem:[#allocation2 + $0x1d8] sm:$0xff] %vm1289_vm0, %v2112_v50  ;;  %v2349_v50 = vld [vmem:[#allocation0 + $0x4cf] ss:$-1 sm:$0xff]  ;;  %v2345_v53 = vrot.slane %v2344_v48, 5 }
 0x193   : > { %2122 = vst [vmem:[#allocation2 + $0x1e0] sm:$0xff] %v2121_v52  ;;  %v2358_v52 = vld [vmem:[#allocation0 + $0x4d7] ss:$-1 sm:$0xff]  ;;  %v2350_v55 = vrot.slane %v2349_v50, 5 }
 0x194   : > { %2130 = vst.msk [vmem:[#allocation2 + $0x1e0] sm:$0xff] %vm1289_vm0, %v2126_v54  ;;  %v2363_v54 = vld [vmem:[#allocation0 + $0x4df] ss:$-1 sm:$0xff]  ;;  %v2359_v57 = vrot.slane %v2358_v52, 5 }
 0x195   : > { %2136 = vst [vmem:[#allocation2 + $0x1e8] sm:$0xff] %v2135_v56  ;;  %v2372_v56 = vld [vmem:[#allocation0 + $0x4e7] ss:$-1 sm:$0xff]  ;;  %v2364_v59 = vrot.slane %v2363_v54, 5 }
 0x196   : > { %2144 = vst.msk [vmem:[#allocation2 + $0x1e8] sm:$0xff] %vm1289_vm0, %v2140_v58  ;;  %v2377_v58 = vld [vmem:[#allocation0 + $0x4ef] ss:$-1 sm:$0xff]  ;;  %v2373_v62 = vrot.slane %v2372_v56, 5 }
 0x197   : > { %2150 = vst [vmem:[#allocation2 + $0x1f0] sm:$0xff] %v2149_v61  ;;  %v2386_v61 = vld [vmem:[#allocation0 + $0x4f7] ss:$-1 sm:$0xff]  ;;  %v2378_v0 = vrot.slane %v2377_v58, 5 }
 0x198   : > { %2158 = vst.msk [vmem:[#allocation2 + $0x1f0] sm:$0xff] %vm1289_vm0, %v2154_v63  ;;  %v2391_v63 = vld [vmem:[#allocation0 + $0x4ff] ss:$-1 sm:$0xff]  ;;  %v2387_v2 = vrot.slane %v2386_v61, 5 }
 0x199   : > { %2164 = vst [vmem:[#allocation2 + $0x1f8] sm:$0xff] %v2163_v1  ;;  %v2400_v1 = vld [vmem:[#allocation0 + $0x507] ss:$-1 sm:$0xff]  ;;  %v2392_v4 = vrot.slane %v2391_v63, 5 }
 0x19a   : > { %2172 = vst.msk [vmem:[#allocation2 + $0x1f8] sm:$0xff] %vm1289_vm0, %v2168_v3  ;;  %v2405_v3 = vld [vmem:[#allocation0 + $0x50f] ss:$-1 sm:$0xff]  ;;  %v2401_v6 = vrot.slane %v2400_v1, 5 }
 0x19b   : > { %2178 = vst [vmem:[#allocation2 + $0x200] sm:$0xff] %v2177_v5  ;;  %v2414_v5 = vld [vmem:[#allocation0 + $0x517] ss:$-1 sm:$0xff]  ;;  %v2406_v8 = vrot.slane %v2405_v3, 5 }
 0x19c   : > { %2186 = vst.msk [vmem:[#allocation2 + $0x200] sm:$0xff] %vm1289_vm0, %v2182_v7  ;;  %v2419_v7 = vld [vmem:[#allocation0 + $0x51f] ss:$-1 sm:$0xff]  ;;  %v2415_v10 = vrot.slane %v2414_v5, 5 }
 0x19d   : > { %2192 = vst [vmem:[#allocation2 + $0x208] sm:$0xff] %v2191_v9  ;;  %v2428_v9 = vld [vmem:[#allocation0 + $0x527] ss:$-1 sm:$0xff]  ;;  %v2420_v12 = vrot.slane %v2419_v7, 5 }
 0x19e   : > { %2200 = vst.msk [vmem:[#allocation2 + $0x208] sm:$0xff] %vm1289_vm0, %v2196_v11  ;;  %v2433_v11 = vld [vmem:[#allocation0 + $0x52f] ss:$-1 sm:$0xff]  ;;  %v2429_v14 = vrot.slane %v2428_v9, 5 }
 0x19f   : > { %2206 = vst [vmem:[#allocation2 + $0x210] sm:$0xff] %v2205_v13  ;;  %v2442_v13 = vld [vmem:[#allocation0 + $0x537] ss:$-1 sm:$0xff]  ;;  %v2434_v16 = vrot.slane %v2433_v11, 5 }
 0x1a0   : > { %2214 = vst.msk [vmem:[#allocation2 + $0x210] sm:$0xff] %vm1289_vm0, %v2210_v15  ;;  %v2447_v15 = vld [vmem:[#allocation0 + $0x53f] ss:$-1 sm:$0xff]  ;;  %v2443_v18 = vrot.slane %v2442_v13, 5 }
 0x1a1   : > { %2220 = vst [vmem:[#allocation2 + $0x218] sm:$0xff] %v2219_v17  ;;  %v2456_v17 = vld [vmem:[#allocation0 + $0x547] ss:$-1 sm:$0xff]  ;;  %v2448_v20 = vrot.slane %v2447_v15, 5 }
 0x1a2   : > { %2228 = vst.msk [vmem:[#allocation2 + $0x218] sm:$0xff] %vm1289_vm0, %v2224_v19  ;;  %v2461_v19 = vld [vmem:[#allocation0 + $0x54f] ss:$-1 sm:$0xff]  ;;  %v2457_v22 = vrot.slane %v2456_v17, 5 }
 0x1a3   : > { %2234 = vst [vmem:[#allocation2 + $0x220] sm:$0xff] %v2233_v21  ;;  %v2470_v21 = vld [vmem:[#allocation0 + $0x557] ss:$-1 sm:$0xff]  ;;  %v2462_v24 = vrot.slane %v2461_v19, 5 }
 0x1a4   : > { %2242 = vst.msk [vmem:[#allocation2 + $0x220] sm:$0xff] %vm1289_vm0, %v2238_v23  ;;  %v2475_v23 = vld [vmem:[#allocation0 + $0x55f] ss:$-1 sm:$0xff]  ;;  %v2471_v26 = vrot.slane %v2470_v21, 5 }
 0x1a5   : > { %2248 = vst [vmem:[#allocation2 + $0x228] sm:$0xff] %v2247_v25  ;;  %v2484_v25 = vld [vmem:[#allocation0 + $0x567] ss:$-1 sm:$0xff]  ;;  %v2476_v28 = vrot.slane %v2475_v23, 5 }
 0x1a6   : > { %2256 = vst.msk [vmem:[#allocation2 + $0x228] sm:$0xff] %vm1289_vm0, %v2252_v27  ;;  %v2489_v27 = vld [vmem:[#allocation0 + $0x56f] ss:$-1 sm:$0xff]  ;;  %v2485_v30 = vrot.slane %v2484_v25, 5 }
 0x1a7   : > { %2262 = vst [vmem:[#allocation2 + $0x230] sm:$0xff] %v2261_v29  ;;  %v2498_v29 = vld [vmem:[#allocation0 + $0x577] ss:$-1 sm:$0xff]  ;;  %v2490_v32 = vrot.slane %v2489_v27, 5 }
 0x1a8   : > { %2270 = vst.msk [vmem:[#allocation2 + $0x230] sm:$0xff] %vm1289_vm0, %v2266_v31  ;;  %v2503_v31 = vld [vmem:[#allocation0 + $0x57f] ss:$-1 sm:$0xff]  ;;  %v2499_v34 = vrot.slane %v2498_v29, 5 }
 0x1a9   : > { %2276 = vst [vmem:[#allocation2 + $0x238] sm:$0xff] %v2275_v33  ;;  %v2512_v33 = vld [vmem:[#allocation0 + $0x587] ss:$-1 sm:$0xff]  ;;  %v2504_v36 = vrot.slane %v2503_v31, 5 }
 0x1aa   : > { %2284 = vst.msk [vmem:[#allocation2 + $0x238] sm:$0xff] %vm1289_vm0, %v2280_v35  ;;  %v2517_v35 = vld [vmem:[#allocation0 + $0x58f] ss:$-1 sm:$0xff]  ;;  %v2513_v38 = vrot.slane %v2512_v33, 5 }
 0x1ab   : > { %2290 = vst [vmem:[#allocation2 + $0x240] sm:$0xff] %v2289_v37  ;;  %v2526_v37 = vld [vmem:[#allocation0 + $0x597] ss:$-1 sm:$0xff]  ;;  %v2518_v40 = vrot.slane %v2517_v35, 5 }
 0x1ac   : > { %2298 = vst.msk [vmem:[#allocation2 + $0x240] sm:$0xff] %vm1289_vm0, %v2294_v39  ;;  %v2531_v39 = vld [vmem:[#allocation0 + $0x59f] ss:$-1 sm:$0xff]  ;;  %v2527_v42 = vrot.slane %v2526_v37, 5 }
 0x1ad   : > { %2304 = vst [vmem:[#allocation2 + $0x248] sm:$0xff] %v2303_v41  ;;  %v2540_v41 = vld [vmem:[#allocation0 + $0x5a7] ss:$-1 sm:$0xff]  ;;  %v2532_v44 = vrot.slane %v2531_v39, 5 }
 0x1ae   : > { %2312 = vst.msk [vmem:[#allocation2 + $0x248] sm:$0xff] %vm1289_vm0, %v2308_v43  ;;  %v2545_v43 = vld [vmem:[#allocation0 + $0x5af] ss:$-1 sm:$0xff]  ;;  %v2541_v46 = vrot.slane %v2540_v41, 5 }
 0x1af   : > { %2318 = vst [vmem:[#allocation2 + $0x250] sm:$0xff] %v2317_v45  ;;  %v2554_v45 = vld [vmem:[#allocation0 + $0x5b7] ss:$-1 sm:$0xff]  ;;  %v2546_v48 = vrot.slane %v2545_v43, 5 }
 0x1b0   : > { %2326 = vst.msk [vmem:[#allocation2 + $0x250] sm:$0xff] %vm1289_vm0, %v2322_v47  ;;  %v2559_v47 = vld [vmem:[#allocation0 + $0x5bf] ss:$-1 sm:$0xff]  ;;  %v2555_v50 = vrot.slane %v2554_v45, 5 }
 0x1b1   : > { %2332 = vst [vmem:[#allocation2 + $0x258] sm:$0xff] %v2331_v49  ;;  %v2568_v49 = vld [vmem:[#allocation0 + $0x5c7] ss:$-1 sm:$0xff]  ;;  %v2560_v52 = vrot.slane %v2559_v47, 5 }
 0x1b2   : > { %2340 = vst.msk [vmem:[#allocation2 + $0x258] sm:$0xff] %vm1289_vm0, %v2336_v51  ;;  %v2573_v51 = vld [vmem:[#allocation0 + $0x5cf] ss:$-1 sm:$0xff]  ;;  %v2569_v54 = vrot.slane %v2568_v49, 5 }
 0x1b3   : > { %2346 = vst [vmem:[#allocation2 + $0x260] sm:$0xff] %v2345_v53  ;;  %v2582_v53 = vld [vmem:[#allocation0 + $0x5d7] ss:$-1 sm:$0xff]  ;;  %v2574_v56 = vrot.slane %v2573_v51, 5 }
 0x1b4   : > { %2354 = vst.msk [vmem:[#allocation2 + $0x260] sm:$0xff] %vm1289_vm0, %v2350_v55  ;;  %v2587_v55 = vld [vmem:[#allocation0 + $0x5df] ss:$-1 sm:$0xff]  ;;  %v2583_v58 = vrot.slane %v2582_v53, 5  ;;  %v2796_v53 = vld [vmem:[#allocation2 + $0x8] sm:$0xf] }
 0x1b5   : > { %2360 = vst [vmem:[#allocation2 + $0x268] sm:$0xff] %v2359_v57  ;;  %v2596_v57 = vld [vmem:[#allocation0 + $0x5e7] ss:$-1 sm:$0xff]  ;;  %v2588_v61 = vrot.slane %v2587_v55, 5 }
 0x1b6   : > { %2368 = vst.msk [vmem:[#allocation2 + $0x268] sm:$0xff] %vm1289_vm0, %v2364_v59  ;;  %v2601_v59 = vld [vmem:[#allocation0 + $0x5ef] ss:$-1 sm:$0xff]  ;;  %v2597_v63 = vrot.slane %v2596_v57, 5  ;;  %v2814_v55 = vld [vmem:[#allocation2 + $0x20] sm:$0xf] }
 0x1b7   : > { %2374 = vst [vmem:[#allocation2 + $0x270] sm:$0xff] %v2373_v62  ;;  %v2610_v62 = vld [vmem:[#allocation0 + $0x5f7] ss:$-1 sm:$0xff]  ;;  %v2602_v1 = vrot.slane %v2601_v59, 5  ;;  %v2838_v59 = vld [vmem:[#allocation2 + $0x40] sm:$0xf] }
 0x1b8   : > { %2382 = vst.msk [vmem:[#allocation2 + $0x270] sm:$0xff] %vm1289_vm0, %v2378_v0  ;;  %v2615_v0 = vld [vmem:[#allocation0 + $0x5ff] ss:$-1 sm:$0xff]  ;;  %v2611_v3 = vrot.slane %v2610_v62, 5  ;;  %v2826_v57 = vld [vmem:[#allocation2 + $0x30] sm:$0xf] }
 0x1b9   : > { %2388 = vst [vmem:[#allocation2 + $0x278] sm:$0xff] %v2387_v2  ;;  %v2624_v2 = vld [vmem:[#allocation0 + $0x607] ss:$-1 sm:$0xff]  ;;  %v2616_v5 = vrot.slane %v2615_v0, 5  ;;  %v2850_v62 = vld [vmem:[#allocation2 + $0x50] sm:$0xf] }
 0x1ba   : > { %2396 = vst.msk [vmem:[#allocation2 + $0x278] sm:$0xff] %vm1289_vm0, %v2392_v4  ;;  %v2629_v4 = vld [vmem:[#allocation0 + $0x60f] ss:$-1 sm:$0xff]  ;;  %v2625_v7 = vrot.slane %v2624_v2, 5  ;;  %v2862_v0 = vld [vmem:[#allocation2 + $0x60] sm:$0xf] }
 0x1bb   : > { %2402 = vst [vmem:[#allocation2 + $0x280] sm:$0xff] %v2401_v6  ;;  %v2638_v6 = vld [vmem:[#allocation0 + $0x617] ss:$-1 sm:$0xff]  ;;  %v2630_v9 = vrot.slane %v2629_v4, 5  ;;  %v2886_v4 = vld [vmem:[#allocation2 + $0x80] sm:$0xf] }
 0x1bc   : > { %2410 = vst.msk [vmem:[#allocation2 + $0x280] sm:$0xff] %vm1289_vm0, %v2406_v8  ;;  %v2643_v8 = vld [vmem:[#allocation0 + $0x61f] ss:$-1 sm:$0xff]  ;;  %v2639_v11 = vrot.slane %v2638_v6, 5  ;;  %v2874_v2 = vld [vmem:[#allocation2 + $0x70] sm:$0xf] }
 0x1bd   : > { %2416 = vst [vmem:[#allocation2 + $0x288] sm:$0xff] %v2415_v10  ;;  %v2652_v10 = vld [vmem:[#allocation0 + $0x627] ss:$-1 sm:$0xff]  ;;  %v2644_v13 = vrot.slane %v2643_v8, 5  ;;  %v2898_v6 = vld [vmem:[#allocation2 + $0x90] sm:$0xf] }
 0x1be   : > { %2424 = vst.msk [vmem:[#allocation2 + $0x288] sm:$0xff] %vm1289_vm0, %v2420_v12  ;;  %v2657_v12 = vld [vmem:[#allocation0 + $0x62f] ss:$-1 sm:$0xff]  ;;  %v2653_v15 = vrot.slane %v2652_v10, 5  ;;  %v2910_v8 = vld [vmem:[#allocation2 + $0xa0] sm:$0xf] }
 0x1bf   : > { %2430 = vst [vmem:[#allocation2 + $0x290] sm:$0xff] %v2429_v14  ;;  %v2666_v14 = vld [vmem:[#allocation0 + $0x637] ss:$-1 sm:$0xff]  ;;  %v2658_v17 = vrot.slane %v2657_v12, 5  ;;  %v2934_v12 = vld [vmem:[#allocation2 + $0xc0] sm:$0xf] }
 0x1c0   : > { %2438 = vst.msk [vmem:[#allocation2 + $0x290] sm:$0xff] %vm1289_vm0, %v2434_v16  ;;  %v2671_v16 = vld [vmem:[#allocation0 + $0x63f] ss:$-1 sm:$0xff]  ;;  %v2667_v19 = vrot.slane %v2666_v14, 5  ;;  %v2922_v10 = vld [vmem:[#allocation2 + $0xb0] sm:$0xf] }
 0x1c1   : > { %2444 = vst [vmem:[#allocation2 + $0x298] sm:$0xff] %v2443_v18  ;;  %v2680_v18 = vld [vmem:[#allocation0 + $0x647] ss:$-1 sm:$0xff]  ;;  %v2672_v21 = vrot.slane %v2671_v16, 5  ;;  %v2946_v14 = vld [vmem:[#allocation2 + $0xd0] sm:$0xf] }
 0x1c2   : > { %2452 = vst.msk [vmem:[#allocation2 + $0x298] sm:$0xff] %vm1289_vm0, %v2448_v20  ;;  %v2685_v20 = vld [vmem:[#allocation0 + $0x64f] ss:$-1 sm:$0xff]  ;;  %v2681_v23 = vrot.slane %v2680_v18, 5  ;;  %v2958_v16 = vld [vmem:[#allocation2 + $0xe0] sm:$0xf] }
 0x1c3   : > { %2458 = vst [vmem:[#allocation2 + $0x2a0] sm:$0xff] %v2457_v22  ;;  %v2694_v22 = vld [vmem:[#allocation0 + $0x657] ss:$-1 sm:$0xff]  ;;  %v2686_v25 = vrot.slane %v2685_v20, 5  ;;  %v2982_v20 = vld [vmem:[#allocation2 + $0x100] sm:$0xf] }
 0x1c4   : > { %2466 = vst.msk [vmem:[#allocation2 + $0x2a0] sm:$0xff] %vm1289_vm0, %v2462_v24  ;;  %v2699_v24 = vld [vmem:[#allocation0 + $0x65f] ss:$-1 sm:$0xff]  ;;  %v2695_v27 = vrot.slane %v2694_v22, 5  ;;  %v2970_v18 = vld [vmem:[#allocation2 + $0xf0] sm:$0xf] }
 0x1c5   : > { %2472 = vst [vmem:[#allocation2 + $0x2a8] sm:$0xff] %v2471_v26  ;;  %v2708_v26 = vld [vmem:[#allocation0 + $0x667] ss:$-1 sm:$0xff]  ;;  %v2700_v29 = vrot.slane %v2699_v24, 5  ;;  %v2994_v22 = vld [vmem:[#allocation2 + $0x110] sm:$0xf] }
 0x1c6   : > { %2480 = vst.msk [vmem:[#allocation2 + $0x2a8] sm:$0xff] %vm1289_vm0, %v2476_v28  ;;  %v2713_v28 = vld [vmem:[#allocation0 + $0x66f] ss:$-1 sm:$0xff]  ;;  %v2709_v31 = vrot.slane %v2708_v26, 5  ;;  %v3006_v24 = vld [vmem:[#allocation2 + $0x120] sm:$0xf] }
 0x1c7   : > { %2486 = vst [vmem:[#allocation2 + $0x2b0] sm:$0xff] %v2485_v30  ;;  %v2722_v30 = vld [vmem:[#allocation0 + $0x677] ss:$-1 sm:$0xff]  ;;  %v2714_v33 = vrot.slane %v2713_v28, 5  ;;  %v3030_v28 = vld [vmem:[#allocation2 + $0x140] sm:$0xf] }
 0x1c8   : > { %2494 = vst.msk [vmem:[#allocation2 + $0x2b0] sm:$0xff] %vm1289_vm0, %v2490_v32  ;;  %v2727_v32 = vld [vmem:[#allocation0 + $0x67f] ss:$-1 sm:$0xff]  ;;  %v2723_v35 = vrot.slane %v2722_v30, 5  ;;  %v3018_v26 = vld [vmem:[#allocation2 + $0x130] sm:$0xf] }
 0x1c9   : > { %2500 = vst [vmem:[#allocation2 + $0x2b8] sm:$0xff] %v2499_v34  ;;  %v2736_v34 = vld [vmem:[#allocation0 + $0x687] ss:$-1 sm:$0xff]  ;;  %v2728_v37 = vrot.slane %v2727_v32, 5  ;;  %v3042_v30 = vld [vmem:[#allocation2 + $0x150] sm:$0xf] }
 0x1ca   : > { %2508 = vst.msk [vmem:[#allocation2 + $0x2b8] sm:$0xff] %vm1289_vm0, %v2504_v36  ;;  %v2741_v36 = vld [vmem:[#allocation0 + $0x68f] ss:$-1 sm:$0xff]  ;;  %v2737_v39 = vrot.slane %v2736_v34, 5  ;;  %v3054_v32 = vld [vmem:[#allocation2 + $0x160] sm:$0xf] }
 0x1cb   : > { %2514 = vst [vmem:[#allocation2 + $0x2c0] sm:$0xff] %v2513_v38  ;;  %v2750_v38 = vld [vmem:[#allocation0 + $0x697] ss:$-1 sm:$0xff]  ;;  %v2742_v41 = vrot.slane %v2741_v36, 5  ;;  %v3078_v36 = vld [vmem:[#allocation2 + $0x180] sm:$0xf] }
 0x1cc   : > { %2522 = vst.msk [vmem:[#allocation2 + $0x2c0] sm:$0xff] %vm1289_vm0, %v2518_v40  ;;  %v2755_v40 = vld [vmem:[#allocation0 + $0x69f] ss:$-1 sm:$0xff]  ;;  %v2751_v43 = vrot.slane %v2750_v38, 5  ;;  %v3066_v34 = vld [vmem:[#allocation2 + $0x170] sm:$0xf] }
 0x1cd   : > { %2528 = vst [vmem:[#allocation2 + $0x2c8] sm:$0xff] %v2527_v42  ;;  %v2764_v42 = vld [vmem:[#allocation0 + $0x6a7] ss:$-1 sm:$0xff]  ;;  %v2756_v45 = vrot.slane %v2755_v40, 5  ;;  %v3090_v38 = vld [vmem:[#allocation2 + $0x190] sm:$0xf] }
 0x1ce   : > { %2536 = vst.msk [vmem:[#allocation2 + $0x2c8] sm:$0xff] %vm1289_vm0, %v2532_v44  ;;  %v2769_v44 = vld [vmem:[#allocation0 + $0x6af] ss:$-1 sm:$0xff]  ;;  %v2765_v47 = vrot.slane %v2764_v42, 5  ;;  %v3102_v40 = vld [vmem:[#allocation2 + $0x1a0] sm:$0xf] }
 0x1cf   : > { %2542 = vst [vmem:[#allocation2 + $0x2d0] sm:$0xff] %v2541_v46  ;;  %v2778_v46 = vld [vmem:[#allocation0 + $0x6b7] ss:$-1 sm:$0xff]  ;;  %v2770_v49 = vrot.slane %v2769_v44, 5  ;;  %v3126_v44 = vld [vmem:[#allocation2 + $0x1c0] sm:$0xf] }
 0x1d0   : > { %2550 = vst.msk [vmem:[#allocation2 + $0x2d0] sm:$0xff] %vm1289_vm0, %v2546_v48  ;;  %v2783_v48 = vld [vmem:[#allocation0 + $0x6bf] ss:$-1 sm:$0xff]  ;;  %v3114_v42 = vld [vmem:[#allocation2 + $0x1b0] sm:$0xf] }
 0x1d1   : > { %2556 = vst [vmem:[#allocation2 + $0x2d8] sm:$0xff] %v2555_v50  ;;  %v2779_v50 = vrot.slane %v2778_v46, 5  ;;  %v2784_v51 = vrot.slane %v2783_v48, 5  ;;  %v3138_v46 = vld [vmem:[#allocation2 + $0x1d0] sm:$0xf] }
 0x1d2   : > { %2564 = vst.msk [vmem:[#allocation2 + $0x2d8] sm:$0xff] %vm1289_vm0, %v2560_v52  ;;  %v2791_v52 = vld [vmem:[#allocation2] sm:$0xf] }
 0x1d3   : > { %2570 = vst [vmem:[#allocation2 + $0x2e0] sm:$0xff] %v2569_v54  ;;  %v2808_v54 = vld [vmem:[#allocation2 + $0x18] sm:$0xf]  ;;  %v3150_v48 = vld [vmem:[#allocation2 + $0x1e0] sm:$0xf] }
 0x1d4   : > { %2578 = vst.msk [vmem:[#allocation2 + $0x2e0] sm:$0xff] %vm1289_vm0, %v2574_v56  ;;  %v2820_v56 = vld [vmem:[#allocation2 + $0x28] sm:$0xf] }
 0x1d5   : > { %2584 = vst [vmem:[#allocation2 + $0x2e8] sm:$0xff] %v2583_v58  ;;  %v2832_v58 = vld [vmem:[#allocation2 + $0x38] sm:$0xf] }
 0x1d6   : > { %2592 = vst.msk [vmem:[#allocation2 + $0x2e8] sm:$0xff] %vm1289_vm0, %v2588_v61  ;;  %v2844_v61 = vld [vmem:[#allocation2 + $0x48] sm:$0xf] }
 0x1d7   : > { %2598 = vst [vmem:[#allocation2 + $0x2f0] sm:$0xff] %v2597_v63  ;;  %v2856_v63 = vld [vmem:[#allocation2 + $0x58] sm:$0xf] }
 0x1d8   : > { %2606 = vst.msk [vmem:[#allocation2 + $0x2f0] sm:$0xff] %vm1289_vm0, %v2602_v1  ;;  %v2868_v1 = vld [vmem:[#allocation2 + $0x68] sm:$0xf] }
 0x1d9   : > { %2612 = vst [vmem:[#allocation2 + $0x2f8] sm:$0xff] %v2611_v3  ;;  %v2880_v3 = vld [vmem:[#allocation2 + $0x78] sm:$0xf] }
 0x1da   : > { %2620 = vst.msk [vmem:[#allocation2 + $0x2f8] sm:$0xff] %vm1289_vm0, %v2616_v5  ;;  %v2892_v5 = vld [vmem:[#allocation2 + $0x88] sm:$0xf] }
 0x1db   : > { %2626 = vst [vmem:[#allocation2 + $0x300] sm:$0xff] %v2625_v7  ;;  %v2904_v7 = vld [vmem:[#allocation2 + $0x98] sm:$0xf] }
 0x1dc   : > { %2634 = vst.msk [vmem:[#allocation2 + $0x300] sm:$0xff] %vm1289_vm0, %v2630_v9  ;;  %v2916_v9 = vld [vmem:[#allocation2 + $0xa8] sm:$0xf] }
 0x1dd   : > { %2640 = vst [vmem:[#allocation2 + $0x308] sm:$0xff] %v2639_v11  ;;  %v2928_v11 = vld [vmem:[#allocation2 + $0xb8] sm:$0xf] }
 0x1de   : > { %2648 = vst.msk [vmem:[#allocation2 + $0x308] sm:$0xff] %vm1289_vm0, %v2644_v13  ;;  %v2940_v13 = vld [vmem:[#allocation2 + $0xc8] sm:$0xf] }
 0x1df   : > { %2654 = vst [vmem:[#allocation2 + $0x310] sm:$0xff] %v2653_v15  ;;  %v2952_v15 = vld [vmem:[#allocation2 + $0xd8] sm:$0xf] }
 0x1e0   : > { %2662 = vst.msk [vmem:[#allocation2 + $0x310] sm:$0xff] %vm1289_vm0, %v2658_v17  ;;  %v2964_v17 = vld [vmem:[#allocation2 + $0xe8] sm:$0xf] }
 0x1e1   : > { %2668 = vst [vmem:[#allocation2 + $0x318] sm:$0xff] %v2667_v19  ;;  %v2976_v19 = vld [vmem:[#allocation2 + $0xf8] sm:$0xf] }
 0x1e2   : > { %2676 = vst.msk [vmem:[#allocation2 + $0x318] sm:$0xff] %vm1289_vm0, %v2672_v21  ;;  %v2988_v21 = vld [vmem:[#allocation2 + $0x108] sm:$0xf] }
 0x1e3   : > { %2682 = vst [vmem:[#allocation2 + $0x320] sm:$0xff] %v2681_v23  ;;  %v3000_v23 = vld [vmem:[#allocation2 + $0x118] sm:$0xf] }
 0x1e4   : > { %2690 = vst.msk [vmem:[#allocation2 + $0x320] sm:$0xff] %vm1289_vm0, %v2686_v25  ;;  %v3012_v25 = vld [vmem:[#allocation2 + $0x128] sm:$0xf] }
 0x1e5   : > { %2696 = vst [vmem:[#allocation2 + $0x328] sm:$0xff] %v2695_v27  ;;  %v3024_v27 = vld [vmem:[#allocation2 + $0x138] sm:$0xf] }
 0x1e6   : > { %2704 = vst.msk [vmem:[#allocation2 + $0x328] sm:$0xff] %vm1289_vm0, %v2700_v29  ;;  %v3036_v29 = vld [vmem:[#allocation2 + $0x148] sm:$0xf] }
 0x1e7   : > { %2710 = vst [vmem:[#allocation2 + $0x330] sm:$0xff] %v2709_v31  ;;  %v3048_v31 = vld [vmem:[#allocation2 + $0x158] sm:$0xf] }
 0x1e8   : > { %2718 = vst.msk [vmem:[#allocation2 + $0x330] sm:$0xff] %vm1289_vm0, %v2714_v33  ;;  %v3060_v33 = vld [vmem:[#allocation2 + $0x168] sm:$0xf] }
 0x1e9   : > { %2724 = vst [vmem:[#allocation2 + $0x338] sm:$0xff] %v2723_v35  ;;  %v3072_v35 = vld [vmem:[#allocation2 + $0x178] sm:$0xf] }
 0x1ea   : > { %2732 = vst.msk [vmem:[#allocation2 + $0x338] sm:$0xff] %vm1289_vm0, %v2728_v37  ;;  %v3084_v37 = vld [vmem:[#allocation2 + $0x188] sm:$0xf] }
 0x1eb   : > { %2738 = vst [vmem:[#allocation2 + $0x340] sm:$0xff] %v2737_v39  ;;  %v3096_v39 = vld [vmem:[#allocation2 + $0x198] sm:$0xf] }
 0x1ec   : > { %2746 = vst.msk [vmem:[#allocation2 + $0x340] sm:$0xff] %vm1289_vm0, %v2742_v41  ;;  %v3108_v41 = vld [vmem:[#allocation2 + $0x1a8] sm:$0xf] }
 0x1ed   : > { %2752 = vst [vmem:[#allocation2 + $0x348] sm:$0xff] %v2751_v43  ;;  %v3120_v43 = vld [vmem:[#allocation2 + $0x1b8] sm:$0xf] }
 0x1ee   : > { %2760 = vst.msk [vmem:[#allocation2 + $0x348] sm:$0xff] %vm1289_vm0, %v2756_v45  ;;  %v3132_v45 = vld [vmem:[#allocation2 + $0x1c8] sm:$0xf] }
 0x1ef   : > { %2766 = vst [vmem:[#allocation2 + $0x350] sm:$0xff] %v2765_v47  ;;  %v3144_v47 = vld [vmem:[#allocation2 + $0x1d8] sm:$0xf] }
 0x1f0   : > { %2774 = vst.msk [vmem:[#allocation2 + $0x350] sm:$0xff] %vm1289_vm0, %v2770_v49  ;;  %v3156_v49 = vld [vmem:[#allocation2 + $0x1e8] sm:$0xf] }
 0x1f1   : > { %2780 = vst [vmem:[#allocation2 + $0x358] sm:$0xff] %v2779_v50  ;;  %v3162_v50 = vld [vmem:[#allocation2 + $0x1f0] sm:$0xf] }
 0x1f2   : > { %2788 = vst.msk [vmem:[#allocation2 + $0x358] sm:$0xff] %vm1289_vm0, %v2784_v51  ;;  %v3168_v51 = vld [vmem:[#allocation2 + $0x1f8] sm:$0xf] }
 0x1f3   : > { %2794 = vst [vmem:[%s5342_s17] sm:$0xf] %v2791_v52  ;;  %v3174_v52 = vld [vmem:[#allocation2 + $0x200] sm:$0xf] }
 0x1f4   : > { %4409 = vst [vmem:[%s5342_s17 + $0x4] sm:$0xf] %v2796_v53  ;;  %v3180_v53 = vld [vmem:[#allocation2 + $0x208] sm:$0xf] }
 0x1f5   : > { %4410 = vst [vmem:[%s5342_s17 + $0x8] sm:$0xf] %v2802_v60  ;;  %v3186_v60 = vld [vmem:[#allocation2 + $0x210] sm:$0xf] }
 0x1f6   : > { %4411 = vst [vmem:[%s5342_s17 + $0xc] sm:$0xf] %v2808_v54  ;;  %v3192_v54 = vld [vmem:[#allocation2 + $0x218] sm:$0xf] }
 0x1f7   : > { %4412 = vst [vmem:[%s5342_s17 + $0x10] sm:$0xf] %v2814_v55  ;;  %v3198_v55 = vld [vmem:[#allocation2 + $0x220] sm:$0xf] }
 0x1f8   : > { %4413 = vst [vmem:[%s5342_s17 + $0x14] sm:$0xf] %v2820_v56  ;;  %v3204_v56 = vld [vmem:[#allocation2 + $0x228] sm:$0xf] }
 0x1f9   : > { %4414 = vst [vmem:[%s5342_s17 + $0x18] sm:$0xf] %v2826_v57  ;;  %v3210_v57 = vld [vmem:[#allocation2 + $0x230] sm:$0xf] }
 0x1fa   : > { %4415 = vst [vmem:[%s5342_s17 + $0x1c] sm:$0xf] %v2832_v58  ;;  %v3216_v58 = vld [vmem:[#allocation2 + $0x238] sm:$0xf] }
 0x1fb   : > { %4416 = vst [vmem:[%s5342_s17 + $0x20] sm:$0xf] %v2838_v59  ;;  %v3222_v59 = vld [vmem:[#allocation2 + $0x240] sm:$0xf] }
 0x1fc   : > { %4417 = vst [vmem:[%s5342_s17 + $0x24] sm:$0xf] %v2844_v61  ;;  %v3228_v61 = vld [vmem:[#allocation2 + $0x248] sm:$0xf] }
 0x1fd   : > { %4418 = vst [vmem:[%s5342_s17 + $0x28] sm:$0xf] %v2850_v62  ;;  %v3234_v62 = vld [vmem:[#allocation2 + $0x250] sm:$0xf] }
 0x1fe   : > { %4419 = vst [vmem:[%s5342_s17 + $0x2c] sm:$0xf] %v2856_v63  ;;  %v3240_v63 = vld [vmem:[#allocation2 + $0x258] sm:$0xf] }
 0x1ff   : > { %4420 = vst [vmem:[%s5342_s17 + $0x30] sm:$0xf] %v2862_v0  ;;  %v3246_v0 = vld [vmem:[#allocation2 + $0x260] sm:$0xf] }
 0x200   : > { %4421 = vst [vmem:[%s5342_s17 + $0x34] sm:$0xf] %v2868_v1  ;;  %v3252_v1 = vld [vmem:[#allocation2 + $0x268] sm:$0xf] }
 0x201   : > { %4422 = vst [vmem:[%s5342_s17 + $0x38] sm:$0xf] %v2874_v2  ;;  %v3258_v2 = vld [vmem:[#allocation2 + $0x270] sm:$0xf] }
 0x202   : > { %4423 = vst [vmem:[%s5342_s17 + $0x3c] sm:$0xf] %v2880_v3  ;;  %v3264_v3 = vld [vmem:[#allocation2 + $0x278] sm:$0xf] }
 0x203   : > { %4424 = vst [vmem:[%s5342_s17 + $0x40] sm:$0xf] %v2886_v4  ;;  %v3270_v4 = vld [vmem:[#allocation2 + $0x280] sm:$0xf] }
 0x204   : > { %4425 = vst [vmem:[%s5342_s17 + $0x44] sm:$0xf] %v2892_v5  ;;  %v3276_v5 = vld [vmem:[#allocation2 + $0x288] sm:$0xf] }
 0x205   : > { %4426 = vst [vmem:[%s5342_s17 + $0x48] sm:$0xf] %v2898_v6  ;;  %v3282_v6 = vld [vmem:[#allocation2 + $0x290] sm:$0xf] }
 0x206   : > { %4427 = vst [vmem:[%s5342_s17 + $0x4c] sm:$0xf] %v2904_v7  ;;  %v3288_v7 = vld [vmem:[#allocation2 + $0x298] sm:$0xf] }
 0x207   : > { %4428 = vst [vmem:[%s5342_s17 + $0x50] sm:$0xf] %v2910_v8  ;;  %v3294_v8 = vld [vmem:[#allocation2 + $0x2a0] sm:$0xf] }
 0x208   : > { %4429 = vst [vmem:[%s5342_s17 + $0x54] sm:$0xf] %v2916_v9  ;;  %v3300_v9 = vld [vmem:[#allocation2 + $0x2a8] sm:$0xf] }
 0x209   : > { %4430 = vst [vmem:[%s5342_s17 + $0x58] sm:$0xf] %v2922_v10  ;;  %v3306_v10 = vld [vmem:[#allocation2 + $0x2b0] sm:$0xf] }
 0x20a   : > { %4431 = vst [vmem:[%s5342_s17 + $0x5c] sm:$0xf] %v2928_v11  ;;  %v3312_v11 = vld [vmem:[#allocation2 + $0x2b8] sm:$0xf] }
 0x20b   : > { %4432 = vst [vmem:[%s5342_s17 + $0x60] sm:$0xf] %v2934_v12  ;;  %v3318_v12 = vld [vmem:[#allocation2 + $0x2c0] sm:$0xf] }
 0x20c   : > { %4433 = vst [vmem:[%s5342_s17 + $0x64] sm:$0xf] %v2940_v13  ;;  %v3324_v13 = vld [vmem:[#allocation2 + $0x2c8] sm:$0xf] }
 0x20d   : > { %4434 = vst [vmem:[%s5342_s17 + $0x68] sm:$0xf] %v2946_v14  ;;  %v3330_v14 = vld [vmem:[#allocation2 + $0x2d0] sm:$0xf] }
 0x20e   : > { %4435 = vst [vmem:[%s5342_s17 + $0x6c] sm:$0xf] %v2952_v15  ;;  %v3336_v15 = vld [vmem:[#allocation2 + $0x2d8] sm:$0xf] }
 0x20f   : > { %4436 = vst [vmem:[%s5342_s17 + $0x70] sm:$0xf] %v2958_v16  ;;  %v3342_v16 = vld [vmem:[#allocation2 + $0x2e0] sm:$0xf] }
 0x210   : > { %4437 = vst [vmem:[%s5342_s17 + $0x74] sm:$0xf] %v2964_v17  ;;  %v3348_v17 = vld [vmem:[#allocation2 + $0x2e8] sm:$0xf] }
 0x211   : > { %4438 = vst [vmem:[%s5342_s17 + $0x78] sm:$0xf] %v2970_v18  ;;  %v3354_v18 = vld [vmem:[#allocation2 + $0x2f0] sm:$0xf] }
 0x212   : > { %4439 = vst [vmem:[%s5342_s17 + $0x7c] sm:$0xf] %v2976_v19  ;;  %v3360_v19 = vld [vmem:[#allocation2 + $0x2f8] sm:$0xf] }
 0x213   : > { %4440 = vst [vmem:[%s5342_s17 + $0x80] sm:$0xf] %v2982_v20  ;;  %v3366_v20 = vld [vmem:[#allocation2 + $0x300] sm:$0xf] }
 0x214   : > { %4441 = vst [vmem:[%s5342_s17 + $0x84] sm:$0xf] %v2988_v21  ;;  %v3372_v21 = vld [vmem:[#allocation2 + $0x308] sm:$0xf] }
 0x215   : > { %4442 = vst [vmem:[%s5342_s17 + $0x88] sm:$0xf] %v2994_v22  ;;  %v3378_v22 = vld [vmem:[#allocation2 + $0x310] sm:$0xf] }
 0x216   : > { %4443 = vst [vmem:[%s5342_s17 + $0x8c] sm:$0xf] %v3000_v23  ;;  %v3384_v23 = vld [vmem:[#allocation2 + $0x318] sm:$0xf] }
 0x217   : > { %4444 = vst [vmem:[%s5342_s17 + $0x90] sm:$0xf] %v3006_v24  ;;  %v3390_v24 = vld [vmem:[#allocation2 + $0x320] sm:$0xf] }
 0x218   : > { %4445 = vst [vmem:[%s5342_s17 + $0x94] sm:$0xf] %v3012_v25  ;;  %v3396_v25 = vld [vmem:[#allocation2 + $0x328] sm:$0xf] }
 0x219   : > { %4446 = vst [vmem:[%s5342_s17 + $0x98] sm:$0xf] %v3018_v26  ;;  %v3402_v26 = vld [vmem:[#allocation2 + $0x330] sm:$0xf] }
 0x21a   : > { %4447 = vst [vmem:[%s5342_s17 + $0x9c] sm:$0xf] %v3024_v27  ;;  %v3408_v27 = vld [vmem:[#allocation2 + $0x338] sm:$0xf] }
 0x21b   : > { %4448 = vst [vmem:[%s5342_s17 + $0xa0] sm:$0xf] %v3030_v28  ;;  %v3414_v28 = vld [vmem:[#allocation2 + $0x340] sm:$0xf] }
 0x21c   : > { %4449 = vst [vmem:[%s5342_s17 + $0xa4] sm:$0xf] %v3036_v29  ;;  %v3420_v29 = vld [vmem:[#allocation2 + $0x348] sm:$0xf] }
 0x21d   : > { %4450 = vst [vmem:[%s5342_s17 + $0xa8] sm:$0xf] %v3042_v30  ;;  %v3426_v30 = vld [vmem:[#allocation2 + $0x350] sm:$0xf] }
 0x21e   : > { %4451 = vst [vmem:[%s5342_s17 + $0xac] sm:$0xf] %v3048_v31  ;;  %v3432_v31 = vld [vmem:[#allocation2 + $0x358] sm:$0xf] }
 0x21f   : > { %4452 = vst [vmem:[%s5342_s17 + $0xb0] sm:$0xf] %v3054_v32 }
 0x220   : > { %4453 = vst [vmem:[%s5342_s17 + $0xb4] sm:$0xf] %v3060_v33 }
 0x221   : > { %4454 = vst [vmem:[%s5342_s17 + $0xb8] sm:$0xf] %v3066_v34 }
 0x222   : > { %4455 = vst [vmem:[%s5342_s17 + $0xbc] sm:$0xf] %v3072_v35 }
 0x223   : > { %4456 = vst [vmem:[%s5342_s17 + $0xc0] sm:$0xf] %v3078_v36 }
 0x224   : > { %4457 = vst [vmem:[%s5342_s17 + $0xc4] sm:$0xf] %v3084_v37 }
 0x225   : > { %4458 = vst [vmem:[%s5342_s17 + $0xc8] sm:$0xf] %v3090_v38 }
 0x226   : > { %4459 = vst [vmem:[%s5342_s17 + $0xcc] sm:$0xf] %v3096_v39 }
 0x227   : > { %4460 = vst [vmem:[%s5342_s17 + $0xd0] sm:$0xf] %v3102_v40 }
 0x228   : > { %4461 = vst [vmem:[%s5342_s17 + $0xd4] sm:$0xf] %v3108_v41 }
 0x229   : > { %4462 = vst [vmem:[%s5342_s17 + $0xd8] sm:$0xf] %v3114_v42 }
 0x22a   : > { %4463 = vst [vmem:[%s5342_s17 + $0xdc] sm:$0xf] %v3120_v43 }
 0x22b   : > { %4464 = vst [vmem:[%s5342_s17 + $0xe0] sm:$0xf] %v3126_v44 }
 0x22c   : > { %4465 = vst [vmem:[%s5342_s17 + $0xe4] sm:$0xf] %v3132_v45 }
 0x22d   : > { %4466 = vst [vmem:[%s5342_s17 + $0xe8] sm:$0xf] %v3138_v46 }
 0x22e   : > { %4467 = vst [vmem:[%s5342_s17 + $0xec] sm:$0xf] %v3144_v47 }
 0x22f   : > { %4468 = vst [vmem:[%s5342_s17 + $0xf0] sm:$0xf] %v3150_v48 }
 0x230   : > { %4469 = vst [vmem:[%s5342_s17 + $0xf4] sm:$0xf] %v3156_v49 }
 0x231   : > { %4470 = vst [vmem:[%s5342_s17 + $0xf8] sm:$0xf] %v3162_v50 }
 0x232   : > { %4471 = vst [vmem:[%s5342_s17 + $0xfc] sm:$0xf] %v3168_v51 }
 0x233   : > { %4472 = vst [vmem:[%s5342_s17 + $0x100] sm:$0xf] %v3174_v52 }
 0x234   : > { %4473 = vst [vmem:[%s5342_s17 + $0x104] sm:$0xf] %v3180_v53 }
 0x235   : > { %4474 = vst [vmem:[%s5342_s17 + $0x108] sm:$0xf] %v3186_v60 }
 0x236   : > { %4475 = vst [vmem:[%s5342_s17 + $0x10c] sm:$0xf] %v3192_v54 }
 0x237   : > { %4476 = vst [vmem:[%s5342_s17 + $0x110] sm:$0xf] %v3198_v55 }
 0x238   : > { %4477 = vst [vmem:[%s5342_s17 + $0x114] sm:$0xf] %v3204_v56 }
 0x239   : > { %4478 = vst [vmem:[%s5342_s17 + $0x118] sm:$0xf] %v3210_v57 }
 0x23a   : > { %4479 = vst [vmem:[%s5342_s17 + $0x11c] sm:$0xf] %v3216_v58 }
 0x23b   : > { %4480 = vst [vmem:[%s5342_s17 + $0x120] sm:$0xf] %v3222_v59 }
 0x23c   : > { %4481 = vst [vmem:[%s5342_s17 + $0x124] sm:$0xf] %v3228_v61 }
 0x23d   : > { %4482 = vst [vmem:[%s5342_s17 + $0x128] sm:$0xf] %v3234_v62 }
 0x23e   : > { %4483 = vst [vmem:[%s5342_s17 + $0x12c] sm:$0xf] %v3240_v63 }
 0x23f   : > { %4484 = vst [vmem:[%s5342_s17 + $0x130] sm:$0xf] %v3246_v0 }
 0x240   : > { %4485 = vst [vmem:[%s5342_s17 + $0x134] sm:$0xf] %v3252_v1 }
 0x241   : > { %4486 = vst [vmem:[%s5342_s17 + $0x138] sm:$0xf] %v3258_v2 }
 0x242   : > { %4487 = vst [vmem:[%s5342_s17 + $0x13c] sm:$0xf] %v3264_v3 }
 0x243   : > { %4488 = vst [vmem:[%s5342_s17 + $0x140] sm:$0xf] %v3270_v4 }
 0x244   : > { %4489 = vst [vmem:[%s5342_s17 + $0x144] sm:$0xf] %v3276_v5 }
 0x245   : > { %4490 = vst [vmem:[%s5342_s17 + $0x148] sm:$0xf] %v3282_v6 }
 0x246   : > { %4491 = vst [vmem:[%s5342_s17 + $0x14c] sm:$0xf] %v3288_v7 }
 0x247   : > { %4492 = vst [vmem:[%s5342_s17 + $0x150] sm:$0xf] %v3294_v8 }
 0x248   : > { %4493 = vst [vmem:[%s5342_s17 + $0x154] sm:$0xf] %v3300_v9 }
 0x249   : > { %4494 = vst [vmem:[%s5342_s17 + $0x158] sm:$0xf] %v3306_v10 }
 0x24a   : > { %4495 = vst [vmem:[%s5342_s17 + $0x15c] sm:$0xf] %v3312_v11 }
 0x24b   : > { %4496 = vst [vmem:[%s5342_s17 + $0x160] sm:$0xf] %v3318_v12 }
 0x24c   : > { %4497 = vst [vmem:[%s5342_s17 + $0x164] sm:$0xf] %v3324_v13 }
 0x24d   : > { %4498 = vst [vmem:[%s5342_s17 + $0x168] sm:$0xf] %v3330_v14 }
 0x24e   : > { %4499 = vst [vmem:[%s5342_s17 + $0x16c] sm:$0xf] %v3336_v15 }
 0x24f   : > { %4500 = vst [vmem:[%s5342_s17 + $0x170] sm:$0xf] %v3342_v16 }
 0x250   : > { %4501 = vst [vmem:[%s5342_s17 + $0x174] sm:$0xf] %v3348_v17 }
 0x251   : > { %4502 = vst [vmem:[%s5342_s17 + $0x178] sm:$0xf] %v3354_v18 }
 0x252   : > { %4503 = vst [vmem:[%s5342_s17 + $0x17c] sm:$0xf] %v3360_v19 }
 0x253   : > { %4504 = vst [vmem:[%s5342_s17 + $0x180] sm:$0xf] %v3366_v20 }
 0x254   : > { %4505 = vst [vmem:[%s5342_s17 + $0x184] sm:$0xf] %v3372_v21 }
 0x255   : > { %4506 = vst [vmem:[%s5342_s17 + $0x188] sm:$0xf] %v3378_v22 }
 0x256   : > { %4507 = vst [vmem:[%s5342_s17 + $0x18c] sm:$0xf] %v3384_v23 }
 0x257   : > { %4508 = vst [vmem:[%s5342_s17 + $0x190] sm:$0xf] %v3390_v24 }
 0x258   : > { %4509 = vst [vmem:[%s5342_s17 + $0x194] sm:$0xf] %v3396_v25 }
 0x259   : > { %4510 = vst [vmem:[%s5342_s17 + $0x198] sm:$0xf] %v3402_v26 }
 0x25a   : > { %4511 = vst [vmem:[%s5342_s17 + $0x19c] sm:$0xf] %v3408_v27  ;;  %3465 = sbr.rel (%p4518_p10) target bundleno = 650 (0x28a), region = 68 }
 0x25b   : > { %4512 = vst [vmem:[%s5342_s17 + $0x1a0] sm:$0xf] %v3414_v28 }
 0x25c   : > { %4513 = vst [vmem:[%s5342_s17 + $0x1a4] sm:$0xf] %v3420_v29 }
 0x25d   : > { %4514 = vst [vmem:[%s5342_s17 + $0x1a8] sm:$0xf] %v3426_v30 }
 0x25e   : > { %4515 = vst [vmem:[%s5342_s17 + $0x1ac] sm:$0xf] %v3432_v31 }
 0x25f   : > { %4142 = sbr.rel (%p4529_p11) target bundleno = 650 (0x28a), region = 1338  ;;  %s5588_s18 = smov (!%p4529_p11), %s5319_s15 }
 0x260   : > { %s5589_s19 = smov (!%p4529_p11), %s5342_s17  ;;  %s5461_s20 = smov (!%p4529_p11), 0  }
 0x261   : > { %s5463_s21 = smov (!%p4529_p11), 0  }
 0x264 LB: >> { %s3553_s22 = sadd.s32 1, %s4718_s20  ;;  %s3475_s21 = sadd.s32 1, %s4722_s21   ;;  %s4722_s21 = sphi %s5463_s21, %s3475_s21   ;;  %s4718_s20 = sphi %s5461_s20, %s5592_s20   ;;  %s4714_s19 = sphi %s5589_s19, %s5591_s19   ;;  %s4710_s18 = sphi %s5588_s18, %s5590_s18  }
 0x265   : >> { %v3481_v32 = vld [vmem:[%s4714_s19] sm:$0xf]  ;;  %v3483_v33 = vld [vmem:[%s4714_s19 + $0xc] sm:$0xf]  ;;  %v3485_v34 = vld [vmem:[%s4714_s19 + $0x18] sm:$0xf]  ;;  %p3554_p12 = scmp.ge.s32.totalorder %s3553_s22, %s5310_s11  ;;  %p3474_p13 = scmp.ge.s32.totalorder %s3475_s21, %s5310_s11 }
 0x266   : >> { %3482 = vst [vmem:[%s4710_s18] sm:$0xf] %v3481_v32  ;;  %v3487_v35 = vld [vmem:[%s4714_s19 + $0x24] sm:$0xf]  ;;  %v3489_v36 = vld [vmem:[%s4714_s19 + $0x30] sm:$0xf] }
 0x267   : >> { %3484 = vst [vmem:[%s4710_s18 + $0x10] sm:$0xf] %v3483_v33  ;;  %v3491_v37 = vld [vmem:[%s4714_s19 + $0x3c] sm:$0xf]  ;;  %v3493_v38 = vld [vmem:[%s4714_s19 + $0x48] sm:$0xf] }
 0x268   : >> { %3486 = vst [vmem:[%s4710_s18 + $0x20] sm:$0xf] %v3485_v34  ;;  %v3495_v39 = vld [vmem:[%s4714_s19 + $0x54] sm:$0xf]  ;;  %v3497_v40 = vld [vmem:[%s4714_s19 + $0x60] sm:$0xf] }
 0x269   : >> { %3488 = vst [vmem:[%s4710_s18 + $0x30] sm:$0xf] %v3487_v35  ;;  %v3499_v41 = vld [vmem:[%s4714_s19 + $0x6c] sm:$0xf]  ;;  %v3501_v42 = vld [vmem:[%s4714_s19 + $0x78] sm:$0xf] }
 0x26a   : >> { %3490 = vst [vmem:[%s4710_s18 + $0x40] sm:$0xf] %v3489_v36  ;;  %v3503_v43 = vld [vmem:[%s4714_s19 + $0x84] sm:$0xf]  ;;  %v3505_v44 = vld [vmem:[%s4714_s19 + $0x90] sm:$0xf] }
 0x26b   : >> { %3492 = vst [vmem:[%s4710_s18 + $0x50] sm:$0xf] %v3491_v37  ;;  %v3507_v45 = vld [vmem:[%s4714_s19 + $0x9c] sm:$0xf]  ;;  %v3509_v46 = vld [vmem:[%s4714_s19 + $0xa8] sm:$0xf] }
 0x26c   : >> { %3494 = vst [vmem:[%s4710_s18 + $0x60] sm:$0xf] %v3493_v38  ;;  %v3511_v47 = vld [vmem:[%s4714_s19 + $0xb4] sm:$0xf]  ;;  %v3513_v48 = vld [vmem:[%s4714_s19 + $0xc0] sm:$0xf] }
 0x26d   : >> { %3496 = vst [vmem:[%s4710_s18 + $0x70] sm:$0xf] %v3495_v39  ;;  %v3515_v49 = vld [vmem:[%s4714_s19 + $0xcc] sm:$0xf]  ;;  %v3517_v50 = vld [vmem:[%s4714_s19 + $0xd8] sm:$0xf] }
 0x26e   : >> { %3498 = vst [vmem:[%s4710_s18 + $0x80] sm:$0xf] %v3497_v40  ;;  %v3519_v51 = vld [vmem:[%s4714_s19 + $0xe4] sm:$0xf]  ;;  %s5602_s22 = smov (%p3554_p12, %s3553_s22), 0 }
 0x26f   : >> { %3500 = vst [vmem:[%s4710_s18 + $0x90] sm:$0xf] %v3499_v41  ;;  %v3521_v52 = vld [vmem:[%s4714_s19 + $0xf0] sm:$0xf]  ;;  %v3523_v53 = vld [vmem:[%s4714_s19 + $0xfc] sm:$0xf]  ;;  %s5592_s20 = smov %s5602_s22 }
 0x270   : >> { %3502 = vst [vmem:[%s4710_s18 + $0xa0] sm:$0xf] %v3501_v42  ;;  %s4520_s23 = sshll.u32 %s5602_s22, 2  ;;  %v3525_v60 = vld [vmem:[%s4714_s19 + $0x108] sm:$0xf] }
 0x271   : >> { %3504 = vst [vmem:[%s4710_s18 + $0xb0] sm:$0xf] %v3503_v43  ;;  %s5526_s24 = scalar_lea.vmem %s5342_s17, %s4520_s23 [#allocation3]   ;;  %s5529_s25 = scalar_lea.vmem %s5319_s15, %s4520_s23   ;;  %v3527_v54 = vld [vmem:[%s4714_s19 + $0x114] sm:$0xf]  ;;  %v3529_v55 = vld [vmem:[%s4714_s19 + $0x120] sm:$0xf] }
 0x272   : >> { %3506 = vst [vmem:[%s4710_s18 + $0xc0] sm:$0xf] %v3505_v44  ;;  %v3531_v56 = vld [vmem:[%s4714_s19 + $0x12c] sm:$0xf]  ;;  %v3533_v57 = vld [vmem:[%s4714_s19 + $0x138] sm:$0xf] }
 0x273   : >> { %3508 = vst [vmem:[%s4710_s18 + $0xd0] sm:$0xf] %v3507_v45  ;;  %v3535_v58 = vld [vmem:[%s4714_s19 + $0x144] sm:$0xf]  ;;  %v3537_v59 = vld [vmem:[%s4714_s19 + $0x150] sm:$0xf] }
 0x274   : >> { %3510 = vst [vmem:[%s4710_s18 + $0xe0] sm:$0xf] %v3509_v46  ;;  %v3539_v61 = vld [vmem:[%s4714_s19 + $0x15c] sm:$0xf]  ;;  %v3541_v62 = vld [vmem:[%s4714_s19 + $0x168] sm:$0xf] }
 0x275   : >> { %3512 = vst [vmem:[%s4710_s18 + $0xf0] sm:$0xf] %v3511_v47  ;;  %v3543_v63 = vld [vmem:[%s4714_s19 + $0x174] sm:$0xf]  ;;  %v3545_v0 = vld [vmem:[%s4714_s19 + $0x180] sm:$0xf] }
 0x276   : >> { %3514 = vst [vmem:[%s4710_s18 + $0x100] sm:$0xf] %v3513_v48  ;;  %v3547_v1 = vld [vmem:[%s4714_s19 + $0x18c] sm:$0xf]  ;;  %v3549_v2 = vld [vmem:[%s4714_s19 + $0x198] sm:$0xf] }
 0x277   : >> { %3516 = vst [vmem:[%s4710_s18 + $0x110] sm:$0xf] %v3515_v49  ;;  %v3551_v3 = vld [vmem:[%s4714_s19 + $0x1a4] sm:$0xf]  ;;  %s5591_s19 = smov %s5526_s24 }
 0x278   : >> { %3518 = vst [vmem:[%s4710_s18 + $0x120] sm:$0xf] %v3517_v50 }
 0x279   : >> { %3520 = vst [vmem:[%s4710_s18 + $0x130] sm:$0xf] %v3519_v51 }
 0x27a   : >> { %3522 = vst [vmem:[%s4710_s18 + $0x140] sm:$0xf] %v3521_v52 }
 0x27b   : >> { %3524 = vst [vmem:[%s4710_s18 + $0x150] sm:$0xf] %v3523_v53 }
 0x27c   : >> { %3526 = vst [vmem:[%s4710_s18 + $0x160] sm:$0xf] %v3525_v60 }
 0x27d   : >> { %3528 = vst [vmem:[%s4710_s18 + $0x170] sm:$0xf] %v3527_v54 }
 0x27e   : >> { %3530 = vst [vmem:[%s4710_s18 + $0x180] sm:$0xf] %v3529_v55 }
 0x27f   : >> { %3532 = vst [vmem:[%s4710_s18 + $0x190] sm:$0xf] %v3531_v56 }
 0x280   : >> { %3534 = vst [vmem:[%s4710_s18 + $0x1a0] sm:$0xf] %v3533_v57 }
 0x281   : >> { %3536 = vst [vmem:[%s4710_s18 + $0x1b0] sm:$0xf] %v3535_v58 }
 0x282   : >> { %3538 = vst [vmem:[%s4710_s18 + $0x1c0] sm:$0xf] %v3537_v59 }
 0x283   : >> { %3540 = vst [vmem:[%s4710_s18 + $0x1d0] sm:$0xf] %v3539_v61 }
 0x284   : >> { %3542 = vst [vmem:[%s4710_s18 + $0x1e0] sm:$0xf] %v3541_v62 }
 0x285   : >> { %3544 = vst [vmem:[%s4710_s18 + $0x1f0] sm:$0xf] %v3543_v63  ;;  %3477 = sbr.rel (!%p3474_p13) target bundleno = 612 (0x264), region = 1344 }
 0x286   : >> { %3546 = vst [vmem:[%s4710_s18 + $0x200] sm:$0xf] %v3545_v0 }
 0x287   : >> { %3548 = vst [vmem:[%s4710_s18 + $0x210] sm:$0xf] %v3547_v1 }
 0x288   : >> { %3550 = vst [vmem:[%s4710_s18 + $0x220] sm:$0xf] %v3549_v2 }
 0x289   : >> { %3552 = vst [vmem:[%s4710_s18 + $0x230] sm:$0xf] %v3551_v3  ;;  %s5590_s18 = smov %s5529_s25 }
 0x28a PF: > { %s7_s8 = sadd.s32 1, %s4690_s8   ;;  %s5593_s6 = smov %s4686_s7 }
 0x28b   : > { %p4_p0 = scmp.ge.s32.totalorder %s7_s8, 4   ;;  %s5594_s7 = smov %s5596_s10 }
 0x28d   :  { %6 = sbr.rel (!%p4_p0) target bundleno = 2 (0x2), region = 1355 }

// kernel: multihead_attention_conv.4
= control target key start
LH: loop header
LB: loop body
LE: loop exit
PB: predicated region body
PF: predicated region fallthrough
CT: control target
= control target key end

     0   :  { %s458_s12 = smov 0   ;;  %s485_s0 = inlined_call_operand.vmem [shape: bf16[4,3,256], index: 0, kind: input, shape index: {}]   ;;  %s486_s1 = inlined_call_operand.vmem [shape: bf16[4,3,256], index: 1, kind: input, shape index: {}]   ;;  %s487_s2 = inlined_call_operand.vmem [shape: bf16[4,3,256], index: 2, kind: input, shape index: {}]   ;;  %s488_s3 = inlined_call_operand.vmem [shape: f32[4,3,256], index: 3, kind: output, shape index: {}]  }
   0x1 LB: > { %s395_s13 = sadd.s32 4294967295, %s435_s12   ;;  %p399_p0 = scmp.ge.s32.totalorder %s435_s12, 1  ;;  %s435_s12 = sphi %s458_s12, %s13_s12  }
   0x2   : > { %p157_p1 = scmp.lt.s32.totalorder %s435_s12, 5 }
   0x4   : > { %p158_p2 = pnand %p399_p0, %p157_p1 }
   0x5   : > { %p191_p3 = scmp.lt.s32.totalorder (!%p158_p2), %s395_s13, 3 }
   0x6   : > { %161 = sbr.rel (%p158_p2) target bundleno = 564 (0x234), region = 32 }
   0xb   : > { %s490_s13 = smov (!%p191_p3, %s395_s13), 3  ;;  %vm253_vm0 = vcmask 18432   ;;  %vm275_vm1 = vcmask 1040384   ;;  %vm276_vm2 = vcmask 1041408   ;;  %v437_v20 = vmov 65535  }
   0xc   : > { %s412_s14 = sshll.u32 %s490_s13, 2  ;;  %v277_v21 = vsel %vm275_vm1, 4294967295, %v437_v20  ;;  %vm271_vm3 = vcmask 23552   ;;  %s415_s24 = sshll.u32 %s490_s13, 3  ;;  %vm312_vm4 = vcmask 1043456  }
   0xd   : > { %s195_s17 = scalar_lea.vmem %s485_s0, %s412_s14  ;;  %s200_s20 = scalar_lea.vmem %s486_s1, %s412_s14  ;;  %v278_v23 = vsel %vm276_vm2, %v277_v21, 0 }
   0xe   : > { %v212_v0 = vld [vmem:[%s195_s17] sm:$0xf]  ;;  %s205_s23 = scalar_lea.vmem %s487_s2, %s412_s14  ;;  %s210_s27 = scalar_lea.vmem %s488_s3, %s415_s24 }
   0xf   : > { %215 = vst [vmem:[#allocation1] ss:$4 sm:$0xff] %v212_v0  ;;  %v213_v1 = vld [vmem:[%s200_s20] sm:$0xf] }
  0x10   : > { %v266_v4 = vld [vmem:[%s205_s23] sm:$0xf] }
  0x16   : > { %v216_v2 = vld.sshfl [vmem:[#allocation1] sm:$0xff pattern:$0x73625140]  ;;  %v217_v3 = vld.sshfl [vmem:[#allocation1 + $0x8] sm:$0xff pattern:$0x73625140] }
  0x17   : > { %221 = vst [vmem:[#allocation1] ss:$4 sm:$0xff] %v213_v1 }
  0x1e   : > { %v222_v5 = vld.sshfl [vmem:[#allocation1] sm:$0xff pattern:$0x73625140]  ;;  %v223_v6 = vld.sshfl [vmem:[#allocation1 + $0x8] sm:$0xff pattern:$0x73625140] }
  0x1f   : > { %233 = vmatpush.bf16.xpose.msra.mxu0 %v222_v5  ;;  %246 = vmatpush.bf16.xpose.msra.mxu1 %v223_v6  ;;  %268 = vst [vmem:[#allocation1] ss:$4 sm:$0xff] %v266_v4 }
  0x26   : > { %234 = vmatmul.bf16.vlgmr.msra.gmra.mxu0 %v216_v2  ;;  %247 = vmatmul.bf16.vlgmr.msra.gmra.mxu1 %v217_v3  ;;  %v269_v19 = vld.sshfl [vmem:[#allocation1] sm:$0xff pattern:$0x73625140]  ;;  %v270_v22 = vld.sshfl [vmem:[#allocation1 + $0x8] sm:$0xff pattern:$0x73625140] }
  0x27   : > { %v279_v24 = vand.u32 %v278_v23, %v269_v19  ;;  %v281_v25 = vand.u32 %v278_v23, %v270_v22 }
  0x29   : > { %290 = vmatpush.bf16.msra.mxu2 %v279_v24  ;;  %303 = vmatpush.bf16.msra.mxu3 %v281_v25 }
  0xa3   : > { %v235_v7 = vpop.f32.mrf.mxu0  ;;  %v248_v8 = vpop.f32.mrf.mxu1 }
  0xa4   : > { %v249_v9 = vadd.f32 %v248_v8, %v235_v7 }
  0xa6   : > { %v252_v10 = vmul.f32 0.015625, %v249_v9 }
  0xa8   : > { %v254_v11 = vsel %vm253_vm0, %v252_v10, -inf }
  0xa9   : > { %255 = vmax.xlane.f32.xlu0 %v254_v11 }
  0xab   : > { %v237_v12 = vpop.f32.mrf.mxu0  ;;  %v250_v13 = vpop.f32.mrf.mxu1 }
 0x11c   : > { %v256_v14 = vpop.xlane.xlu0 %255 }
 0x11d   : > { %v257_v15 = vsub.f32 %v252_v10, %v256_v14 }
 0x11f   : > { %v258_v16 = vmul.f32 1.442695, %v257_v15 }
 0x121   : > { %425 = vpow2.f32 %v258_v16 }
 0x127   : > { %v426_v17 = vpop.eup %425 }
 0x128   : > { %v260_v18 = vsel %vm253_vm0, %v426_v17, 0.0 }
 0x129   : > { %261 = vadd.xlane.f32.xlu0 %v260_v18 }
 0x19c   : > { %v262_v26 = vpop.xlane.xlu0 %261 }
 0x19d   : > { %427 = vrcp.f32 %v262_v26 }
 0x1a3   : > { %v428_v27 = vpop.eup %427 }
 0x1a4   : > { %v264_v28 = vmul.f32 %v428_v27, %v426_v17 }
 0x1a6   : > { %v265_v29 = vpack.c.bf16 %v264_v28, %v264_v28 }
 0x1a8   : > { %408 = vmatmul.msk.bf16.vlgmr.msra.gmra.mxu2 %vm271_vm3, %v265_v29  ;;  %409 = vmatmul.msk.bf16.vlgmr.msra.gmra.mxu3 %vm271_vm3, %v265_v29 }
 0x22b   : > { %v292_v30 = vpop.f32.mrf.mxu2  ;;  %v305_v31 = vpop.f32.mrf.mxu3 }
 0x22c   : > { %v311_v32 = vrot.slane %v305_v31, 4 }
 0x22e   : > { %v313_v33 = vsel %vm312_vm4, %v292_v30, %v311_v32 }
 0x22f   : > { %315 = vst [vmem:[%s210_s27] sm:$0x77] %v313_v33 }
 0x233   : > { %v294_v34 = vpop.f32.mrf.mxu2  ;;  %v307_v35 = vpop.f32.mrf.mxu3 }
 0x234 PF: > { %s13_s12 = sadd.s32 1, %s435_s12  }
 0x235   : > { %p10_p4 = scmp.ge.s32.totalorder %s13_s12, 6  }
 0x237   :  { %12 = sbr.rel (!%p10_p4) target bundleno = 1 (0x1), region = 68 }

// kernel: multihead_attention_conv.5
= control target key start
LH: loop header
LB: loop body
LE: loop exit
PB: predicated region body
PF: predicated region fallthrough
CT: control target
= control target key end

     0   :  { %vm24_vm0 = vcmask 64512   ;;  %v100_v3 = vmov 0   ;;  %s145_s1 = inlined_call_operand.vmem [shape: f32[8,384], index: 1, kind: input, shape index: {}]   ;;  %s146_s0 = inlined_call_operand.vmem [shape: f32[8,8], index: 0, kind: input, shape index: {}]   ;;  %s147_s2 = inlined_call_operand.vmem [shape: f32[8,1], index: 2, kind: input, shape index: {}]   ;;  %s148_s3 = inlined_call_operand.vmem [shape: f32[8,384], index: 3, kind: output, shape index: {}]  }
   0x1   :  { %v17_v0 = vld [vmem:[%s145_s1 + $0x10] sm:$0xff]  ;;  %v14_v1 = vld [vmem:[%s146_s0] sm:$0xff]  ;;  %99 = vset.pattern.permute.xlu0 %v100_v3  ;;  %v16_v4 = vld [vmem:[%s145_s1 + $0x8] sm:$0xff] }
   0x2   :  { %v15_v2 = vld [vmem:[%s145_s1] sm:$0xff]  ;;  %83 = vmatpush.msra.mxu2 %v17_v0  ;;  %63 = vmatpush.msra.mxu1 %v16_v4 }
   0x3   :  { %43 = vmatpush.msra.mxu0 %v15_v2  ;;  %v18_v5 = vld [vmem:[%s147_s2] sm:$0xff]  ;;  %97 = vmatmul.msk.f32.vlgmr.msra.gmra.mxu2 %vm24_vm0, %v14_v1 }
   0x4   :  { %95 = vmatmul.msk.f32.vlgmr.msra.gmra.mxu0 %vm24_vm0, %v14_v1  ;;  %96 = vmatmul.msk.f32.vlgmr.msra.gmra.mxu1 %vm24_vm0, %v14_v1 }
   0x5   :  { %21 = vperm.xlu0 %99, %v18_v5  }
  0x77   :  { %v22_v6 = vpop.permute.xlu0 %21 }
  0x81   :  { %v45_v7 = vpop.f32.mrf.mxu0  ;;  %v65_v8 = vpop.f32.mrf.mxu1 }
  0x82   :  { %v46_v9 = vadd.f32 %v45_v7, %v22_v6  ;;  %v66_v10 = vadd.f32 %v65_v8, %v22_v6 }
  0x84   :  { %88 = vst [vmem:[%s148_s3] sm:$0xff] %v46_v9 }
  0x85   :  { %89 = vst [vmem:[%s148_s3 + $0x8] sm:$0xff] %v66_v10 }
  0x86   :  { %v85_v11 = vpop.f32.mrf.mxu2 }
  0x87   :  { %v86_v12 = vadd.f32 %v85_v11, %v22_v6 }
  0x89   :  { %90 = vst [vmem:[%s148_s3 + $0x10] sm:$0xff] %v86_v12 }

</bundles_post_ra>
